<compile_context>
chip_gen: v6e
topology: v6e:2x2x1
jax: 0.10.0
libtpu: 0.0.40
codegen_flags: <defaults>
</compile_context>

<pallas_src>
from functools import partial

import jax
import jax.numpy as jnp
from jax.experimental import pallas as pl
from jax.experimental.pallas import tpu as pltpu


# Matmul-operand dtype.  Keep float32 for exactness; flip to jnp.bfloat16 on
# v5e/v6e (native MXU dtype) after validating FNO tolerance.
_DOT_DTYPE = jnp.float32

# Spatial columns per grid step.  With width<=128, 2-deep buffering of
# (x_tile + x1_tile + out_tile) plus weights stays well under v7x's 64 MiB
# VMEM and the 32 MiB scoped limit requested below.
_DEFAULT_TILE_N = 2048


def _dot(a, b):
    return jnp.dot(a.astype(_DOT_DTYPE), b.astype(_DOT_DTYPE),
                   preferred_element_type=jnp.float32)


# ----------------------------------------------------------------------------
# Pallas kernels (pointwise GEMMs are lane-dense: out = W @ x, spatial on lanes)
# ----------------------------------------------------------------------------
def _pointwise_kernel(x_ref, w_ref, b_ref, o_ref, *, relu):
    # x:(Cin,TN)  w:(Cout,Cin)  b:(Cout,1)  ->  o:(Cout,TN)
    y = _dot(w_ref[...], x_ref[...]) + b_ref[...]
    if relu:
        y = jnp.maximum(y, 0.0)
    o_ref[...] = y


def _pointwise_add_kernel(x_ref, w_ref, b_ref, x1_ref, o_ref, *, relu):
    # y = spectral_branch + (W @ x + b); x1 is aliased with the output buffer.
    y = _dot(w_ref[...], x_ref[...]) + b_ref[...] + x1_ref[...]
    if relu:
        y = jnp.maximum(y, 0.0)
    o_ref[...] = y


def _head_kernel(x_ref, w1_ref, b1_ref, w2_ref, b2_ref, o_ref):
    # Fused fc1(+ReLU)+fc2: the (128, TN) intermediate never leaves VMEM and
    # fc2's Cout=1 store hides behind the fc1 matmul.
    h = jnp.maximum(_dot(w1_ref[...], x_ref[...]) + b1_ref[...], 0.0)
    o_ref[...] = _dot(w2_ref[...], h) + b2_ref[...]


def _spectral_mul_kernel(ar_ref, ai_ref, wr_ref, wi_ref, or_ref, oi_ref):
    # All retained Fourier modes in ONE launch: out[m] = a[m] @ w[m] (complex),
    # batched over m.  3-multiply (Karatsuba) complex product saves one MXU
    # pass; the extra adds are VPU slack.
    ar, ai = ar_ref[...], ai_ref[...]
    wr, wi = wr_ref[...], wi_ref[...]

    def bmm(a, w):
        return jnp.einsum("mbi,mio->mbo", a.astype(_DOT_DTYPE),
                          w.astype(_DOT_DTYPE),
                          preferred_element_type=jnp.float32)

    t1 = bmm(ar, wr)
    t2 = bmm(ai, wi)
    t3 = bmm(ar + ai, wr + wi)
    or_ref[...] = t1 - t2
    oi_ref[...] = t3 - t1 - t2


# ----------------------------------------------------------------------------
# Pallas wrappers
# ----------------------------------------------------------------------------
def _tile_cols(hw, tile_n):
    return hw if hw <= tile_n else tile_n


def _dense_compiler_params():
    # "parallel" on both grid axes lets v7x's two TensorCores split the grid;
    # explicit scoped-VMEM budget keeps the same tiles valid on 64 MiB v7x.
    return pltpu.CompilerParams(
        dimension_semantics=("parallel", "parallel"),
        vmem_limit_bytes=32 * 1024 * 1024,
    )


def pallas_pointwise(x, w, b, relu=False, tile_n=_DEFAULT_TILE_N):
    # x:(B,Cin,HW)  w:(Cout,Cin)  b:(Cout,1)  ->  (B,Cout,HW)
    B, Cin, HW = x.shape
    Cout = w.shape[0]
    tn = _tile_cols(HW, tile_n)
    return pl.pallas_call(
        partial(_pointwise_kernel, relu=relu),
        grid=(B, pl.cdiv(HW, tn)),
        in_specs=[
            pl.BlockSpec((None, Cin, tn), lambda bi, ni: (bi, 0, ni)),
            pl.BlockSpec((Cout, Cin), lambda bi, ni: (0, 0)),
            pl.BlockSpec((Cout, 1), lambda bi, ni: (0, 0)),
        ],
        out_specs=pl.BlockSpec((None, Cout, tn), lambda bi, ni: (bi, 0, ni)),
        out_shape=jax.ShapeDtypeStruct((B, Cout, HW), jnp.float32),
        compiler_params=_dense_compiler_params(),
    )(x, w, b)


def pallas_pointwise_add(x, w, b, x1, relu=False, tile_n=_DEFAULT_TILE_N):
    # Spectral branch x1 is aliased to the output: saves one (B,C,HW) HBM
    # allocation / writeback per layer.
    B, Cin, HW = x.shape
    Cout = w.shape[0]
    tn = _tile_cols(HW, tile_n)
    return pl.pallas_call(
        partial(_pointwise_add_kernel, relu=relu),
        grid=(B, pl.cdiv(HW, tn)),
        in_specs=[
            pl.BlockSpec((None, Cin, tn), lambda bi, ni: (bi, 0, ni)),
            pl.BlockSpec((Cout, Cin), lambda bi, ni: (0, 0)),
            pl.BlockSpec((Cout, 1), lambda bi, ni: (0, 0)),
            pl.BlockSpec((None, Cout, tn), lambda bi, ni: (bi, 0, ni)),
        ],
        out_specs=pl.BlockSpec((None, Cout, tn), lambda bi, ni: (bi, 0, ni)),
        out_shape=jax.ShapeDtypeStruct((B, Cout, HW), jnp.float32),
        input_output_aliases={3: 0},
        compiler_params=_dense_compiler_params(),
    )(x, w, b, x1)


def pallas_head(x, w1, b1, w2, b2, tile_n=_DEFAULT_TILE_N):
    # Fused fc1(+ReLU)+fc2:  (B,Cin,HW) -> (B,1,HW)
    B, Cin, HW = x.shape
    Cmid = w1.shape[0]
    Cout = w2.shape[0]
    tn = _tile_cols(HW, tile_n)
    return pl.pallas_call(
        _head_kernel,
        grid=(B, pl.cdiv(HW, tn)),
        in_specs=[
            pl.BlockSpec((None, Cin, tn), lambda bi, ni: (bi, 0, ni)),
            pl.BlockSpec((Cmid, Cin), lambda bi, ni: (0, 0)),
            pl.BlockSpec((Cmid, 1), lambda bi, ni: (0, 0)),
            pl.BlockSpec((Cout, Cmid), lambda bi, ni: (0, 0)),
            pl.BlockSpec((Cout, 1), lambda bi, ni: (0, 0)),
        ],
        out_specs=pl.BlockSpec((None, Cout, tn), lambda bi, ni: (bi, 0, ni)),
        out_shape=jax.ShapeDtypeStruct((B, Cout, HW), jnp.float32),
        compiler_params=_dense_compiler_params(),
    )(x, w1, b1, w2, b2)


def pallas_spectral_mul(ar, ai, wr, wi):
    # Single launch: total data is a few hundred KB -> full blocks in VMEM,
    # zero per-mode grid-step overhead.
    M, B, Cin = ar.shape
    Cout = wr.shape[2]
    return pl.pallas_call(
        _spectral_mul_kernel,
        out_shape=[
            jax.ShapeDtypeStruct((M, B, Cout), jnp.float32),
            jax.ShapeDtypeStruct((M, B, Cout), jnp.float32),
        ],
    )(ar, ai, wr, wi)


# ----------------------------------------------------------------------------
# SpectralConv2d forward (the spec module)
# ----------------------------------------------------------------------------
def spectral_conv2d(x_bchw, wr, wi, modes1, modes2):
    """rfft2 -> per-mode complex channel mixing (Pallas) -> irfft2.

    x_bchw : (B, Cin, H, W) float32
    wr, wi : (2*modes1*modes2, Cin, Cout) float32  (pre-stored kernel layout)
    """
    # TODO(synk): rfft2/irfft2 have no clean Pallas equivalent; plain JAX here.
    B, Cin, H, W = x_bchw.shape
    Cout = wr.shape[2]
    mm = modes1 * modes2
    x_ft = jnp.fft.rfft2(x_bchw)                           # (B,Cin,H,W//2+1) c64

    a = jnp.concatenate(
        [x_ft[:, :, :modes1, :modes2], x_ft[:, :, H - modes1:, :modes2]],
        axis=2)                                            # (B,Cin,2*m1,m2)
    a = jnp.transpose(a, (2, 3, 0, 1)).reshape(2 * mm, B, Cin)

    o_re, o_im = pallas_spectral_mul(jnp.real(a), jnp.imag(a), wr, wi)

    o = (o_re + 1j * o_im).reshape(2 * modes1, modes2, B, Cout)
    o = jnp.transpose(o, (2, 3, 0, 1))                     # (B,Cout,2*m1,m2)

    out_ft = jnp.zeros((B, Cout, H, W // 2 + 1), dtype=jnp.complex64)
    out_ft = out_ft.at[:, :, :modes1, :modes2].set(o[:, :, :modes1])
    out_ft = out_ft.at[:, :, H - modes1:, :modes2].set(o[:, :, modes1:])
    return jnp.fft.irfft2(out_ft, s=(H, W))                # (B,Cout,H,W) f32


# ----------------------------------------------------------------------------
# Full SimpleBlock2d forward (channels-first, lane-dense everywhere)
# ----------------------------------------------------------------------------
def simple_block2d_forward(x, p, modes1, modes2, width):
    # x: (B, H, W, 3) float32
    B, H, W, _ = x.shape
    HW = H * W
    # One-time layout change to channels-first (B, C, H*W).
    h = jnp.transpose(x, (0, 3, 1, 2)).reshape(B, 3, HW)
    h = pallas_pointwise(h, p["fc0_w"], p["fc0_b"], relu=False)   # (B,width,HW)

    for l in range(4):
        x1 = spectral_conv2d(h.reshape(B, width, H, W),
                             p[f"conv{l}_wr"], p[f"conv{l}_wi"],
                             modes1, modes2)                      # (B,width,H,W)
        h = pallas_pointwise_add(h, p[f"w{l}_w"], p[f"w{l}_b"],
                                 x1.reshape(B, width, HW), relu=(l < 3))

    out = pallas_head(h, p["fc1_w"], p["fc1_b"], p["fc2_w"], p["fc2_b"])
    return jnp.transpose(out.reshape(B, 1, H, W), (0, 2, 3, 1))   # (B,H,W,1)


# ----------------------------------------------------------------------------
# Pure-JAX references (for in-script correctness validation)
# ----------------------------------------------------------------------------
def spectral_conv2d_ref(x_bchw, wr, wi, modes1, modes2):
    # Follows the torch SpectralConv2d formulation (einsum 'bixy,ioxy->boxy').
    B, Cin, H, W = x_bchw.shape
    Cout = wr.shape[2]
    mm = modes1 * modes2
    w = wr + 1j * wi                                        # (2*mm,Cin,Cout)

    def to_ioxy(wm):                                        # -> (Cin,Cout,m1,m2)
        return jnp.transpose(wm.reshape(modes1, modes2, Cin, Cout), (2, 3, 0, 1))

    w1, w2 = to_ioxy(w[:mm]), to_ioxy(w[mm:])
    mul = lambda a, b: jnp.einsum("bixy,ioxy->boxy", a, b,
                                  precision=jax.lax.Precision.HIGHEST)
    x_ft = jnp.fft.rfft2(x_bchw)
    out_ft = jnp.zeros((B, Cout, H, W // 2 + 1), dtype=jnp.complex64)
    out_ft = out_ft.at[:, :, :modes1, :modes2].set(
        mul(x_ft[:, :, :modes1, :modes2], w1))
    out_ft = out_ft.at[:, :, H - modes1:, :modes2].set(
        mul(x_ft[:, :, H - modes1:, :modes2], w2))
    return jnp.fft.irfft2(out_ft, s=(H, W))


def simple_block2d_forward_ref(x, p, modes1, modes2, width):
    B, H, W, _ = x.shape
    HW = H * W
    hp = jax.lax.Precision.HIGHEST
    mm_ = lambda w, a: jnp.einsum("oi,bin->bon", w, a, precision=hp)
    h = jnp.transpose(x, (0, 3, 1, 2)).reshape(B, 3, HW)
    h = mm_(p["fc0_w"], h) + p["fc0_b"][None]
    for l in range(4):
        x1 = spectral_conv2d_ref(h.reshape(B, width, H, W),
                                 p[f"conv{l}_wr"], p[f"conv{l}_wi"],
                                 modes1, modes2)
        h = mm_(p[f"w{l}_w"], h) + p[f"w{l}_b"][None] + x1.reshape(B, width, HW)
        if l < 3:
            h = jnp.maximum(h, 0.0)
    h = jnp.maximum(mm_(p["fc1_w"], h) + p["fc1_b"][None], 0.0)
    h = mm_(p["fc2_w"], h) + p["fc2_b"][None]
    return jnp.transpose(h.reshape(B, 1, H, W), (0, 2, 3, 1))


# ----------------------------------------------------------------------------
# Deterministic parameter init (synthetic; shapes match the torch module)
# ----------------------------------------------------------------------------
def init_params(key, modes1, modes2, width):
    p = {}
    keys = iter(jax.random.split(key, 64))

    def unif(shape, scale=1.0):
        return (scale * jax.random.uniform(next(keys), shape)).astype(jnp.float32)

    # Dense weights pre-stored as (Cout, Cin), biases as (Cout, 1): kernels
    # compute lane-dense out = W @ x with no per-forward transposes.
    p["fc0_w"] = unif((width, 3))
    p["fc0_b"] = unif((width, 1))

    spec_scale = 1.0 / (width * width)
    mm = modes1 * modes2

    def to_kernel_layout(w):  # (Cin,Cout,m1,m2) -> (m1*m2,Cin,Cout)
        return jnp.transpose(w, (2, 3, 0, 1)).reshape(mm, width, width)

    for l in range(4):
        # SpectralConv2d complex weights: generated in the torch layout
        # (Cin, Cout, m1, m2) then stored ONCE in the (2*m1*m2, Cin, Cout)
        # kernel layout so no per-forward transposes/concats are needed.
        w1re = unif((width, width, modes1, modes2), spec_scale)
        w1im = unif((width, width, modes1, modes2), spec_scale)
        w2re = unif((width, width, modes1, modes2), spec_scale)
        w2im = unif((width, width, modes1, modes2), spec_scale)
        p[f"conv{l}_wr"] = jnp.concatenate(
            [to_kernel_layout(w1re), to_kernel_layout(w2re)], axis=0)
        p[f"conv{l}_wi"] = jnp.concatenate(
            [to_kernel_layout(w1im), to_kernel_layout(w2im)], axis=0)
        # Conv1d(width, width, 1) -> (Cout, Cin) + (Cout, 1) bias
        p[f"w{l}_w"] = unif((width, width))
        p[f"w{l}_b"] = unif((width, 1))

    p["fc1_w"] = unif((128, width))
    p["fc1_b"] = unif((128, 1))
    p["fc2_w"] = unif((1, 128))
    p["fc2_b"] = unif((1, 1))
    return p


if __name__ == "__main__":
    modes1, modes2, width = 6, 6, 8
    B, S = 2, 16  # batch, spatial grid (model input channels fixed at 3)

    key = jax.random.PRNGKey(0)
    k_in, k_par, k_spec = jax.random.split(key, 3)
    x = jax.random.normal(k_in, (B, S, S, 3), dtype=jnp.float32)
    params = init_params(k_par, modes1, modes2, width)

    # --- correctness: Pallas SpectralConv2d vs pure-JAX torch-style reference
    xs = jax.random.normal(k_spec, (B, width, S, S), dtype=jnp.float32)
    y_pl = jax.jit(lambda a, wr, wi: spectral_conv2d(a, wr, wi, modes1, modes2))(
        xs, params["conv0_wr"], params["conv0_wi"])
    y_ref = spectral_conv2d_ref(xs, params["conv0_wr"], params["conv0_wi"],
                                modes1, modes2)
    rel = jnp.max(jnp.abs(y_pl - y_ref)) / (jnp.max(jnp.abs(y_ref)) + 1e-12)
    assert float(rel) < 2e-2, f"spectral conv mismatch: rel={float(rel):.3e}"

    # --- full forward --------------------------------------------------------
    fwd = jax.jit(partial(simple_block2d_forward,
                          modes1=modes1, modes2=modes2, width=width))
    out = fwd(x, params)
    jax.block_until_ready(out)
    assert out.shape == (B, S, S, 1), out.shape

    out_ref = simple_block2d_forward_ref(x, params, modes1, modes2, width)
    rel = jnp.max(jnp.abs(out - out_ref)) / (jnp.max(jnp.abs(out_ref)) + 1e-12)
    assert float(rel) < 2e-2, f"forward mismatch: rel={float(rel):.3e}"

    print("KERNEL_OK")
</pallas_src>

<mosaic_0001>
module attributes {stable_mosaic.version = 11 : i64} {
  func.func @_spectral_mul_kernel(%arg0: memref<72x2x8xf32, #tpu.memory_space<vmem>>, %arg1: memref<72x2x8xf32, #tpu.memory_space<vmem>>, %arg2: memref<72x8x8xf32, #tpu.memory_space<vmem>>, %arg3: memref<72x8x8xf32, #tpu.memory_space<vmem>>, %arg4: memref<72x2x8xf32, #tpu.memory_space<vmem>>, %arg5: memref<72x2x8xf32, #tpu.memory_space<vmem>>) attributes {dimension_semantics = [], scalar_prefetch = 0 : i64, scratch_operands = 0 : i64, tpu.core_type = #tpu.core_type<tc>} {
    %c0 = arith.constant 0 : index
    %c0_0 = arith.constant 0 : index
    %c0_1 = arith.constant 0 : index
    %0 = vector.load %arg0[%c0, %c0_0, %c0_1] : memref<72x2x8xf32, #tpu.memory_space<vmem>>, vector<72x2x8xf32>
    %c0_2 = arith.constant 0 : index
    %c0_3 = arith.constant 0 : index
    %c0_4 = arith.constant 0 : index
    %1 = vector.load %arg1[%c0_2, %c0_3, %c0_4] : memref<72x2x8xf32, #tpu.memory_space<vmem>>, vector<72x2x8xf32>
    %c0_5 = arith.constant 0 : index
    %c0_6 = arith.constant 0 : index
    %c0_7 = arith.constant 0 : index
    %2 = vector.load %arg2[%c0_5, %c0_6, %c0_7] : memref<72x8x8xf32, #tpu.memory_space<vmem>>, vector<72x8x8xf32>
    %c0_8 = arith.constant 0 : index
    %c0_9 = arith.constant 0 : index
    %c0_10 = arith.constant 0 : index
    %3 = vector.load %arg3[%c0_8, %c0_9, %c0_10] : memref<72x8x8xf32, #tpu.memory_space<vmem>>, vector<72x8x8xf32>
    "tpu.trace_start"() <{level = 10 : i32, message = "mbi,mio->mbo"}> : () -> ()
    %cst = arith.constant dense<0.000000e+00> : vector<72x2x8xf32>
    %4 = tpu.matmul %0, %2, %cst {dimension_numbers = #tpu.dot_dimension_numbers<[2], [1], [1], [2], [0, 0, 0, 1, 1, 2], [0], [0]>} : vector<72x2x8xf32>, vector<72x8x8xf32>, vector<72x2x8xf32> -> vector<72x2x8xf32>
    %cst_11 = arith.constant dense<0.000000e+00> : vector<72x2x8xf32>
    %5 = tpu.matmul %1, %3, %cst_11 {dimension_numbers = #tpu.dot_dimension_numbers<[2], [1], [1], [2], [0, 0, 0, 1, 1, 2], [0], [0]>} : vector<72x2x8xf32>, vector<72x8x8xf32>, vector<72x2x8xf32> -> vector<72x2x8xf32>
    "tpu.trace_stop"() : () -> ()
    %6 = arith.addf %0, %1 : vector<72x2x8xf32>
    %7 = arith.addf %2, %3 : vector<72x8x8xf32>
    "tpu.trace_start"() <{level = 10 : i32, message = "mbi,mio->mbo"}> : () -> ()
    %cst_12 = arith.constant dense<0.000000e+00> : vector<72x2x8xf32>
    %8 = tpu.matmul %6, %7, %cst_12 {dimension_numbers = #tpu.dot_dimension_numbers<[2], [1], [1], [2], [0, 0, 0, 1, 1, 2], [0], [0]>} : vector<72x2x8xf32>, vector<72x8x8xf32>, vector<72x2x8xf32> -> vector<72x2x8xf32>
    "tpu.trace_stop"() : () -> ()
    %9 = arith.subf %4, %5 : vector<72x2x8xf32>
    %c0_13 = arith.constant 0 : index
    %c0_14 = arith.constant 0 : index
    %c0_15 = arith.constant 0 : index
    %10 = vector.load %arg4[%c0_13, %c0_14, %c0_15] : memref<72x2x8xf32, #tpu.memory_space<vmem>>, vector<72x2x8xf32>
    tpu.vector_store %arg4[%c0_13, %c0_14, %c0_15], %9 {strides = array<i32>} : memref<72x2x8xf32, #tpu.memory_space<vmem>>, vector<72x2x8xf32>,
    %11 = arith.subf %8, %4 : vector<72x2x8xf32>
    %12 = arith.subf %11, %5 : vector<72x2x8xf32>
    %c0_16 = arith.constant 0 : index
    %c0_17 = arith.constant 0 : index
    %c0_18 = arith.constant 0 : index
    %13 = vector.load %arg5[%c0_16, %c0_17, %c0_18] : memref<72x2x8xf32, #tpu.memory_space<vmem>>, vector<72x2x8xf32>
    tpu.vector_store %arg5[%c0_16, %c0_17, %c0_18], %12 {strides = array<i32>} : memref<72x2x8xf32, #tpu.memory_space<vmem>>, vector<72x2x8xf32>,
    return
  }
}

</mosaic_0001>

<bundles_post_ra>
// kernel: reverse.1
= control target key start
LH: loop header
LB: loop body
LE: loop exit
PB: predicated region body
PF: predicated region fallthrough
CT: control target
= control target key end

     0   :  { %v104_v3 = vlaneseq  ;;  %v97_v18 = vld [vmem:[#allocation0 + $0x7] ss:$-1 sm:$0xff]  ;;  %v111_v19 = vld [vmem:[#allocation0 + $0x17] ss:$-1 sm:$0xff]  ;;  %s606_s0 = inlined_call_operand.vmem [shape: f32[2,8,16,7], index: 0, kind: input, shape index: {}]   ;;  %s607_s1 = inlined_call_operand.vmem [shape: f32[2,8,16,7], index: 1, kind: output, shape index: {}]  }
   0x1   :  { %v61_v0 = vld [vmem:[%s606_s0] sm:$0xff]  ;;  %v63_v1 = vld [vmem:[%s606_s0 + $0x8] sm:$0xff]  ;;  %v65_v2 = vld [vmem:[%s606_s0 + $0x10] sm:$0xff]  ;;  %v98_v20 = vrot.slane %v97_v18, 1  ;;  %v112_v21 = vrot.slane %v111_v19, 1 }
   0x2   :  { %62 = vst [vmem:[#allocation0 + $0x8] sm:$0xff] %v61_v0  ;;  %64 = vst [vmem:[#allocation0 + $0x18] sm:$0xff] %v63_v1  ;;  %v67_v4 = vld [vmem:[%s606_s0 + $0x18] sm:$0xff]  ;;  %v69_v5 = vld [vmem:[%s606_s0 + $0x20] sm:$0xff]  ;;  %v502_v10 = vshrl.u32 %v104_v3, 7 }
   0x3   :  { %66 = vst [vmem:[#allocation0 + $0x28] sm:$0xff] %v65_v2  ;;  %v71_v6 = vld [vmem:[%s606_s0 + $0x28] sm:$0xff]  ;;  %68 = vst [vmem:[#allocation0 + $0x38] sm:$0xff] %v67_v4  ;;  %v73_v7 = vld [vmem:[%s606_s0 + $0x30] sm:$0xff] }
   0x4   :  { %70 = vst [vmem:[#allocation0 + $0x48] sm:$0xff] %v69_v5  ;;  %72 = vst [vmem:[#allocation0 + $0x58] sm:$0xff] %v71_v6  ;;  %v75_v8 = vld [vmem:[%s606_s0 + $0x38] sm:$0xff]  ;;  %v77_v9 = vld [vmem:[%s606_s0 + $0x40] sm:$0xff]  ;;  %vm106_vm0 = vcmp.lt.s32.totalorder %v502_v10, 7 }
   0x5   :  { %74 = vst [vmem:[#allocation0 + $0x68] sm:$0xff] %v73_v7  ;;  %76 = vst [vmem:[#allocation0 + $0x78] sm:$0xff] %v75_v8  ;;  %v79_v11 = vld [vmem:[%s606_s0 + $0x48] sm:$0xff]  ;;  %v81_v12 = vld [vmem:[%s606_s0 + $0x50] sm:$0xff] }
   0x6   :  { %78 = vst [vmem:[#allocation0 + $0x88] sm:$0xff] %v77_v9  ;;  %v83_v13 = vld [vmem:[%s606_s0 + $0x58] sm:$0xff]  ;;  %80 = vst [vmem:[#allocation0 + $0x98] sm:$0xff] %v79_v11  ;;  %v85_v14 = vld [vmem:[%s606_s0 + $0x60] sm:$0xff] }
   0x7   :  { %82 = vst [vmem:[#allocation0 + $0xa8] sm:$0xff] %v81_v12  ;;  %84 = vst [vmem:[#allocation0 + $0xb8] sm:$0xff] %v83_v13  ;;  %v87_v15 = vld [vmem:[%s606_s0 + $0x68] sm:$0xff]  ;;  %v89_v16 = vld [vmem:[%s606_s0 + $0x70] sm:$0xff] }
   0x8   :  { %86 = vst [vmem:[#allocation0 + $0xc8] sm:$0xff] %v85_v14  ;;  %88 = vst [vmem:[#allocation0 + $0xd8] sm:$0xff] %v87_v15  ;;  %v91_v17 = vld [vmem:[%s606_s0 + $0x78] sm:$0xff]  ;;  %v125_v22 = vld [vmem:[#allocation0 + $0x27] ss:$-1 sm:$0xff] }
   0x9   :  { %90 = vst [vmem:[#allocation0 + $0xe8] sm:$0xff] %v89_v16  ;;  %92 = vst [vmem:[#allocation0 + $0xf8] sm:$0xff] %v91_v17  ;;  %v139_v23 = vld [vmem:[#allocation0 + $0x37] ss:$-1 sm:$0xff]  ;;  %v126_v24 = vrot.slane %v125_v22, 1 }
   0xa   :  { %v140_v25 = vrot.slane %v139_v23, 1  ;;  %v153_v26 = vld [vmem:[#allocation0 + $0x47] ss:$-1 sm:$0xff]  ;;  %v167_v27 = vld [vmem:[#allocation0 + $0x57] ss:$-1 sm:$0xff]  ;;  %99 = vst [vmem:[#allocation1] sm:$0xff] %v98_v20 }
   0xb   :  { %v102_v28 = vld [vmem:[#allocation0 + $0xf] ss:$-1 sm:$0xff]  ;;  %113 = vst [vmem:[#allocation1 + $0x8] sm:$0xff] %v112_v21  ;;  %v116_v29 = vld [vmem:[#allocation0 + $0x1f] ss:$-1 sm:$0xff]  ;;  %127 = vst [vmem:[#allocation1 + $0x10] sm:$0xff] %v126_v24 }
   0xc   :  { %v130_v30 = vld [vmem:[#allocation0 + $0x2f] ss:$-1 sm:$0xff]  ;;  %v103_v31 = vrot.slane %v102_v28, 1  ;;  %v117_v32 = vrot.slane %v116_v29, 1  ;;  %141 = vst [vmem:[#allocation1 + $0x18] sm:$0xff] %v140_v25  ;;  %v154_v35 = vrot.slane %v153_v26, 1 }
   0xd   :  { %v131_v33 = vrot.slane %v130_v30, 1  ;;  %v144_v34 = vld [vmem:[#allocation0 + $0x3f] ss:$-1 sm:$0xff]  ;;  %v158_v37 = vld [vmem:[#allocation0 + $0x4f] ss:$-1 sm:$0xff]  ;;  %v168_v38 = vrot.slane %v167_v27, 1 }
   0xe   :  { %v145_v36 = vrot.slane %v144_v34, 1  ;;  %v172_v39 = vld [vmem:[#allocation0 + $0x5f] ss:$-1 sm:$0xff]  ;;  %107 = vst.msk [vmem:[#allocation1] sm:$0xff] %vm106_vm0, %v103_v31  ;;  %121 = vst.msk [vmem:[#allocation1 + $0x8] sm:$0xff] %vm106_vm0, %v117_v32  ;;  %v159_v40 = vrot.slane %v158_v37, 1 }
   0xf   :  { %135 = vst.msk [vmem:[#allocation1 + $0x10] sm:$0xff] %vm106_vm0, %v131_v33  ;;  %155 = vst [vmem:[#allocation1 + $0x20] sm:$0xff] %v154_v35  ;;  %v173_v41 = vrot.slane %v172_v39, 1  ;;  %v181_v42 = vld [vmem:[#allocation0 + $0x67] ss:$-1 sm:$0xff] }
  0x10   :  { %v186_v43 = vld [vmem:[#allocation0 + $0x6f] ss:$-1 sm:$0xff]  ;;  %149 = vst.msk [vmem:[#allocation1 + $0x18] sm:$0xff] %vm106_vm0, %v145_v36  ;;  %169 = vst [vmem:[#allocation1 + $0x28] sm:$0xff] %v168_v38  ;;  %v182_v44 = vrot.slane %v181_v42, 1 }
  0x11   :  { %v187_v45 = vrot.slane %v186_v43, 1  ;;  %v195_v46 = vld [vmem:[#allocation0 + $0x77] ss:$-1 sm:$0xff]  ;;  %v200_v47 = vld [vmem:[#allocation0 + $0x7f] ss:$-1 sm:$0xff]  ;;  %163 = vst.msk [vmem:[#allocation1 + $0x20] sm:$0xff] %vm106_vm0, %v159_v40 }
  0x12   :  { %177 = vst.msk [vmem:[#allocation1 + $0x28] sm:$0xff] %vm106_vm0, %v173_v41  ;;  %v196_v48 = vrot.slane %v195_v46, 1  ;;  %v201_v49 = vrot.slane %v200_v47, 1  ;;  %v209_v50 = vld [vmem:[#allocation0 + $0x87] ss:$-1 sm:$0xff]  ;;  %183 = vst [vmem:[#allocation1 + $0x30] sm:$0xff] %v182_v44 }
  0x13   :  { %v214_v51 = vld [vmem:[#allocation0 + $0x8f] ss:$-1 sm:$0xff]  ;;  %v210_v52 = vrot.slane %v209_v50, 1  ;;  %v223_v54 = vld [vmem:[#allocation0 + $0x97] ss:$-1 sm:$0xff]  ;;  %191 = vst.msk [vmem:[#allocation1 + $0x30] sm:$0xff] %vm106_vm0, %v187_v45 }
  0x14   :  { %v215_v53 = vrot.slane %v214_v51, 1  ;;  %v228_v55 = vld [vmem:[#allocation0 + $0x9f] ss:$-1 sm:$0xff]  ;;  %197 = vst [vmem:[#allocation1 + $0x38] sm:$0xff] %v196_v48  ;;  %v224_v56 = vrot.slane %v223_v54, 1 }
  0x15   :  { %v229_v57 = vrot.slane %v228_v55, 1  ;;  %v237_v58 = vld [vmem:[#allocation0 + $0xa7] ss:$-1 sm:$0xff]  ;;  %v242_v59 = vld [vmem:[#allocation0 + $0xaf] ss:$-1 sm:$0xff]  ;;  %205 = vst.msk [vmem:[#allocation1 + $0x38] sm:$0xff] %vm106_vm0, %v201_v49 }
  0x16   :  { %211 = vst [vmem:[#allocation1 + $0x40] sm:$0xff] %v210_v52  ;;  %v238_v60 = vrot.slane %v237_v58, 1  ;;  %v243_v61 = vrot.slane %v242_v59, 1  ;;  %v251_v62 = vld [vmem:[#allocation0 + $0xb7] ss:$-1 sm:$0xff]  ;;  %225 = vst [vmem:[#allocation1 + $0x48] sm:$0xff] %v224_v56 }
  0x17   :  { %v256_v63 = vld [vmem:[#allocation0 + $0xbf] ss:$-1 sm:$0xff]  ;;  %219 = vst.msk [vmem:[#allocation1 + $0x40] sm:$0xff] %vm106_vm0, %v215_v53  ;;  %v252_v0 = vrot.slane %v251_v62, 1  ;;  %v265_v2 = vld [vmem:[#allocation0 + $0xc7] ss:$-1 sm:$0xff] }
  0x18   :  { %v257_v1 = vrot.slane %v256_v63, 1  ;;  %v270_v3 = vld [vmem:[#allocation0 + $0xcf] ss:$-1 sm:$0xff]  ;;  %233 = vst.msk [vmem:[#allocation1 + $0x48] sm:$0xff] %vm106_vm0, %v229_v57  ;;  %239 = vst [vmem:[#allocation1 + $0x50] sm:$0xff] %v238_v60  ;;  %v266_v4 = vrot.slane %v265_v2, 1 }
  0x19   :  { %v271_v5 = vrot.slane %v270_v3, 1  ;;  %v279_v6 = vld [vmem:[#allocation0 + $0xd7] ss:$-1 sm:$0xff]  ;;  %v284_v7 = vld [vmem:[#allocation0 + $0xdf] ss:$-1 sm:$0xff]  ;;  %247 = vst.msk [vmem:[#allocation1 + $0x50] sm:$0xff] %vm106_vm0, %v243_v61 }
  0x1a   :  { %253 = vst [vmem:[#allocation1 + $0x58] sm:$0xff] %v252_v0  ;;  %v280_v8 = vrot.slane %v279_v6, 1  ;;  %v285_v9 = vrot.slane %v284_v7, 1  ;;  %v293_v11 = vld [vmem:[#allocation0 + $0xe7] ss:$-1 sm:$0xff]  ;;  %267 = vst [vmem:[#allocation1 + $0x60] sm:$0xff] %v266_v4 }
  0x1b   :  { %v298_v12 = vld [vmem:[#allocation0 + $0xef] ss:$-1 sm:$0xff]  ;;  %261 = vst.msk [vmem:[#allocation1 + $0x58] sm:$0xff] %vm106_vm0, %v257_v1  ;;  %v294_v13 = vrot.slane %v293_v11, 1  ;;  %v307_v15 = vld [vmem:[#allocation0 + $0xf7] ss:$-1 sm:$0xff] }
  0x1c   :  { %v299_v14 = vrot.slane %v298_v12, 1  ;;  %v312_v16 = vld [vmem:[#allocation0 + $0xff] ss:$-1 sm:$0xff]  ;;  %275 = vst.msk [vmem:[#allocation1 + $0x60] sm:$0xff] %vm106_vm0, %v271_v5  ;;  %281 = vst [vmem:[#allocation1 + $0x68] sm:$0xff] %v280_v8  ;;  %v308_v17 = vrot.slane %v307_v15, 1 }
  0x1d   :  { %v313_v18 = vrot.slane %v312_v16, 1  ;;  %v376_v19 = vld [vmem:[#allocation1] sm:$0xff]  ;;  %v378_v20 = vld [vmem:[#allocation1 + $0x8] sm:$0xff]  ;;  %v380_v21 = vld [vmem:[#allocation1 + $0x10] sm:$0xff]  ;;  %289 = vst.msk [vmem:[#allocation1 + $0x68] sm:$0xff] %vm106_vm0, %v285_v9 }
  0x1e   :  { %295 = vst [vmem:[#allocation1 + $0x70] sm:$0xff] %v294_v13  ;;  %377 = vst [vmem:[%s607_s1] sm:$0xff] %v376_v19  ;;  %v382_v22 = vld [vmem:[#allocation1 + $0x18] sm:$0xff]  ;;  %v384_v23 = vld [vmem:[#allocation1 + $0x20] sm:$0xff] }
  0x1f   :  { %379 = vst [vmem:[%s607_s1 + $0x8] sm:$0xff] %v378_v20  ;;  %381 = vst [vmem:[%s607_s1 + $0x10] sm:$0xff] %v380_v21  ;;  %v386_v24 = vld [vmem:[#allocation1 + $0x28] sm:$0xff]  ;;  %v388_v25 = vld [vmem:[#allocation1 + $0x30] sm:$0xff] }
  0x20   :  { %303 = vst.msk [vmem:[#allocation1 + $0x70] sm:$0xff] %vm106_vm0, %v299_v14  ;;  %309 = vst [vmem:[#allocation1 + $0x78] sm:$0xff] %v308_v17  ;;  %v390_v26 = vld [vmem:[#allocation1 + $0x38] sm:$0xff]  ;;  %v392_v10 = vld [vmem:[#allocation1 + $0x40] sm:$0xff] }
  0x21   :  { %383 = vst [vmem:[%s607_s1 + $0x18] sm:$0xff] %v382_v22  ;;  %385 = vst [vmem:[%s607_s1 + $0x20] sm:$0xff] %v384_v23  ;;  %v394_v27 = vld [vmem:[#allocation1 + $0x48] sm:$0xff]  ;;  %v396_v28 = vld [vmem:[#allocation1 + $0x50] sm:$0xff] }
  0x22   :  { %387 = vst [vmem:[%s607_s1 + $0x28] sm:$0xff] %v386_v24  ;;  %317 = vst.msk [vmem:[#allocation1 + $0x78] sm:$0xff] %vm106_vm0, %v313_v18  ;;  %v398_v29 = vld [vmem:[#allocation1 + $0x58] sm:$0xff] }
  0x23   :  { %389 = vst [vmem:[%s607_s1 + $0x30] sm:$0xff] %v388_v25  ;;  %391 = vst [vmem:[%s607_s1 + $0x38] sm:$0xff] %v390_v26  ;;  %v400_v30 = vld [vmem:[#allocation1 + $0x60] sm:$0xff] }
  0x24   :  { %393 = vst [vmem:[%s607_s1 + $0x40] sm:$0xff] %v392_v10  ;;  %395 = vst [vmem:[%s607_s1 + $0x48] sm:$0xff] %v394_v27  ;;  %v402_v31 = vld [vmem:[#allocation1 + $0x68] sm:$0xff] }
  0x25   :  { %397 = vst [vmem:[%s607_s1 + $0x50] sm:$0xff] %v396_v28  ;;  %399 = vst [vmem:[%s607_s1 + $0x58] sm:$0xff] %v398_v29 }
  0x26   :  { %401 = vst [vmem:[%s607_s1 + $0x60] sm:$0xff] %v400_v30  ;;  %403 = vst [vmem:[%s607_s1 + $0x68] sm:$0xff] %v402_v31 }
  0x27   :  { %v404_v32 = vld [vmem:[#allocation1 + $0x70] sm:$0xff] }
  0x28   :  { %405 = vst [vmem:[%s607_s1 + $0x70] sm:$0xff] %v404_v32 }
  0x29   :  { %v406_v33 = vld [vmem:[#allocation1 + $0x78] sm:$0xff] }
  0x2a   :  { %407 = vst [vmem:[%s607_s1 + $0x78] sm:$0xff] %v406_v33 }

// kernel: _lambda_.1
= control target key start
LH: loop header
LB: loop body
LE: loop exit
PB: predicated region body
PF: predicated region fallthrough
CT: control target
= control target key end

     0   :  { %v22389_v0 = vmov 0.0   ;;  %vm307_vm0 = vcmask 64512   ;;  %vm18608_vm1 = vmmov 0   ;;  %vm16292_vm2 = vcmask 58368   ;;  %s22383_s2 = inlined_call_operand.vmem [shape: f32[72,8,8], index: 2, kind: input, shape index: {}]   ;;  %s22384_s0 = inlined_call_operand.vmem [shape: f32[72,2,8], index: 0, kind: input, shape index: {}]   ;;  %s22385_s3 = inlined_call_operand.vmem [shape: f32[72,8,8], index: 3, kind: input, shape index: {}]   ;;  %s22386_s1 = inlined_call_operand.vmem [shape: f32[72,2,8], index: 1, kind: input, shape index: {}]   ;;  %s22387_s4 = inlined_call_operand.vmem [shape: f32[72,2,8], index: 4, kind: output, shape index: {0}]   ;;  %s22388_s5 = inlined_call_operand.vmem [shape: f32[72,2,8], index: 5, kind: output, shape index: {1}]  }
   0x1   :  { %17237 = vmatprep.subr.mxu0 %v22389_v0  ;;  %17242 = vmatprep.subr.mxu1 %v22389_v0  ;;  %v163_v1 = vld [vmem:[%s22383_s2] sm:$0xff]  ;;  %v164_v2 = vld [vmem:[%s22383_s2 + $0x8] sm:$0xff]  ;;  %v165_v5 = vld [vmem:[%s22383_s2 + $0x10] sm:$0xff] }
   0x2   :  { %17238 = vmatpush3.msra.mxu0 %v163_v1  ;;  %17239 = vmatprep.mubr.msk.f32.mxu0 %vm18608_vm1, %v22389_v0  ;;  %v19_v3 = vld [vmem:[%s22384_s0] sm:$0x3]  ;;  %v20_v4 = vld [vmem:[%s22384_s0 + $0x2] sm:$0x3]  ;;  %v166_v6 = vld [vmem:[%s22383_s2 + $0x18] sm:$0xff] }
   0x3   :  { %17243 = vmatpush3.msra.mxu1 %v164_v2  ;;  %17244 = vmatprep.mubr.msk.f32.mxu1 %vm18608_vm1, %v22389_v0  ;;  %v21_v7 = vld [vmem:[%s22384_s0 + $0x4] sm:$0x3]  ;;  %v22_v8 = vld [vmem:[%s22384_s0 + $0x6] sm:$0x3]  ;;  %v168_v10 = vld [vmem:[%s22383_s2 + $0x28] sm:$0xff] }
   0x4   :  { %17240 = vmatmul.mubr.msk.f32.vlgmr.msra.gmra.mxu0 %vm307_vm0, %v19_v3  ;;  %17245 = vmatmul.mubr.msk.f32.vlgmr.msra.gmra.mxu1 %vm307_vm0, %v20_v4  ;;  %v167_v9 = vld [vmem:[%s22383_s2 + $0x20] sm:$0xff]  ;;  %v23_v11 = vld [vmem:[%s22384_s0 + $0x8] sm:$0x3]  ;;  %v24_v12 = vld [vmem:[%s22384_s0 + $0xa] sm:$0x3] }
   0x5   :  { %17247 = vmatprep.subr.mxu0 %v22389_v0  ;;  %17252 = vmatprep.subr.mxu1 %v22389_v0  ;;  %v169_v13 = vld [vmem:[%s22383_s2 + $0x30] sm:$0xff]  ;;  %v170_v14 = vld [vmem:[%s22383_s2 + $0x38] sm:$0xff]  ;;  %v25_v15 = vld [vmem:[%s22384_s0 + $0xc] sm:$0x3] }
   0x6   :  { %17248 = vmatpush3.msra.mxu0 %v165_v5  ;;  %17253 = vmatpush3.msra.mxu1 %v166_v6  ;;  %v26_v16 = vld [vmem:[%s22384_s0 + $0xe] sm:$0x3]  ;;  %v171_v17 = vld [vmem:[%s22383_s2 + $0x40] sm:$0xff]  ;;  %v27_v19 = vld [vmem:[%s22384_s0 + $0x10] sm:$0x3] }
   0x7   :  { %17249 = vmatprep.mubr.msk.f32.mxu0 %vm18608_vm1, %v22389_v0  ;;  %17254 = vmatprep.mubr.msk.f32.mxu1 %vm18608_vm1, %v22389_v0  ;;  %v172_v18 = vld [vmem:[%s22383_s2 + $0x48] sm:$0xff]  ;;  %v28_v20 = vld [vmem:[%s22384_s0 + $0x12] sm:$0x3]  ;;  %v174_v22 = vld [vmem:[%s22383_s2 + $0x58] sm:$0xff] }
   0x8   :  { %17250 = vmatmul.mubr.msk.f32.vlgmr.msra.gmra.mxu0 %vm307_vm0, %v21_v7  ;;  %17255 = vmatmul.mubr.msk.f32.vlgmr.msra.gmra.mxu1 %vm307_vm0, %v22_v8  ;;  %v173_v21 = vld [vmem:[%s22383_s2 + $0x50] sm:$0xff]  ;;  %v175_v25 = vld [vmem:[%s22383_s2 + $0x60] sm:$0xff]  ;;  %v176_v26 = vld [vmem:[%s22383_s2 + $0x68] sm:$0xff] }
   0x9   :  { %17257 = vmatprep.subr.mxu0 %v22389_v0  ;;  %17262 = vmatprep.subr.mxu1 %v22389_v0  ;;  %v29_v23 = vld [vmem:[%s22384_s0 + $0x14] sm:$0x3]  ;;  %v30_v24 = vld [vmem:[%s22384_s0 + $0x16] sm:$0x3]  ;;  %v31_v27 = vld [vmem:[%s22384_s0 + $0x18] sm:$0x3] }
   0xa   :  { %17258 = vmatpush3.msra.mxu0 %v167_v9  ;;  %17263 = vmatpush3.msra.mxu1 %v168_v10  ;;  %v32_v28 = vld [vmem:[%s22384_s0 + $0x1a] sm:$0x3]  ;;  %v177_v29 = vld [vmem:[%s22383_s2 + $0x70] sm:$0xff]  ;;  %v33_v31 = vld [vmem:[%s22384_s0 + $0x1c] sm:$0x3] }
   0xb   :  { %17259 = vmatprep.mubr.msk.f32.mxu0 %vm18608_vm1, %v22389_v0  ;;  %17264 = vmatprep.mubr.msk.f32.mxu1 %vm18608_vm1, %v22389_v0  ;;  %v178_v30 = vld [vmem:[%s22383_s2 + $0x78] sm:$0xff]  ;;  %v179_v33 = vld [vmem:[%s22383_s2 + $0x80] sm:$0xff]  ;;  %v180_v34 = vld [vmem:[%s22383_s2 + $0x88] sm:$0xff] }
   0xc   :  { %17260 = vmatmul.mubr.msk.f32.vlgmr.msra.gmra.mxu0 %vm307_vm0, %v23_v11  ;;  %17265 = vmatmul.mubr.msk.f32.vlgmr.msra.gmra.mxu1 %vm307_vm0, %v24_v12  ;;  %v34_v32 = vld [vmem:[%s22384_s0 + $0x1e] sm:$0x3]  ;;  %v35_v35 = vld [vmem:[%s22384_s0 + $0x20] sm:$0x3]  ;;  %v36_v36 = vld [vmem:[%s22384_s0 + $0x22] sm:$0x3] }
   0xd   :  { %17267 = vmatprep.subr.mxu0 %v22389_v0  ;;  %17272 = vmatprep.subr.mxu1 %v22389_v0  ;;  %v181_v37 = vld [vmem:[%s22383_s2 + $0x90] sm:$0xff]  ;;  %v182_v38 = vld [vmem:[%s22383_s2 + $0x98] sm:$0xff]  ;;  %v37_v39 = vld [vmem:[%s22384_s0 + $0x24] sm:$0x3] }
   0xe   :  { %17268 = vmatpush3.msra.mxu0 %v169_v13  ;;  %17273 = vmatpush3.msra.mxu1 %v170_v14  ;;  %v38_v40 = vld [vmem:[%s22384_s0 + $0x26] sm:$0x3]  ;;  %v184_v42 = vld [vmem:[%s22383_s2 + $0xa8] sm:$0xff]  ;;  %v185_v45 = vld [vmem:[%s22383_s2 + $0xb0] sm:$0xff] }
   0xf   :  { %17269 = vmatprep.mubr.msk.f32.mxu0 %vm18608_vm1, %v22389_v0  ;;  %17274 = vmatprep.mubr.msk.f32.mxu1 %vm18608_vm1, %v22389_v0  ;;  %v183_v41 = vld [vmem:[%s22383_s2 + $0xa0] sm:$0xff]  ;;  %v39_v43 = vld [vmem:[%s22384_s0 + $0x28] sm:$0x3]  ;;  %v40_v44 = vld [vmem:[%s22384_s0 + $0x2a] sm:$0x3] }
  0x10   :  { %17270 = vmatmul.mubr.msk.f32.vlgmr.msra.gmra.mxu0 %vm307_vm0, %v25_v15  ;;  %17275 = vmatmul.mubr.msk.f32.vlgmr.msra.gmra.mxu1 %vm307_vm0, %v26_v16  ;;  %v186_v46 = vld [vmem:[%s22383_s2 + $0xb8] sm:$0xff]  ;;  %v41_v47 = vld [vmem:[%s22384_s0 + $0x2c] sm:$0x3]  ;;  %v42_v48 = vld [vmem:[%s22384_s0 + $0x2e] sm:$0x3] }
  0x11   :  { %17277 = vmatprep.subr.mxu0 %v22389_v0  ;;  %17282 = vmatprep.subr.mxu1 %v22389_v0  ;;  %v187_v49 = vld [vmem:[%s22383_s2 + $0xc0] sm:$0xff]  ;;  %v188_v50 = vld [vmem:[%s22383_s2 + $0xc8] sm:$0xff]  ;;  %v43_v51 = vld [vmem:[%s22384_s0 + $0x30] sm:$0x3] }
  0x12   :  { %17278 = vmatpush3.msra.mxu0 %v171_v17  ;;  %17283 = vmatpush3.msra.mxu1 %v172_v18  ;;  %v44_v52 = vld [vmem:[%s22384_s0 + $0x32] sm:$0x3]  ;;  %v190_v54 = vld [vmem:[%s22383_s2 + $0xd8] sm:$0xff]  ;;  %v45_v55 = vld [vmem:[%s22384_s0 + $0x34] sm:$0x3] }
  0x13   :  { %17279 = vmatprep.mubr.msk.f32.mxu0 %vm18608_vm1, %v22389_v0  ;;  %17284 = vmatprep.mubr.msk.f32.mxu1 %vm18608_vm1, %v22389_v0  ;;  %v189_v53 = vld [vmem:[%s22383_s2 + $0xd0] sm:$0xff]  ;;  %v191_v57 = vld [vmem:[%s22383_s2 + $0xe0] sm:$0xff]  ;;  %v192_v58 = vld [vmem:[%s22383_s2 + $0xe8] sm:$0xff] }
  0x14   :  { %17280 = vmatmul.mubr.msk.f32.vlgmr.msra.gmra.mxu0 %vm307_vm0, %v27_v19  ;;  %17285 = vmatmul.mubr.msk.f32.vlgmr.msra.gmra.mxu1 %vm307_vm0, %v28_v20  ;;  %v46_v56 = vld [vmem:[%s22384_s0 + $0x36] sm:$0x3]  ;;  %v47_v59 = vld [vmem:[%s22384_s0 + $0x38] sm:$0x3]  ;;  %v48_v60 = vld [vmem:[%s22384_s0 + $0x3a] sm:$0x3] }
  0x15   :  { %17287 = vmatprep.subr.mxu0 %v22389_v0  ;;  %17292 = vmatprep.subr.mxu1 %v22389_v0  ;;  %v193_v61 = vld [vmem:[%s22383_s2 + $0xf0] sm:$0xff]  ;;  %v194_v62 = vld [vmem:[%s22383_s2 + $0xf8] sm:$0xff]  ;;  %v195_v2 = vld [vmem:[%s22383_s2 + $0x100] sm:$0xff] }
  0x16   :  { %17288 = vmatpush3.msra.mxu0 %v173_v21  ;;  %17293 = vmatpush3.msra.mxu1 %v174_v22  ;;  %v49_v63 = vld [vmem:[%s22384_s0 + $0x3c] sm:$0x3]  ;;  %v50_v1 = vld [vmem:[%s22384_s0 + $0x3e] sm:$0x3]  ;;  %v196_v3 = vld [vmem:[%s22383_s2 + $0x108] sm:$0xff] }
  0x17   :  { %17289 = vmatprep.mubr.msk.f32.mxu0 %vm18608_vm1, %v22389_v0  ;;  %17294 = vmatprep.mubr.msk.f32.mxu1 %vm18608_vm1, %v22389_v0  ;;  %v51_v4 = vld [vmem:[%s22384_s0 + $0x40] sm:$0x3]  ;;  %v52_v5 = vld [vmem:[%s22384_s0 + $0x42] sm:$0x3]  ;;  %v197_v6 = vld [vmem:[%s22383_s2 + $0x110] sm:$0xff] }
  0x18   :  { %17290 = vmatmul.mubr.msk.f32.vlgmr.msra.gmra.mxu0 %vm307_vm0, %v29_v23  ;;  %17295 = vmatmul.mubr.msk.f32.vlgmr.msra.gmra.mxu1 %vm307_vm0, %v30_v24  ;;  %v198_v7 = vld [vmem:[%s22383_s2 + $0x118] sm:$0xff]  ;;  %v53_v8 = vld [vmem:[%s22384_s0 + $0x44] sm:$0x3]  ;;  %v54_v9 = vld [vmem:[%s22384_s0 + $0x46] sm:$0x3] }
  0x19   :  { %17297 = vmatprep.subr.mxu0 %v22389_v0  ;;  %17302 = vmatprep.subr.mxu1 %v22389_v0  ;;  %v199_v10 = vld [vmem:[%s22383_s2 + $0x120] sm:$0xff]  ;;  %v200_v11 = vld [vmem:[%s22383_s2 + $0x128] sm:$0xff]  ;;  %v201_v14 = vld [vmem:[%s22383_s2 + $0x130] sm:$0xff] }
  0x1a   :  { %17298 = vmatpush3.msra.mxu0 %v175_v25  ;;  %17303 = vmatpush3.msra.mxu1 %v176_v26  ;;  %v55_v12 = vld [vmem:[%s22384_s0 + $0x48] sm:$0x3]  ;;  %v56_v13 = vld [vmem:[%s22384_s0 + $0x4a] sm:$0x3]  ;;  %v202_v15 = vld [vmem:[%s22383_s2 + $0x138] sm:$0xff] }
  0x1b   :  { %17299 = vmatprep.mubr.msk.f32.mxu0 %vm18608_vm1, %v22389_v0  ;;  %17304 = vmatprep.mubr.msk.f32.mxu1 %vm18608_vm1, %v22389_v0  ;;  %v57_v16 = vld [vmem:[%s22384_s0 + $0x4c] sm:$0x3]  ;;  %v58_v17 = vld [vmem:[%s22384_s0 + $0x4e] sm:$0x3]  ;;  %v203_v18 = vld [vmem:[%s22383_s2 + $0x140] sm:$0xff] }
  0x1c   :  { %17300 = vmatmul.mubr.msk.f32.vlgmr.msra.gmra.mxu0 %vm307_vm0, %v31_v27  ;;  %17305 = vmatmul.mubr.msk.f32.vlgmr.msra.gmra.mxu1 %vm307_vm0, %v32_v28  ;;  %v204_v19 = vld [vmem:[%s22383_s2 + $0x148] sm:$0xff]  ;;  %v59_v20 = vld [vmem:[%s22384_s0 + $0x50] sm:$0x3]  ;;  %v60_v21 = vld [vmem:[%s22384_s0 + $0x52] sm:$0x3] }
  0x1d   :  { %17307 = vmatprep.subr.mxu0 %v22389_v0  ;;  %17312 = vmatprep.subr.mxu1 %v22389_v0  ;;  %v205_v22 = vld [vmem:[%s22383_s2 + $0x150] sm:$0xff]  ;;  %v206_v23 = vld [vmem:[%s22383_s2 + $0x158] sm:$0xff]  ;;  %v207_v26 = vld [vmem:[%s22383_s2 + $0x160] sm:$0xff] }
  0x1e   :  { %17308 = vmatpush3.msra.mxu0 %v177_v29  ;;  %17313 = vmatpush3.msra.mxu1 %v178_v30  ;;  %v61_v24 = vld [vmem:[%s22384_s0 + $0x54] sm:$0x3]  ;;  %v62_v25 = vld [vmem:[%s22384_s0 + $0x56] sm:$0x3]  ;;  %v208_v27 = vld [vmem:[%s22383_s2 + $0x168] sm:$0xff] }
  0x1f   :  { %17309 = vmatprep.mubr.msk.f32.mxu0 %vm18608_vm1, %v22389_v0  ;;  %17314 = vmatprep.mubr.msk.f32.mxu1 %vm18608_vm1, %v22389_v0  ;;  %v63_v28 = vld [vmem:[%s22384_s0 + $0x58] sm:$0x3]  ;;  %v64_v29 = vld [vmem:[%s22384_s0 + $0x5a] sm:$0x3]  ;;  %v209_v30 = vld [vmem:[%s22383_s2 + $0x170] sm:$0xff] }
  0x20   :  { %17310 = vmatmul.mubr.msk.f32.vlgmr.msra.gmra.mxu0 %vm307_vm0, %v33_v31  ;;  %17315 = vmatmul.mubr.msk.f32.vlgmr.msra.gmra.mxu1 %vm307_vm0, %v34_v32  ;;  %v210_v31 = vld [vmem:[%s22383_s2 + $0x178] sm:$0xff] }
  0x21   :  { %17317 = vmatprep.subr.mxu0 %v22389_v0  ;;  %17322 = vmatprep.subr.mxu1 %v22389_v0  ;;  %v65_v32 = vld [vmem:[%s22384_s0 + $0x5c] sm:$0x3] }
  0x22   :  { %17318 = vmatpush3.msra.mxu0 %v179_v33  ;;  %17323 = vmatpush3.msra.mxu1 %v180_v34  ;;  %v66_v33 = vld [vmem:[%s22384_s0 + $0x5e] sm:$0x3]  ;;  %v211_v34 = vld [vmem:[%s22383_s2 + $0x180] sm:$0xff] }
  0x23   :  { %17319 = vmatprep.mubr.msk.f32.mxu0 %vm18608_vm1, %v22389_v0  ;;  %17324 = vmatprep.mubr.msk.f32.mxu1 %vm18608_vm1, %v22389_v0 }
  0x24   :  { %17320 = vmatmul.mubr.msk.f32.vlgmr.msra.gmra.mxu0 %vm307_vm0, %v35_v35  ;;  %17325 = vmatmul.mubr.msk.f32.vlgmr.msra.gmra.mxu1 %vm307_vm0, %v36_v36  ;;  %v212_v35 = vld [vmem:[%s22383_s2 + $0x188] sm:$0xff]  ;;  %v67_v36 = vld [vmem:[%s22384_s0 + $0x60] sm:$0x3] }
  0x25   :  { %17327 = vmatprep.subr.mxu0 %v22389_v0  ;;  %17332 = vmatprep.subr.mxu1 %v22389_v0 }
  0x26   :  { %17328 = vmatpush3.msra.mxu0 %v181_v37  ;;  %17333 = vmatpush3.msra.mxu1 %v182_v38  ;;  %v68_v37 = vld [vmem:[%s22384_s0 + $0x62] sm:$0x3]  ;;  %v213_v38 = vld [vmem:[%s22383_s2 + $0x190] sm:$0xff] }
  0x27   :  { %17329 = vmatprep.mubr.msk.f32.mxu0 %vm18608_vm1, %v22389_v0  ;;  %17334 = vmatprep.mubr.msk.f32.mxu1 %vm18608_vm1, %v22389_v0 }
  0x28   :  { %17330 = vmatmul.mubr.msk.f32.vlgmr.msra.gmra.mxu0 %vm307_vm0, %v37_v39  ;;  %17335 = vmatmul.mubr.msk.f32.vlgmr.msra.gmra.mxu1 %vm307_vm0, %v38_v40  ;;  %v214_v39 = vld [vmem:[%s22383_s2 + $0x198] sm:$0xff]  ;;  %v69_v40 = vld [vmem:[%s22384_s0 + $0x64] sm:$0x3] }
  0x29   :  { %17337 = vmatprep.subr.mxu0 %v22389_v0  ;;  %17342 = vmatprep.subr.mxu1 %v22389_v0 }
  0x2a   :  { %17338 = vmatpush3.msra.mxu0 %v183_v41  ;;  %17343 = vmatpush3.msra.mxu1 %v184_v42  ;;  %v70_v41 = vld [vmem:[%s22384_s0 + $0x66] sm:$0x3] }
  0x2b   :  { %17339 = vmatprep.mubr.msk.f32.mxu0 %vm18608_vm1, %v22389_v0  ;;  %17344 = vmatprep.mubr.msk.f32.mxu1 %vm18608_vm1, %v22389_v0  ;;  %v215_v42 = vld [vmem:[%s22383_s2 + $0x1a0] sm:$0xff] }
  0x2c   :  { %17340 = vmatmul.mubr.msk.f32.vlgmr.msra.gmra.mxu0 %vm307_vm0, %v39_v43  ;;  %17345 = vmatmul.mubr.msk.f32.vlgmr.msra.gmra.mxu1 %vm307_vm0, %v40_v44  ;;  %v216_v43 = vld [vmem:[%s22383_s2 + $0x1a8] sm:$0xff] }
  0x2d   :  { %17347 = vmatprep.subr.mxu0 %v22389_v0  ;;  %17352 = vmatprep.subr.mxu1 %v22389_v0  ;;  %v71_v44 = vld [vmem:[%s22384_s0 + $0x68] sm:$0x3] }
  0x2e   :  { %17348 = vmatpush3.msra.mxu0 %v185_v45  ;;  %17353 = vmatpush3.msra.mxu1 %v186_v46  ;;  %v72_v45 = vld [vmem:[%s22384_s0 + $0x6a] sm:$0x3]  ;;  %v217_v46 = vld [vmem:[%s22383_s2 + $0x1b0] sm:$0xff] }
  0x2f   :  { %17349 = vmatprep.mubr.msk.f32.mxu0 %vm18608_vm1, %v22389_v0  ;;  %17354 = vmatprep.mubr.msk.f32.mxu1 %vm18608_vm1, %v22389_v0 }
  0x30   :  { %17350 = vmatmul.mubr.msk.f32.vlgmr.msra.gmra.mxu0 %vm307_vm0, %v41_v47  ;;  %17355 = vmatmul.mubr.msk.f32.vlgmr.msra.gmra.mxu1 %vm307_vm0, %v42_v48  ;;  %v218_v47 = vld [vmem:[%s22383_s2 + $0x1b8] sm:$0xff]  ;;  %v73_v48 = vld [vmem:[%s22384_s0 + $0x6c] sm:$0x3] }
  0x31   :  { %17357 = vmatprep.subr.mxu0 %v22389_v0  ;;  %17362 = vmatprep.subr.mxu1 %v22389_v0 }
  0x32   :  { %17358 = vmatpush3.msra.mxu0 %v187_v49  ;;  %17363 = vmatpush3.msra.mxu1 %v188_v50  ;;  %v74_v49 = vld [vmem:[%s22384_s0 + $0x6e] sm:$0x3]  ;;  %v219_v50 = vld [vmem:[%s22383_s2 + $0x1c0] sm:$0xff] }
  0x33   :  { %17359 = vmatprep.mubr.msk.f32.mxu0 %vm18608_vm1, %v22389_v0  ;;  %17364 = vmatprep.mubr.msk.f32.mxu1 %vm18608_vm1, %v22389_v0 }
  0x34   :  { %17360 = vmatmul.mubr.msk.f32.vlgmr.msra.gmra.mxu0 %vm307_vm0, %v43_v51  ;;  %17365 = vmatmul.mubr.msk.f32.vlgmr.msra.gmra.mxu1 %vm307_vm0, %v44_v52  ;;  %v220_v51 = vld [vmem:[%s22383_s2 + $0x1c8] sm:$0xff]  ;;  %v75_v52 = vld [vmem:[%s22384_s0 + $0x70] sm:$0x3] }
  0x35   :  { %17367 = vmatprep.subr.mxu0 %v22389_v0  ;;  %17372 = vmatprep.subr.mxu1 %v22389_v0 }
  0x36   :  { %17368 = vmatpush3.msra.mxu0 %v189_v53  ;;  %17373 = vmatpush3.msra.mxu1 %v190_v54  ;;  %v76_v53 = vld [vmem:[%s22384_s0 + $0x72] sm:$0x3] }
  0x37   :  { %17369 = vmatprep.mubr.msk.f32.mxu0 %vm18608_vm1, %v22389_v0  ;;  %17374 = vmatprep.mubr.msk.f32.mxu1 %vm18608_vm1, %v22389_v0  ;;  %v221_v54 = vld [vmem:[%s22383_s2 + $0x1d0] sm:$0xff] }
  0x38   :  { %17370 = vmatmul.mubr.msk.f32.vlgmr.msra.gmra.mxu0 %vm307_vm0, %v45_v55  ;;  %17375 = vmatmul.mubr.msk.f32.vlgmr.msra.gmra.mxu1 %vm307_vm0, %v46_v56  ;;  %v222_v55 = vld [vmem:[%s22383_s2 + $0x1d8] sm:$0xff]  ;;  %v77_v56 = vld [vmem:[%s22384_s0 + $0x74] sm:$0x3] }
  0x39   :  { %17377 = vmatprep.subr.mxu0 %v22389_v0  ;;  %17382 = vmatprep.subr.mxu1 %v22389_v0 }
  0x3a   :  { %17378 = vmatpush3.msra.mxu0 %v191_v57  ;;  %17383 = vmatpush3.msra.mxu1 %v192_v58  ;;  %v78_v57 = vld [vmem:[%s22384_s0 + $0x76] sm:$0x3]  ;;  %v223_v58 = vld [vmem:[%s22383_s2 + $0x1e0] sm:$0xff] }
  0x3b   :  { %17379 = vmatprep.mubr.msk.f32.mxu0 %vm18608_vm1, %v22389_v0  ;;  %17384 = vmatprep.mubr.msk.f32.mxu1 %vm18608_vm1, %v22389_v0 }
  0x3c   :  { %17380 = vmatmul.mubr.msk.f32.vlgmr.msra.gmra.mxu0 %vm307_vm0, %v47_v59  ;;  %17385 = vmatmul.mubr.msk.f32.vlgmr.msra.gmra.mxu1 %vm307_vm0, %v48_v60  ;;  %v224_v59 = vld [vmem:[%s22383_s2 + $0x1e8] sm:$0xff]  ;;  %v79_v60 = vld [vmem:[%s22384_s0 + $0x78] sm:$0x3] }
  0x3d   :  { %17387 = vmatprep.subr.mxu0 %v22389_v0  ;;  %17392 = vmatprep.subr.mxu1 %v22389_v0 }
  0x3e   :  { %17388 = vmatpush3.msra.mxu0 %v193_v61  ;;  %17393 = vmatpush3.msra.mxu1 %v194_v62  ;;  %v80_v61 = vld [vmem:[%s22384_s0 + $0x7a] sm:$0x3]  ;;  %v225_v62 = vld [vmem:[%s22383_s2 + $0x1f0] sm:$0xff] }
  0x3f   :  { %17389 = vmatprep.mubr.msk.f32.mxu0 %vm18608_vm1, %v22389_v0  ;;  %17394 = vmatprep.mubr.msk.f32.mxu1 %vm18608_vm1, %v22389_v0 }
  0x40   :  { %17390 = vmatmul.mubr.msk.f32.vlgmr.msra.gmra.mxu0 %vm307_vm0, %v49_v63  ;;  %17395 = vmatmul.mubr.msk.f32.vlgmr.msra.gmra.mxu1 %vm307_vm0, %v50_v1  ;;  %v226_v63 = vld [vmem:[%s22383_s2 + $0x1f8] sm:$0xff] }
  0x41   :  { %17397 = vmatprep.subr.mxu0 %v22389_v0  ;;  %17402 = vmatprep.subr.mxu1 %v22389_v0  ;;  %v81_v1 = vld [vmem:[%s22384_s0 + $0x7c] sm:$0x3] }
  0x42   :  { %17398 = vmatpush3.msra.mxu0 %v195_v2  ;;  %17403 = vmatpush3.msra.mxu1 %v196_v3  ;;  %v82_v2 = vld [vmem:[%s22384_s0 + $0x7e] sm:$0x3]  ;;  %v227_v3 = vld [vmem:[%s22383_s2 + $0x200] sm:$0xff] }
  0x43   :  { %17399 = vmatprep.mubr.msk.f32.mxu0 %vm18608_vm1, %v22389_v0  ;;  %17404 = vmatprep.mubr.msk.f32.mxu1 %vm18608_vm1, %v22389_v0 }
  0x44   :  { %17400 = vmatmul.mubr.msk.f32.vlgmr.msra.gmra.mxu0 %vm307_vm0, %v51_v4  ;;  %17405 = vmatmul.mubr.msk.f32.vlgmr.msra.gmra.mxu1 %vm307_vm0, %v52_v5  ;;  %v228_v4 = vld [vmem:[%s22383_s2 + $0x208] sm:$0xff]  ;;  %v83_v5 = vld [vmem:[%s22384_s0 + $0x80] sm:$0x3] }
  0x45   :  { %17407 = vmatprep.subr.mxu0 %v22389_v0  ;;  %17412 = vmatprep.subr.mxu1 %v22389_v0 }
  0x46   :  { %17408 = vmatpush3.msra.mxu0 %v197_v6  ;;  %17413 = vmatpush3.msra.mxu1 %v198_v7  ;;  %v84_v6 = vld [vmem:[%s22384_s0 + $0x82] sm:$0x3]  ;;  %v229_v7 = vld [vmem:[%s22383_s2 + $0x210] sm:$0xff] }
  0x47   :  { %17409 = vmatprep.mubr.msk.f32.mxu0 %vm18608_vm1, %v22389_v0  ;;  %17414 = vmatprep.mubr.msk.f32.mxu1 %vm18608_vm1, %v22389_v0 }
  0x48   :  { %17410 = vmatmul.mubr.msk.f32.vlgmr.msra.gmra.mxu0 %vm307_vm0, %v53_v8  ;;  %17415 = vmatmul.mubr.msk.f32.vlgmr.msra.gmra.mxu1 %vm307_vm0, %v54_v9  ;;  %v230_v8 = vld [vmem:[%s22383_s2 + $0x218] sm:$0xff]  ;;  %v85_v9 = vld [vmem:[%s22384_s0 + $0x84] sm:$0x3] }
  0x49   :  { %17417 = vmatprep.subr.mxu0 %v22389_v0  ;;  %17422 = vmatprep.subr.mxu1 %v22389_v0 }
  0x4a   :  { %17418 = vmatpush3.msra.mxu0 %v199_v10  ;;  %17423 = vmatpush3.msra.mxu1 %v200_v11  ;;  %v86_v10 = vld [vmem:[%s22384_s0 + $0x86] sm:$0x3] }
  0x4b   :  { %17419 = vmatprep.mubr.msk.f32.mxu0 %vm18608_vm1, %v22389_v0  ;;  %17424 = vmatprep.mubr.msk.f32.mxu1 %vm18608_vm1, %v22389_v0  ;;  %v231_v11 = vld [vmem:[%s22383_s2 + $0x220] sm:$0xff] }
  0x4c   :  { %17420 = vmatmul.mubr.msk.f32.vlgmr.msra.gmra.mxu0 %vm307_vm0, %v55_v12  ;;  %17425 = vmatmul.mubr.msk.f32.vlgmr.msra.gmra.mxu1 %vm307_vm0, %v56_v13  ;;  %v232_v12 = vld [vmem:[%s22383_s2 + $0x228] sm:$0xff] }
  0x4d   :  { %17427 = vmatprep.subr.mxu0 %v22389_v0  ;;  %17432 = vmatprep.subr.mxu1 %v22389_v0  ;;  %v87_v13 = vld [vmem:[%s22384_s0 + $0x88] sm:$0x3] }
  0x4e   :  { %17428 = vmatpush3.msra.mxu0 %v201_v14  ;;  %17433 = vmatpush3.msra.mxu1 %v202_v15  ;;  %v88_v14 = vld [vmem:[%s22384_s0 + $0x8a] sm:$0x3]  ;;  %v233_v15 = vld [vmem:[%s22383_s2 + $0x230] sm:$0xff] }
  0x4f   :  { %17429 = vmatprep.mubr.msk.f32.mxu0 %vm18608_vm1, %v22389_v0  ;;  %17434 = vmatprep.mubr.msk.f32.mxu1 %vm18608_vm1, %v22389_v0 }
  0x50   :  { %17430 = vmatmul.mubr.msk.f32.vlgmr.msra.gmra.mxu0 %vm307_vm0, %v57_v16  ;;  %17435 = vmatmul.mubr.msk.f32.vlgmr.msra.gmra.mxu1 %vm307_vm0, %v58_v17  ;;  %v234_v16 = vld [vmem:[%s22383_s2 + $0x238] sm:$0xff]  ;;  %v89_v17 = vld [vmem:[%s22384_s0 + $0x8c] sm:$0x3] }
  0x51   :  { %17437 = vmatprep.subr.mxu0 %v22389_v0  ;;  %17442 = vmatprep.subr.mxu1 %v22389_v0 }
  0x52   :  { %17438 = vmatpush3.msra.mxu0 %v203_v18  ;;  %17443 = vmatpush3.msra.mxu1 %v204_v19  ;;  %v90_v18 = vld [vmem:[%s22384_s0 + $0x8e] sm:$0x3]  ;;  %v235_v19 = vld [vmem:[%s22385_s3] sm:$0xff] }
  0x53   :  { %17439 = vmatprep.mubr.msk.f32.mxu0 %vm18608_vm1, %v22389_v0  ;;  %17444 = vmatprep.mubr.msk.f32.mxu1 %vm18608_vm1, %v22389_v0 }
  0x54   :  { %17440 = vmatmul.mubr.msk.f32.vlgmr.msra.gmra.mxu0 %vm307_vm0, %v59_v20  ;;  %17445 = vmatmul.mubr.msk.f32.vlgmr.msra.gmra.mxu1 %vm307_vm0, %v60_v21  ;;  %v236_v20 = vld [vmem:[%s22385_s3 + $0x8] sm:$0xff]  ;;  %v91_v21 = vld [vmem:[%s22386_s1] sm:$0x3] }
  0x55   :  { %17447 = vmatprep.subr.mxu0 %v22389_v0  ;;  %17452 = vmatprep.subr.mxu1 %v22389_v0 }
  0x56   :  { %17448 = vmatpush3.msra.mxu0 %v205_v22  ;;  %17453 = vmatpush3.msra.mxu1 %v206_v23  ;;  %v92_v22 = vld [vmem:[%s22386_s1 + $0x2] sm:$0x3]  ;;  %v237_v23 = vld [vmem:[%s22385_s3 + $0x10] sm:$0xff] }
  0x57   :  { %17449 = vmatprep.mubr.msk.f32.mxu0 %vm18608_vm1, %v22389_v0  ;;  %17454 = vmatprep.mubr.msk.f32.mxu1 %vm18608_vm1, %v22389_v0 }
  0x58   :  { %17450 = vmatmul.mubr.msk.f32.vlgmr.msra.gmra.mxu0 %vm307_vm0, %v61_v24  ;;  %17455 = vmatmul.mubr.msk.f32.vlgmr.msra.gmra.mxu1 %vm307_vm0, %v62_v25  ;;  %v238_v24 = vld [vmem:[%s22385_s3 + $0x18] sm:$0xff]  ;;  %v93_v25 = vld [vmem:[%s22386_s1 + $0x4] sm:$0x3] }
  0x59   :  { %17457 = vmatprep.subr.mxu0 %v22389_v0  ;;  %17462 = vmatprep.subr.mxu1 %v22389_v0 }
  0x5a   :  { %17458 = vmatpush3.msra.mxu0 %v207_v26  ;;  %17463 = vmatpush3.msra.mxu1 %v208_v27  ;;  %v94_v26 = vld [vmem:[%s22386_s1 + $0x6] sm:$0x3] }
  0x5b   :  { %17459 = vmatprep.mubr.msk.f32.mxu0 %vm18608_vm1, %v22389_v0  ;;  %17464 = vmatprep.mubr.msk.f32.mxu1 %vm18608_vm1, %v22389_v0  ;;  %v239_v27 = vld [vmem:[%s22385_s3 + $0x20] sm:$0xff] }
  0x5c   :  { %17460 = vmatmul.mubr.msk.f32.vlgmr.msra.gmra.mxu0 %vm307_vm0, %v63_v28  ;;  %17465 = vmatmul.mubr.msk.f32.vlgmr.msra.gmra.mxu1 %vm307_vm0, %v64_v29  ;;  %v240_v28 = vld [vmem:[%s22385_s3 + $0x28] sm:$0xff] }
  0x5d   :  { %17467 = vmatprep.subr.mxu0 %v22389_v0  ;;  %17472 = vmatprep.subr.mxu1 %v22389_v0  ;;  %v95_v29 = vld [vmem:[%s22386_s1 + $0x8] sm:$0x3] }
  0x5e   :  { %17468 = vmatpush3.msra.mxu0 %v209_v30  ;;  %17473 = vmatpush3.msra.mxu1 %v210_v31  ;;  %v96_v30 = vld [vmem:[%s22386_s1 + $0xa] sm:$0x3]  ;;  %v241_v31 = vld [vmem:[%s22385_s3 + $0x30] sm:$0xff] }
  0x5f   :  { %17469 = vmatprep.mubr.msk.f32.mxu0 %vm18608_vm1, %v22389_v0  ;;  %17474 = vmatprep.mubr.msk.f32.mxu1 %vm18608_vm1, %v22389_v0 }
  0x60   :  { %17470 = vmatmul.mubr.msk.f32.vlgmr.msra.gmra.mxu0 %vm307_vm0, %v65_v32  ;;  %17475 = vmatmul.mubr.msk.f32.vlgmr.msra.gmra.mxu1 %vm307_vm0, %v66_v33  ;;  %v242_v32 = vld [vmem:[%s22385_s3 + $0x38] sm:$0xff]  ;;  %v97_v33 = vld [vmem:[%s22386_s1 + $0xc] sm:$0x3] }
  0x61   :  { %17477 = vmatprep.subr.mxu0 %v22389_v0  ;;  %17482 = vmatprep.subr.mxu1 %v22389_v0 }
  0x62   :  { %17478 = vmatpush3.msra.mxu0 %v211_v34  ;;  %17483 = vmatpush3.msra.mxu1 %v212_v35  ;;  %v98_v34 = vld [vmem:[%s22386_s1 + $0xe] sm:$0x3]  ;;  %v243_v35 = vld [vmem:[%s22385_s3 + $0x40] sm:$0xff] }
  0x63   :  { %17479 = vmatprep.mubr.msk.f32.mxu0 %vm18608_vm1, %v22389_v0  ;;  %17484 = vmatprep.mubr.msk.f32.mxu1 %vm18608_vm1, %v22389_v0 }
  0x64   :  { %17480 = vmatmul.mubr.msk.f32.vlgmr.msra.gmra.mxu0 %vm307_vm0, %v67_v36  ;;  %17485 = vmatmul.mubr.msk.f32.vlgmr.msra.gmra.mxu1 %vm307_vm0, %v68_v37  ;;  %v244_v36 = vld [vmem:[%s22385_s3 + $0x48] sm:$0xff]  ;;  %v99_v37 = vld [vmem:[%s22386_s1 + $0x10] sm:$0x3] }
  0x65   :  { %17487 = vmatprep.subr.mxu0 %v22389_v0  ;;  %17492 = vmatprep.subr.mxu1 %v22389_v0 }
  0x66   :  { %17488 = vmatpush3.msra.mxu0 %v213_v38  ;;  %17493 = vmatpush3.msra.mxu1 %v214_v39  ;;  %v100_v38 = vld [vmem:[%s22386_s1 + $0x12] sm:$0x3] }
  0x67   :  { %17489 = vmatprep.mubr.msk.f32.mxu0 %vm18608_vm1, %v22389_v0  ;;  %17494 = vmatprep.mubr.msk.f32.mxu1 %vm18608_vm1, %v22389_v0  ;;  %v245_v39 = vld [vmem:[%s22385_s3 + $0x50] sm:$0xff] }
  0x68   :  { %17490 = vmatmul.mubr.msk.f32.vlgmr.msra.gmra.mxu0 %vm307_vm0, %v69_v40  ;;  %17495 = vmatmul.mubr.msk.f32.vlgmr.msra.gmra.mxu1 %vm307_vm0, %v70_v41  ;;  %v246_v40 = vld [vmem:[%s22385_s3 + $0x58] sm:$0xff]  ;;  %v101_v41 = vld [vmem:[%s22386_s1 + $0x14] sm:$0x3] }
  0x69   :  { %17497 = vmatprep.subr.mxu0 %v22389_v0  ;;  %17502 = vmatprep.subr.mxu1 %v22389_v0 }
  0x6a   :  { %17498 = vmatpush3.msra.mxu0 %v215_v42  ;;  %17503 = vmatpush3.msra.mxu1 %v216_v43  ;;  %v102_v42 = vld [vmem:[%s22386_s1 + $0x16] sm:$0x3]  ;;  %v247_v43 = vld [vmem:[%s22385_s3 + $0x60] sm:$0xff] }
  0x6b   :  { %17499 = vmatprep.mubr.msk.f32.mxu0 %vm18608_vm1, %v22389_v0  ;;  %17504 = vmatprep.mubr.msk.f32.mxu1 %vm18608_vm1, %v22389_v0 }
  0x6c   :  { %17500 = vmatmul.mubr.msk.f32.vlgmr.msra.gmra.mxu0 %vm307_vm0, %v71_v44  ;;  %17505 = vmatmul.mubr.msk.f32.vlgmr.msra.gmra.mxu1 %vm307_vm0, %v72_v45  ;;  %v248_v44 = vld [vmem:[%s22385_s3 + $0x68] sm:$0xff]  ;;  %v103_v45 = vld [vmem:[%s22386_s1 + $0x18] sm:$0x3] }
  0x6d   :  { %17507 = vmatprep.subr.mxu0 %v22389_v0  ;;  %17512 = vmatprep.subr.mxu1 %v22389_v0 }
  0x6e   :  { %17508 = vmatpush3.msra.mxu0 %v217_v46  ;;  %17513 = vmatpush3.msra.mxu1 %v218_v47  ;;  %v104_v46 = vld [vmem:[%s22386_s1 + $0x1a] sm:$0x3]  ;;  %v249_v47 = vld [vmem:[%s22385_s3 + $0x70] sm:$0xff] }
  0x6f   :  { %17509 = vmatprep.mubr.msk.f32.mxu0 %vm18608_vm1, %v22389_v0  ;;  %17514 = vmatprep.mubr.msk.f32.mxu1 %vm18608_vm1, %v22389_v0 }
  0x70   :  { %17510 = vmatmul.mubr.msk.f32.vlgmr.msra.gmra.mxu0 %vm307_vm0, %v73_v48  ;;  %17515 = vmatmul.mubr.msk.f32.vlgmr.msra.gmra.mxu1 %vm307_vm0, %v74_v49  ;;  %v250_v48 = vld [vmem:[%s22385_s3 + $0x78] sm:$0xff] }
  0x71   :  { %17517 = vmatprep.subr.mxu0 %v22389_v0  ;;  %17522 = vmatprep.subr.mxu1 %v22389_v0  ;;  %v105_v49 = vld [vmem:[%s22386_s1 + $0x1c] sm:$0x3] }
  0x72   :  { %17518 = vmatpush3.msra.mxu0 %v219_v50  ;;  %17523 = vmatpush3.msra.mxu1 %v220_v51  ;;  %v106_v50 = vld [vmem:[%s22386_s1 + $0x1e] sm:$0x3]  ;;  %v251_v51 = vld [vmem:[%s22385_s3 + $0x80] sm:$0xff] }
  0x73   :  { %17519 = vmatprep.mubr.msk.f32.mxu0 %vm18608_vm1, %v22389_v0  ;;  %17524 = vmatprep.mubr.msk.f32.mxu1 %vm18608_vm1, %v22389_v0 }
  0x74   :  { %17520 = vmatmul.mubr.msk.f32.vlgmr.msra.gmra.mxu0 %vm307_vm0, %v75_v52  ;;  %17525 = vmatmul.mubr.msk.f32.vlgmr.msra.gmra.mxu1 %vm307_vm0, %v76_v53  ;;  %v252_v52 = vld [vmem:[%s22385_s3 + $0x88] sm:$0xff]  ;;  %v107_v53 = vld [vmem:[%s22386_s1 + $0x20] sm:$0x3] }
  0x75   :  { %17527 = vmatprep.subr.mxu0 %v22389_v0  ;;  %17532 = vmatprep.subr.mxu1 %v22389_v0 }
  0x76   :  { %17528 = vmatpush3.msra.mxu0 %v221_v54  ;;  %17533 = vmatpush3.msra.mxu1 %v222_v55  ;;  %v108_v54 = vld [vmem:[%s22386_s1 + $0x22] sm:$0x3]  ;;  %v253_v55 = vld [vmem:[%s22385_s3 + $0x90] sm:$0xff] }
  0x77   :  { %17529 = vmatprep.mubr.msk.f32.mxu0 %vm18608_vm1, %v22389_v0  ;;  %17534 = vmatprep.mubr.msk.f32.mxu1 %vm18608_vm1, %v22389_v0 }
  0x78   :  { %17530 = vmatmul.mubr.msk.f32.vlgmr.msra.gmra.mxu0 %vm307_vm0, %v77_v56  ;;  %17535 = vmatmul.mubr.msk.f32.vlgmr.msra.gmra.mxu1 %vm307_vm0, %v78_v57  ;;  %v254_v56 = vld [vmem:[%s22385_s3 + $0x98] sm:$0xff]  ;;  %v109_v57 = vld [vmem:[%s22386_s1 + $0x24] sm:$0x3] }
  0x79   :  { %17537 = vmatprep.subr.mxu0 %v22389_v0  ;;  %17542 = vmatprep.subr.mxu1 %v22389_v0 }
  0x7a   :  { %17538 = vmatpush3.msra.mxu0 %v223_v58  ;;  %17543 = vmatpush3.msra.mxu1 %v224_v59  ;;  %v110_v58 = vld [vmem:[%s22386_s1 + $0x26] sm:$0x3] }
  0x7b   :  { %17539 = vmatprep.mubr.msk.f32.mxu0 %vm18608_vm1, %v22389_v0  ;;  %17544 = vmatprep.mubr.msk.f32.mxu1 %vm18608_vm1, %v22389_v0  ;;  %v255_v59 = vld [vmem:[%s22385_s3 + $0xa0] sm:$0xff] }
  0x7c   :  { %17540 = vmatmul.mubr.msk.f32.vlgmr.msra.gmra.mxu0 %vm307_vm0, %v79_v60  ;;  %17545 = vmatmul.mubr.msk.f32.vlgmr.msra.gmra.mxu1 %vm307_vm0, %v80_v61  ;;  %v256_v60 = vld [vmem:[%s22385_s3 + $0xa8] sm:$0xff] }
  0x7d   :  { %17547 = vmatprep.subr.mxu0 %v22389_v0  ;;  %17552 = vmatprep.subr.mxu1 %v22389_v0  ;;  %v111_v61 = vld [vmem:[%s22386_s1 + $0x28] sm:$0x3] }
  0x7e   :  { %17548 = vmatpush3.msra.mxu0 %v225_v62  ;;  %17553 = vmatpush3.msra.mxu1 %v226_v63  ;;  %v112_v62 = vld [vmem:[%s22386_s1 + $0x2a] sm:$0x3]  ;;  %v257_v63 = vld [vmem:[%s22385_s3 + $0xb0] sm:$0xff] }
  0x7f   :  { %17549 = vmatprep.mubr.msk.f32.mxu0 %vm18608_vm1, %v22389_v0  ;;  %17554 = vmatprep.mubr.msk.f32.mxu1 %vm18608_vm1, %v22389_v0 }
  0x80   :  { %17550 = vmatmul.mubr.msk.f32.vlgmr.msra.gmra.mxu0 %vm307_vm0, %v81_v1  ;;  %17555 = vmatmul.mubr.msk.f32.vlgmr.msra.gmra.mxu1 %vm307_vm0, %v82_v2  ;;  %v258_v1 = vld [vmem:[%s22385_s3 + $0xb8] sm:$0xff]  ;;  %v113_v2 = vld [vmem:[%s22386_s1 + $0x2c] sm:$0x3] }
  0x81   :  { %17557 = vmatprep.subr.mxu0 %v22389_v0  ;;  %17562 = vmatprep.subr.mxu1 %v22389_v0 }
  0x82   :  { %17558 = vmatpush3.msra.mxu0 %v227_v3  ;;  %17563 = vmatpush3.msra.mxu1 %v228_v4  ;;  %v114_v3 = vld [vmem:[%s22386_s1 + $0x2e] sm:$0x3]  ;;  %v259_v4 = vld [vmem:[%s22385_s3 + $0xc0] sm:$0xff] }
  0x83   :  { %17559 = vmatprep.mubr.msk.f32.mxu0 %vm18608_vm1, %v22389_v0  ;;  %17564 = vmatprep.mubr.msk.f32.mxu1 %vm18608_vm1, %v22389_v0 }
  0x84   :  { %17560 = vmatmul.mubr.msk.f32.vlgmr.msra.gmra.mxu0 %vm307_vm0, %v83_v5  ;;  %17565 = vmatmul.mubr.msk.f32.vlgmr.msra.gmra.mxu1 %vm307_vm0, %v84_v6  ;;  %v260_v5 = vld [vmem:[%s22385_s3 + $0xc8] sm:$0xff]  ;;  %v115_v6 = vld [vmem:[%s22386_s1 + $0x30] sm:$0x3] }
  0x85   :  { %17567 = vmatprep.subr.mxu0 %v22389_v0  ;;  %17572 = vmatprep.subr.mxu1 %v22389_v0 }
  0x86   :  { %17568 = vmatpush3.msra.mxu0 %v229_v7  ;;  %17573 = vmatpush3.msra.mxu1 %v230_v8  ;;  %v116_v7 = vld [vmem:[%s22386_s1 + $0x32] sm:$0x3] }
  0x87   :  { %17569 = vmatprep.mubr.msk.f32.mxu0 %vm18608_vm1, %v22389_v0  ;;  %17574 = vmatprep.mubr.msk.f32.mxu1 %vm18608_vm1, %v22389_v0  ;;  %v261_v8 = vld [vmem:[%s22385_s3 + $0xd0] sm:$0xff] }
  0x88   :  { %17570 = vmatmul.mubr.msk.f32.vlgmr.msra.gmra.mxu0 %vm307_vm0, %v85_v9  ;;  %17575 = vmatmul.mubr.msk.f32.vlgmr.msra.gmra.mxu1 %vm307_vm0, %v86_v10  ;;  %v262_v9 = vld [vmem:[%s22385_s3 + $0xd8] sm:$0xff] }
  0x89   :  { %17577 = vmatprep.subr.mxu0 %v22389_v0  ;;  %17582 = vmatprep.subr.mxu1 %v22389_v0 }
  0x8a   :  { %17578 = vmatpush3.msra.mxu0 %v231_v11  ;;  %17583 = vmatpush3.msra.mxu1 %v232_v12  ;;  %v117_v12 = vld [vmem:[%s22386_s1 + $0x34] sm:$0x3] }
  0x8b   :  { %17579 = vmatprep.mubr.msk.f32.mxu0 %vm18608_vm1, %v22389_v0  ;;  %17584 = vmatprep.mubr.msk.f32.mxu1 %vm18608_vm1, %v22389_v0 }
  0x8c   :  { %17580 = vmatmul.mubr.msk.f32.vlgmr.msra.gmra.mxu0 %vm307_vm0, %v87_v13  ;;  %17585 = vmatmul.mubr.msk.f32.vlgmr.msra.gmra.mxu1 %vm307_vm0, %v88_v14  ;;  %v118_v13 = vld [vmem:[%s22386_s1 + $0x36] sm:$0x3] }
  0x8d   :  { %17587 = vmatprep.subr.mxu0 %v22389_v0  ;;  %17592 = vmatprep.subr.mxu1 %v22389_v0 }
  0x8e   :  { %17588 = vmatpush3.msra.mxu0 %v233_v15  ;;  %17593 = vmatpush3.msra.mxu1 %v234_v16  ;;  %v263_v16 = vld [vmem:[%s22385_s3 + $0xe0] sm:$0xff] }
  0x8f   :  { %17589 = vmatprep.mubr.msk.f32.mxu0 %vm18608_vm1, %v22389_v0  ;;  %17594 = vmatprep.mubr.msk.f32.mxu1 %vm18608_vm1, %v22389_v0 }
  0x90   :  { %17590 = vmatmul.mubr.msk.f32.vlgmr.msra.gmra.mxu0 %vm307_vm0, %v89_v17  ;;  %17595 = vmatmul.mubr.msk.f32.vlgmr.msra.gmra.mxu1 %vm307_vm0, %v90_v18  ;;  %v264_v17 = vld [vmem:[%s22385_s3 + $0xe8] sm:$0xff] }
  0x91   :  { %17597 = vmatprep.subr.mxu0 %v22389_v0  ;;  %17602 = vmatprep.subr.mxu1 %v22389_v0 }
  0x92   :  { %17598 = vmatpush3.msra.mxu0 %v235_v19  ;;  %17603 = vmatpush3.msra.mxu1 %v236_v20  ;;  %v119_v20 = vld [vmem:[%s22386_s1 + $0x38] sm:$0x3] }
  0x93   :  { %17599 = vmatprep.mubr.msk.f32.mxu0 %vm18608_vm1, %v22389_v0  ;;  %17604 = vmatprep.mubr.msk.f32.mxu1 %vm18608_vm1, %v22389_v0 }
  0x94   :  { %17600 = vmatmul.mubr.msk.f32.vlgmr.msra.gmra.mxu0 %vm307_vm0, %v91_v21  ;;  %17605 = vmatmul.mubr.msk.f32.vlgmr.msra.gmra.mxu1 %vm307_vm0, %v92_v22  ;;  %v120_v21 = vld [vmem:[%s22386_s1 + $0x3a] sm:$0x3] }
  0x95   :  { %17607 = vmatprep.subr.mxu0 %v22389_v0  ;;  %17612 = vmatprep.subr.mxu1 %v22389_v0 }
  0x96   :  { %17608 = vmatpush3.msra.mxu0 %v237_v23  ;;  %17613 = vmatpush3.msra.mxu1 %v238_v24  ;;  %v265_v24 = vld [vmem:[%s22385_s3 + $0xf0] sm:$0xff] }
  0x97   :  { %17609 = vmatprep.mubr.msk.f32.mxu0 %vm18608_vm1, %v22389_v0  ;;  %17614 = vmatprep.mubr.msk.f32.mxu1 %vm18608_vm1, %v22389_v0 }
  0x98   :  { %17610 = vmatmul.mubr.msk.f32.vlgmr.msra.gmra.mxu0 %vm307_vm0, %v93_v25  ;;  %17615 = vmatmul.mubr.msk.f32.vlgmr.msra.gmra.mxu1 %vm307_vm0, %v94_v26  ;;  %v266_v25 = vld [vmem:[%s22385_s3 + $0xf8] sm:$0xff] }
  0x99   :  { %17617 = vmatprep.subr.mxu0 %v22389_v0  ;;  %17622 = vmatprep.subr.mxu1 %v22389_v0 }
  0x9a   :  { %17618 = vmatpush3.msra.mxu0 %v239_v27  ;;  %17623 = vmatpush3.msra.mxu1 %v240_v28  ;;  %v121_v28 = vld [vmem:[%s22386_s1 + $0x3c] sm:$0x3] }
  0x9b   :  { %17619 = vmatprep.mubr.msk.f32.mxu0 %vm18608_vm1, %v22389_v0  ;;  %17624 = vmatprep.mubr.msk.f32.mxu1 %vm18608_vm1, %v22389_v0 }
  0x9c   :  { %17620 = vmatmul.mubr.msk.f32.vlgmr.msra.gmra.mxu0 %vm307_vm0, %v95_v29  ;;  %17625 = vmatmul.mubr.msk.f32.vlgmr.msra.gmra.mxu1 %vm307_vm0, %v96_v30  ;;  %v122_v29 = vld [vmem:[%s22386_s1 + $0x3e] sm:$0x3] }
  0x9d   :  { %17627 = vmatprep.subr.mxu0 %v22389_v0  ;;  %17632 = vmatprep.subr.mxu1 %v22389_v0 }
  0x9e   :  { %17628 = vmatpush3.msra.mxu0 %v241_v31  ;;  %17633 = vmatpush3.msra.mxu1 %v242_v32  ;;  %v267_v32 = vld [vmem:[%s22385_s3 + $0x100] sm:$0xff] }
  0x9f   :  { %17629 = vmatprep.mubr.msk.f32.mxu0 %vm18608_vm1, %v22389_v0  ;;  %17634 = vmatprep.mubr.msk.f32.mxu1 %vm18608_vm1, %v22389_v0 }
  0xa0   :  { %17630 = vmatmul.mubr.msk.f32.vlgmr.msra.gmra.mxu0 %vm307_vm0, %v97_v33  ;;  %17635 = vmatmul.mubr.msk.f32.vlgmr.msra.gmra.mxu1 %vm307_vm0, %v98_v34  ;;  %v268_v33 = vld [vmem:[%s22385_s3 + $0x108] sm:$0xff] }
  0xa1   :  { %17637 = vmatprep.subr.mxu0 %v22389_v0  ;;  %17642 = vmatprep.subr.mxu1 %v22389_v0 }
  0xa2   :  { %17638 = vmatpush3.msra.mxu0 %v243_v35  ;;  %17643 = vmatpush3.msra.mxu1 %v244_v36  ;;  %v123_v36 = vld [vmem:[%s22386_s1 + $0x40] sm:$0x3] }
  0xa3   :  { %17639 = vmatprep.mubr.msk.f32.mxu0 %vm18608_vm1, %v22389_v0  ;;  %17644 = vmatprep.mubr.msk.f32.mxu1 %vm18608_vm1, %v22389_v0 }
  0xa4   :  { %17640 = vmatmul.mubr.msk.f32.vlgmr.msra.gmra.mxu0 %vm307_vm0, %v99_v37  ;;  %17645 = vmatmul.mubr.msk.f32.vlgmr.msra.gmra.mxu1 %vm307_vm0, %v100_v38  ;;  %v124_v37 = vld [vmem:[%s22386_s1 + $0x42] sm:$0x3] }
  0xa5   :  { %17647 = vmatprep.subr.mxu0 %v22389_v0  ;;  %17652 = vmatprep.subr.mxu1 %v22389_v0 }
  0xa6   :  { %17648 = vmatpush3.msra.mxu0 %v245_v39  ;;  %17653 = vmatpush3.msra.mxu1 %v246_v40  ;;  %v269_v40 = vld [vmem:[%s22385_s3 + $0x110] sm:$0xff] }
  0xa7   :  { %17649 = vmatprep.mubr.msk.f32.mxu0 %vm18608_vm1, %v22389_v0  ;;  %17654 = vmatprep.mubr.msk.f32.mxu1 %vm18608_vm1, %v22389_v0 }
  0xa8   :  { %17650 = vmatmul.mubr.msk.f32.vlgmr.msra.gmra.mxu0 %vm307_vm0, %v101_v41  ;;  %17655 = vmatmul.mubr.msk.f32.vlgmr.msra.gmra.mxu1 %vm307_vm0, %v102_v42  ;;  %v270_v41 = vld [vmem:[%s22385_s3 + $0x118] sm:$0xff] }
  0xa9   :  { %17657 = vmatprep.subr.mxu0 %v22389_v0  ;;  %17662 = vmatprep.subr.mxu1 %v22389_v0 }
  0xaa   :  { %17658 = vmatpush3.msra.mxu0 %v247_v43  ;;  %17663 = vmatpush3.msra.mxu1 %v248_v44  ;;  %v125_v44 = vld [vmem:[%s22386_s1 + $0x44] sm:$0x3] }
  0xab   :  { %17659 = vmatprep.mubr.msk.f32.mxu0 %vm18608_vm1, %v22389_v0  ;;  %17664 = vmatprep.mubr.msk.f32.mxu1 %vm18608_vm1, %v22389_v0 }
  0xac   :  { %17660 = vmatmul.mubr.msk.f32.vlgmr.msra.gmra.mxu0 %vm307_vm0, %v103_v45  ;;  %17665 = vmatmul.mubr.msk.f32.vlgmr.msra.gmra.mxu1 %vm307_vm0, %v104_v46  ;;  %v126_v45 = vld [vmem:[%s22386_s1 + $0x46] sm:$0x3] }
  0xad   :  { %17667 = vmatprep.subr.mxu0 %v22389_v0  ;;  %17672 = vmatprep.subr.mxu1 %v22389_v0 }
  0xae   :  { %17668 = vmatpush3.msra.mxu0 %v249_v47  ;;  %17673 = vmatpush3.msra.mxu1 %v250_v48  ;;  %v271_v48 = vld [vmem:[%s22385_s3 + $0x120] sm:$0xff] }
  0xaf   :  { %17669 = vmatprep.mubr.msk.f32.mxu0 %vm18608_vm1, %v22389_v0  ;;  %17674 = vmatprep.mubr.msk.f32.mxu1 %vm18608_vm1, %v22389_v0 }
  0xb0   :  { %17670 = vmatmul.mubr.msk.f32.vlgmr.msra.gmra.mxu0 %vm307_vm0, %v105_v49  ;;  %17675 = vmatmul.mubr.msk.f32.vlgmr.msra.gmra.mxu1 %vm307_vm0, %v106_v50  ;;  %v272_v49 = vld [vmem:[%s22385_s3 + $0x128] sm:$0xff] }
  0xb1   :  { %17677 = vmatprep.subr.mxu0 %v22389_v0  ;;  %17682 = vmatprep.subr.mxu1 %v22389_v0 }
  0xb2   :  { %17678 = vmatpush3.msra.mxu0 %v251_v51  ;;  %17683 = vmatpush3.msra.mxu1 %v252_v52  ;;  %v127_v52 = vld [vmem:[%s22386_s1 + $0x48] sm:$0x3] }
  0xb3   :  { %17679 = vmatprep.mubr.msk.f32.mxu0 %vm18608_vm1, %v22389_v0  ;;  %17684 = vmatprep.mubr.msk.f32.mxu1 %vm18608_vm1, %v22389_v0 }
  0xb4   :  { %17680 = vmatmul.mubr.msk.f32.vlgmr.msra.gmra.mxu0 %vm307_vm0, %v107_v53  ;;  %17685 = vmatmul.mubr.msk.f32.vlgmr.msra.gmra.mxu1 %vm307_vm0, %v108_v54  ;;  %v128_v53 = vld [vmem:[%s22386_s1 + $0x4a] sm:$0x3] }
  0xb5   :  { %17687 = vmatprep.subr.mxu0 %v22389_v0  ;;  %17692 = vmatprep.subr.mxu1 %v22389_v0 }
  0xb6   :  { %17688 = vmatpush3.msra.mxu0 %v253_v55  ;;  %17693 = vmatpush3.msra.mxu1 %v254_v56  ;;  %v273_v56 = vld [vmem:[%s22385_s3 + $0x130] sm:$0xff] }
  0xb7   :  { %17689 = vmatprep.mubr.msk.f32.mxu0 %vm18608_vm1, %v22389_v0  ;;  %17694 = vmatprep.mubr.msk.f32.mxu1 %vm18608_vm1, %v22389_v0 }
  0xb8   :  { %17690 = vmatmul.mubr.msk.f32.vlgmr.msra.gmra.mxu0 %vm307_vm0, %v109_v57  ;;  %17695 = vmatmul.mubr.msk.f32.vlgmr.msra.gmra.mxu1 %vm307_vm0, %v110_v58  ;;  %v274_v57 = vld [vmem:[%s22385_s3 + $0x138] sm:$0xff] }
  0xb9   :  { %17697 = vmatprep.subr.mxu0 %v22389_v0  ;;  %17702 = vmatprep.subr.mxu1 %v22389_v0 }
  0xba   :  { %17698 = vmatpush3.msra.mxu0 %v255_v59  ;;  %17703 = vmatpush3.msra.mxu1 %v256_v60  ;;  %v129_v60 = vld [vmem:[%s22386_s1 + $0x4c] sm:$0x3] }
  0xbb   :  { %17699 = vmatprep.mubr.msk.f32.mxu0 %vm18608_vm1, %v22389_v0  ;;  %17704 = vmatprep.mubr.msk.f32.mxu1 %vm18608_vm1, %v22389_v0 }
  0xbc   :  { %17700 = vmatmul.mubr.msk.f32.vlgmr.msra.gmra.mxu0 %vm307_vm0, %v111_v61  ;;  %17705 = vmatmul.mubr.msk.f32.vlgmr.msra.gmra.mxu1 %vm307_vm0, %v112_v62  ;;  %v130_v61 = vld [vmem:[%s22386_s1 + $0x4e] sm:$0x3] }
  0xbd   :  { %17707 = vmatprep.subr.mxu0 %v22389_v0  ;;  %17712 = vmatprep.subr.mxu1 %v22389_v0 }
  0xbe   :  { %17708 = vmatpush3.msra.mxu0 %v257_v63  ;;  %17713 = vmatpush3.msra.mxu1 %v258_v1  ;;  %v275_v1 = vld [vmem:[%s22385_s3 + $0x140] sm:$0xff] }
  0xbf   :  { %17709 = vmatprep.mubr.msk.f32.mxu0 %vm18608_vm1, %v22389_v0  ;;  %17714 = vmatprep.mubr.msk.f32.mxu1 %vm18608_vm1, %v22389_v0 }
  0xc0   :  { %17710 = vmatmul.mubr.msk.f32.vlgmr.msra.gmra.mxu0 %vm307_vm0, %v113_v2  ;;  %17715 = vmatmul.mubr.msk.f32.vlgmr.msra.gmra.mxu1 %vm307_vm0, %v114_v3  ;;  %v276_v2 = vld [vmem:[%s22385_s3 + $0x148] sm:$0xff] }
  0xc1   :  { %17717 = vmatprep.subr.mxu0 %v22389_v0  ;;  %17722 = vmatprep.subr.mxu1 %v22389_v0 }
  0xc2   :  { %17718 = vmatpush3.msra.mxu0 %v259_v4  ;;  %17723 = vmatpush3.msra.mxu1 %v260_v5  ;;  %v131_v5 = vld [vmem:[%s22386_s1 + $0x50] sm:$0x3] }
  0xc3   :  { %17719 = vmatprep.mubr.msk.f32.mxu0 %vm18608_vm1, %v22389_v0  ;;  %17724 = vmatprep.mubr.msk.f32.mxu1 %vm18608_vm1, %v22389_v0 }
  0xc4   :  { %v19623_v10 = vpop.f32.mrf.mxu0  ;;  %v19625_v11 = vpop.f32.mrf.mxu1  ;;  %17720 = vmatmul.mubr.msk.f32.vlgmr.msra.gmra.mxu0 %vm307_vm0, %v115_v6  ;;  %17725 = vmatmul.mubr.msk.f32.vlgmr.msra.gmra.mxu1 %vm307_vm0, %v116_v7  ;;  %v132_v6 = vld [vmem:[%s22386_s1 + $0x52] sm:$0x3] }
  0xc5   :  { %22486 = vst [vmem:[#allocation2_spill] sm:$0xff] %v19625_v11  ;;  %17727 = vmatprep.subr.mxu0 %v22389_v0  ;;  %17732 = vmatprep.subr.mxu1 %v22389_v0 }
  0xc6   :  { %17728 = vmatpush3.msra.mxu0 %v261_v8  ;;  %17733 = vmatpush3.msra.mxu1 %v262_v9  ;;  %v17241_v14 = vpop.f32.mrf.mxu0  ;;  %v17246_v15 = vpop.f32.mrf.mxu1  ;;  %v277_v9 = vld [vmem:[%s22385_s3 + $0x150] sm:$0xff] }
  0xc7   :  { %17729 = vmatprep.mubr.msk.f32.mxu0 %vm18608_vm1, %v22389_v0  ;;  %17734 = vmatprep.mubr.msk.f32.mxu1 %vm18608_vm1, %v22389_v0  ;;  %v133_v15 = vld [vmem:[%s22386_s1 + $0x54] sm:$0x3] }
  0xc8   :  { %v19647_v18 = vpop.f32.mrf.mxu0  ;;  %v19649_v19 = vpop.f32.mrf.mxu1  ;;  %17730 = vmatmul.mubr.msk.f32.vlgmr.msra.gmra.mxu0 %vm307_vm0, %v117_v12  ;;  %17735 = vmatmul.mubr.msk.f32.vlgmr.msra.gmra.mxu1 %vm307_vm0, %v118_v13  ;;  %v278_v12 = vld [vmem:[%s22385_s3 + $0x158] sm:$0xff] }
  0xc9   :  { %17737 = vmatprep.subr.mxu0 %v22389_v0  ;;  %17742 = vmatprep.subr.mxu1 %v22389_v0 }
  0xca   :  { %17738 = vmatpush3.msra.mxu0 %v263_v16  ;;  %17743 = vmatpush3.msra.mxu1 %v264_v17  ;;  %v17251_v22 = vpop.f32.mrf.mxu0  ;;  %v17256_v23 = vpop.f32.mrf.mxu1  ;;  %v134_v16 = vld [vmem:[%s22386_s1 + $0x56] sm:$0x3] }
  0xcb   :  { %17739 = vmatprep.mubr.msk.f32.mxu0 %vm18608_vm1, %v22389_v0  ;;  %17744 = vmatprep.mubr.msk.f32.mxu1 %vm18608_vm1, %v22389_v0  ;;  %v280_v22 = vld [vmem:[%s22385_s3 + $0x168] sm:$0xff] }
  0xcc   :  { %v19671_v26 = vpop.f32.mrf.mxu0  ;;  %v19673_v27 = vpop.f32.mrf.mxu1  ;;  %17740 = vmatmul.mubr.msk.f32.vlgmr.msra.gmra.mxu0 %vm307_vm0, %v119_v20  ;;  %17745 = vmatmul.mubr.msk.f32.vlgmr.msra.gmra.mxu1 %vm307_vm0, %v120_v21  ;;  %v279_v21 = vld [vmem:[%s22385_s3 + $0x160] sm:$0xff] }
  0xcd   :  { %17747 = vmatprep.subr.mxu0 %v22389_v0  ;;  %17752 = vmatprep.subr.mxu1 %v22389_v0 }
  0xce   :  { %17748 = vmatpush3.msra.mxu0 %v265_v24  ;;  %17753 = vmatpush3.msra.mxu1 %v266_v25  ;;  %v17261_v30 = vpop.f32.mrf.mxu0  ;;  %v17266_v31 = vpop.f32.mrf.mxu1  ;;  %v135_v25 = vld [vmem:[%s22386_s1 + $0x58] sm:$0x3] }
  0xcf   :  { %17749 = vmatprep.mubr.msk.f32.mxu0 %vm18608_vm1, %v22389_v0  ;;  %17754 = vmatprep.mubr.msk.f32.mxu1 %vm18608_vm1, %v22389_v0  ;;  %v281_v31 = vld [vmem:[%s22385_s3 + $0x170] sm:$0xff] }
  0xd0   :  { %v19695_v34 = vpop.f32.mrf.mxu0  ;;  %v19697_v35 = vpop.f32.mrf.mxu1  ;;  %17750 = vmatmul.mubr.msk.f32.vlgmr.msra.gmra.mxu0 %vm307_vm0, %v121_v28  ;;  %17755 = vmatmul.mubr.msk.f32.vlgmr.msra.gmra.mxu1 %vm307_vm0, %v122_v29  ;;  %v136_v28 = vld [vmem:[%s22386_s1 + $0x5a] sm:$0x3] }
  0xd1   :  { %17757 = vmatprep.subr.mxu0 %v22389_v0  ;;  %17762 = vmatprep.subr.mxu1 %v22389_v0 }
  0xd2   :  { %17758 = vmatpush3.msra.mxu0 %v267_v32  ;;  %17763 = vmatpush3.msra.mxu1 %v268_v33  ;;  %v17271_v38 = vpop.f32.mrf.mxu0  ;;  %v17276_v39 = vpop.f32.mrf.mxu1  ;;  %v282_v32 = vld [vmem:[%s22385_s3 + $0x178] sm:$0xff] }
  0xd3   :  { %17759 = vmatprep.mubr.msk.f32.mxu0 %vm18608_vm1, %v22389_v0  ;;  %17764 = vmatprep.mubr.msk.f32.mxu1 %vm18608_vm1, %v22389_v0  ;;  %v138_v38 = vld [vmem:[%s22386_s1 + $0x5e] sm:$0x3] }
  0xd4   :  { %v19719_v42 = vpop.f32.mrf.mxu0  ;;  %v19721_v43 = vpop.f32.mrf.mxu1  ;;  %17760 = vmatmul.mubr.msk.f32.vlgmr.msra.gmra.mxu0 %vm307_vm0, %v123_v36  ;;  %17765 = vmatmul.mubr.msk.f32.vlgmr.msra.gmra.mxu1 %vm307_vm0, %v124_v37  ;;  %v137_v37 = vld [vmem:[%s22386_s1 + $0x5c] sm:$0x3] }
  0xd5   :  { %17767 = vmatprep.subr.mxu0 %v22389_v0  ;;  %17772 = vmatprep.subr.mxu1 %v22389_v0 }
  0xd6   :  { %17768 = vmatpush3.msra.mxu0 %v269_v40  ;;  %17773 = vmatpush3.msra.mxu1 %v270_v41  ;;  %v17281_v46 = vpop.f32.mrf.mxu0  ;;  %v17286_v47 = vpop.f32.mrf.mxu1  ;;  %v283_v41 = vld [vmem:[%s22385_s3 + $0x180] sm:$0xff] }
  0xd7   :  { %17769 = vmatprep.mubr.msk.f32.mxu0 %vm18608_vm1, %v22389_v0  ;;  %17774 = vmatprep.mubr.msk.f32.mxu1 %vm18608_vm1, %v22389_v0  ;;  %v139_v47 = vld [vmem:[%s22386_s1 + $0x60] sm:$0x3] }
  0xd8   :  { %v19743_v50 = vpop.f32.mrf.mxu0  ;;  %v19745_v51 = vpop.f32.mrf.mxu1  ;;  %17770 = vmatmul.mubr.msk.f32.vlgmr.msra.gmra.mxu0 %vm307_vm0, %v125_v44  ;;  %17775 = vmatmul.mubr.msk.f32.vlgmr.msra.gmra.mxu1 %vm307_vm0, %v126_v45  ;;  %v284_v44 = vld [vmem:[%s22385_s3 + $0x188] sm:$0xff] }
  0xd9   :  { %17777 = vmatprep.subr.mxu0 %v22389_v0  ;;  %17782 = vmatprep.subr.mxu1 %v22389_v0 }
  0xda   :  { %17778 = vmatpush3.msra.mxu0 %v271_v48  ;;  %17783 = vmatpush3.msra.mxu1 %v272_v49  ;;  %v17291_v54 = vpop.f32.mrf.mxu0  ;;  %v17296_v55 = vpop.f32.mrf.mxu1  ;;  %v140_v48 = vld [vmem:[%s22386_s1 + $0x62] sm:$0x3] }
  0xdb   :  { %17779 = vmatprep.mubr.msk.f32.mxu0 %vm18608_vm1, %v22389_v0  ;;  %17784 = vmatprep.mubr.msk.f32.mxu1 %vm18608_vm1, %v22389_v0  ;;  %v286_v54 = vld [vmem:[%s22385_s3 + $0x198] sm:$0xff] }
  0xdc   :  { %v19767_v58 = vpop.f32.mrf.mxu0  ;;  %v19769_v59 = vpop.f32.mrf.mxu1  ;;  %17780 = vmatmul.mubr.msk.f32.vlgmr.msra.gmra.mxu0 %vm307_vm0, %v127_v52  ;;  %17785 = vmatmul.mubr.msk.f32.vlgmr.msra.gmra.mxu1 %vm307_vm0, %v128_v53  ;;  %v285_v53 = vld [vmem:[%s22385_s3 + $0x190] sm:$0xff] }
  0xdd   :  { %17787 = vmatprep.subr.mxu0 %v22389_v0  ;;  %17792 = vmatprep.subr.mxu1 %v22389_v0 }
  0xde   :  { %17788 = vmatpush3.msra.mxu0 %v273_v56  ;;  %17793 = vmatpush3.msra.mxu1 %v274_v57  ;;  %v17301_v62 = vpop.f32.mrf.mxu0  ;;  %v17306_v63 = vpop.f32.mrf.mxu1  ;;  %v141_v57 = vld [vmem:[%s22386_s1 + $0x64] sm:$0x3] }
  0xdf   :  { %17789 = vmatprep.mubr.msk.f32.mxu0 %vm18608_vm1, %v22389_v0  ;;  %17794 = vmatprep.mubr.msk.f32.mxu1 %vm18608_vm1, %v22389_v0  ;;  %v287_v63 = vld [vmem:[%s22385_s3 + $0x1a0] sm:$0xff] }
  0xe0   :  { %v19791_v3 = vpop.f32.mrf.mxu0  ;;  %v19793_v4 = vpop.f32.mrf.mxu1  ;;  %17790 = vmatmul.mubr.msk.f32.vlgmr.msra.gmra.mxu0 %vm307_vm0, %v129_v60  ;;  %17795 = vmatmul.mubr.msk.f32.vlgmr.msra.gmra.mxu1 %vm307_vm0, %v130_v61  ;;  %v142_v60 = vld [vmem:[%s22386_s1 + $0x66] sm:$0x3] }
  0xe1   :  { %17797 = vmatprep.subr.mxu0 %v22389_v0  ;;  %17802 = vmatprep.subr.mxu1 %v22389_v0 }
  0xe2   :  { %17798 = vmatpush3.msra.mxu0 %v275_v1  ;;  %17803 = vmatpush3.msra.mxu1 %v276_v2  ;;  %v17311_v7 = vpop.f32.mrf.mxu0  ;;  %v17316_v8 = vpop.f32.mrf.mxu1  ;;  %v288_v1 = vld [vmem:[%s22385_s3 + $0x1a8] sm:$0xff] }
  0xe3   :  { %17799 = vmatprep.mubr.msk.f32.mxu0 %vm18608_vm1, %v22389_v0  ;;  %17804 = vmatprep.mubr.msk.f32.mxu1 %vm18608_vm1, %v22389_v0  ;;  %v144_v7 = vld [vmem:[%s22386_s1 + $0x6a] sm:$0x3] }
  0xe4   :  { %v19815_v13 = vpop.f32.mrf.mxu0  ;;  %v19817_v14 = vpop.f32.mrf.mxu1  ;;  %17800 = vmatmul.mubr.msk.f32.vlgmr.msra.gmra.mxu0 %vm307_vm0, %v131_v5  ;;  %17805 = vmatmul.mubr.msk.f32.vlgmr.msra.gmra.mxu1 %vm307_vm0, %v132_v6  ;;  %v143_v6 = vld [vmem:[%s22386_s1 + $0x68] sm:$0x3] }
  0xe5   :  { %17807 = vmatprep.subr.mxu0 %v22389_v0  ;;  %17812 = vmatprep.subr.mxu1 %v22389_v0 }
  0xe6   :  { %17808 = vmatpush3.msra.mxu0 %v277_v9  ;;  %17813 = vmatpush3.msra.mxu1 %v278_v12  ;;  %v17321_v17 = vpop.f32.mrf.mxu0  ;;  %v17326_v20 = vpop.f32.mrf.mxu1  ;;  %v289_v12 = vld [vmem:[%s22385_s3 + $0x1b0] sm:$0xff] }
  0xe7   :  { %17809 = vmatprep.mubr.msk.f32.mxu0 %vm18608_vm1, %v22389_v0  ;;  %17814 = vmatprep.mubr.msk.f32.mxu1 %vm18608_vm1, %v22389_v0  ;;  %v145_v20 = vld [vmem:[%s22386_s1 + $0x6c] sm:$0x3] }
  0xe8   :  { %v19839_v23 = vpop.f32.mrf.mxu0  ;;  %v19841_v24 = vpop.f32.mrf.mxu1  ;;  %17810 = vmatmul.mubr.msk.f32.vlgmr.msra.gmra.mxu0 %vm307_vm0, %v133_v15  ;;  %17815 = vmatmul.mubr.msk.f32.vlgmr.msra.gmra.mxu1 %vm307_vm0, %v134_v16  ;;  %v290_v15 = vld [vmem:[%s22385_s3 + $0x1b8] sm:$0xff] }
  0xe9   :  { %17817 = vmatprep.subr.mxu0 %v22389_v0  ;;  %17822 = vmatprep.subr.mxu1 %v22389_v0 }
  0xea   :  { %17818 = vmatpush3.msra.mxu0 %v279_v21  ;;  %17823 = vmatpush3.msra.mxu1 %v280_v22  ;;  %v17331_v29 = vpop.f32.mrf.mxu0  ;;  %v17336_v30 = vpop.f32.mrf.mxu1  ;;  %v146_v21 = vld [vmem:[%s22386_s1 + $0x6e] sm:$0x3] }
  0xeb   :  { %17819 = vmatprep.mubr.msk.f32.mxu0 %vm18608_vm1, %v22389_v0  ;;  %17824 = vmatprep.mubr.msk.f32.mxu1 %vm18608_vm1, %v22389_v0  ;;  %v292_v29 = vld [vmem:[%s22385_s3 + $0x1c8] sm:$0xff] }
  0xec   :  { %v19863_v33 = vpop.f32.mrf.mxu0  ;;  %v19865_v36 = vpop.f32.mrf.mxu1  ;;  %17820 = vmatmul.mubr.msk.f32.vlgmr.msra.gmra.mxu0 %vm307_vm0, %v135_v25  ;;  %17825 = vmatmul.mubr.msk.f32.vlgmr.msra.gmra.mxu1 %vm307_vm0, %v136_v28  ;;  %v291_v28 = vld [vmem:[%s22385_s3 + $0x1c0] sm:$0xff] }
  0xed   :  { %17827 = vmatprep.subr.mxu0 %v22389_v0  ;;  %17832 = vmatprep.subr.mxu1 %v22389_v0 }
  0xee   :  { %17828 = vmatpush3.msra.mxu0 %v281_v31  ;;  %17833 = vmatpush3.msra.mxu1 %v282_v32  ;;  %v17341_v39 = vpop.f32.mrf.mxu0  ;;  %v17346_v40 = vpop.f32.mrf.mxu1  ;;  %v147_v32 = vld [vmem:[%s22386_s1 + $0x70] sm:$0x3] }
  0xef   :  { %17829 = vmatprep.mubr.msk.f32.mxu0 %vm18608_vm1, %v22389_v0  ;;  %17834 = vmatprep.mubr.msk.f32.mxu1 %vm18608_vm1, %v22389_v0  ;;  %v293_v40 = vld [vmem:[%s22385_s3 + $0x1d0] sm:$0xff] }
  0xf0   :  { %v19887_v45 = vpop.f32.mrf.mxu0  ;;  %v19889_v46 = vpop.f32.mrf.mxu1  ;;  %17830 = vmatmul.mubr.msk.f32.vlgmr.msra.gmra.mxu0 %vm307_vm0, %v137_v37  ;;  %17835 = vmatmul.mubr.msk.f32.vlgmr.msra.gmra.mxu1 %vm307_vm0, %v138_v38  ;;  %v148_v37 = vld [vmem:[%s22386_s1 + $0x72] sm:$0x3] }
  0xf1   :  { %17837 = vmatprep.subr.mxu0 %v22389_v0  ;;  %17842 = vmatprep.subr.mxu1 %v22389_v0 }
  0xf2   :  { %17838 = vmatpush3.msra.mxu0 %v283_v41  ;;  %17843 = vmatpush3.msra.mxu1 %v284_v44  ;;  %v17351_v49 = vpop.f32.mrf.mxu0  ;;  %v17356_v52 = vpop.f32.mrf.mxu1  ;;  %v294_v41 = vld [vmem:[%s22385_s3 + $0x1d8] sm:$0xff] }
  0xf3   :  { %17839 = vmatprep.mubr.msk.f32.mxu0 %vm18608_vm1, %v22389_v0  ;;  %17844 = vmatprep.mubr.msk.f32.mxu1 %vm18608_vm1, %v22389_v0  ;;  %v150_v49 = vld [vmem:[%s22386_s1 + $0x76] sm:$0x3] }
  0xf4   :  { %v19911_v55 = vpop.f32.mrf.mxu0  ;;  %v19913_v56 = vpop.f32.mrf.mxu1  ;;  %17840 = vmatmul.mubr.msk.f32.vlgmr.msra.gmra.mxu0 %vm307_vm0, %v139_v47  ;;  %17845 = vmatmul.mubr.msk.f32.vlgmr.msra.gmra.mxu1 %vm307_vm0, %v140_v48  ;;  %v149_v48 = vld [vmem:[%s22386_s1 + $0x74] sm:$0x3] }
  0xf5   :  { %17847 = vmatprep.subr.mxu0 %v22389_v0  ;;  %17852 = vmatprep.subr.mxu1 %v22389_v0 }
  0xf6   :  { %17848 = vmatpush3.msra.mxu0 %v285_v53  ;;  %17853 = vmatpush3.msra.mxu1 %v286_v54  ;;  %v17361_v61 = vpop.f32.mrf.mxu0  ;;  %v17366_v62 = vpop.f32.mrf.mxu1  ;;  %v295_v54 = vld [vmem:[%s22385_s3 + $0x1e0] sm:$0xff] }
  0xf7   :  { %17849 = vmatprep.mubr.msk.f32.mxu0 %vm18608_vm1, %v22389_v0  ;;  %17854 = vmatprep.mubr.msk.f32.mxu1 %vm18608_vm1, %v22389_v0  ;;  %v151_v62 = vld [vmem:[%s22386_s1 + $0x78] sm:$0x3] }
  0xf8   :  { %v19935_v2 = vpop.f32.mrf.mxu0  ;;  %v19937_v5 = vpop.f32.mrf.mxu1  ;;  %17850 = vmatmul.mubr.msk.f32.vlgmr.msra.gmra.mxu0 %vm307_vm0, %v141_v57  ;;  %17855 = vmatmul.mubr.msk.f32.vlgmr.msra.gmra.mxu1 %vm307_vm0, %v142_v60  ;;  %v296_v57 = vld [vmem:[%s22385_s3 + $0x1e8] sm:$0xff] }
  0xf9   :  { %17857 = vmatprep.subr.mxu0 %v22389_v0  ;;  %17862 = vmatprep.subr.mxu1 %v22389_v0 }
  0xfa   :  { %17858 = vmatpush3.msra.mxu0 %v287_v63  ;;  %17863 = vmatpush3.msra.mxu1 %v288_v1  ;;  %v17371_v8 = vpop.f32.mrf.mxu0  ;;  %v17376_v9 = vpop.f32.mrf.mxu1  ;;  %v152_v63 = vld [vmem:[%s22386_s1 + $0x7a] sm:$0x3] }
  0xfb   :  { %17859 = vmatprep.mubr.msk.f32.mxu0 %vm18608_vm1, %v22389_v0  ;;  %17864 = vmatprep.mubr.msk.f32.mxu1 %vm18608_vm1, %v22389_v0  ;;  %v298_v8 = vld [vmem:[%s22385_s3 + $0x1f8] sm:$0xff] }
  0xfc   :  { %v19959_v16 = vpop.f32.mrf.mxu0  ;;  %v19961_v17 = vpop.f32.mrf.mxu1  ;;  %17860 = vmatmul.mubr.msk.f32.vlgmr.msra.gmra.mxu0 %vm307_vm0, %v143_v6  ;;  %17865 = vmatmul.mubr.msk.f32.vlgmr.msra.gmra.mxu1 %vm307_vm0, %v144_v7  ;;  %v297_v7 = vld [vmem:[%s22385_s3 + $0x1f0] sm:$0xff] }
  0xfd   :  { %17867 = vmatprep.subr.mxu0 %v22389_v0  ;;  %17872 = vmatprep.subr.mxu1 %v22389_v0 }
  0xfe   :  { %17868 = vmatpush3.msra.mxu0 %v289_v12  ;;  %17873 = vmatpush3.msra.mxu1 %v290_v15  ;;  %v17381_v22 = vpop.f32.mrf.mxu0  ;;  %v17386_v25 = vpop.f32.mrf.mxu1  ;;  %v153_v15 = vld [vmem:[%s22386_s1 + $0x7c] sm:$0x3] }
  0xff   :  { %17869 = vmatprep.mubr.msk.f32.mxu0 %vm18608_vm1, %v22389_v0  ;;  %17874 = vmatprep.mubr.msk.f32.mxu1 %vm18608_vm1, %v22389_v0  ;;  %v299_v25 = vld [vmem:[%s22385_s3 + $0x200] sm:$0xff] }
 0x100   :  { %v19983_v30 = vpop.f32.mrf.mxu0  ;;  %v19985_v31 = vpop.f32.mrf.mxu1  ;;  %17870 = vmatmul.mubr.msk.f32.vlgmr.msra.gmra.mxu0 %vm307_vm0, %v145_v20  ;;  %17875 = vmatmul.mubr.msk.f32.vlgmr.msra.gmra.mxu1 %vm307_vm0, %v146_v21  ;;  %v154_v20 = vld [vmem:[%s22386_s1 + $0x7e] sm:$0x3] }
 0x101   :  { %17877 = vmatprep.subr.mxu0 %v22389_v0  ;;  %17882 = vmatprep.subr.mxu1 %v22389_v0 }
 0x102   :  { %17878 = vmatpush3.msra.mxu0 %v291_v28  ;;  %17883 = vmatpush3.msra.mxu1 %v292_v29  ;;  %v17391_v38 = vpop.f32.mrf.mxu0  ;;  %v17396_v39 = vpop.f32.mrf.mxu1  ;;  %v300_v28 = vld [vmem:[%s22385_s3 + $0x208] sm:$0xff] }
 0x103   :  { %17879 = vmatprep.mubr.msk.f32.mxu0 %vm18608_vm1, %v22389_v0  ;;  %17884 = vmatprep.mubr.msk.f32.mxu1 %vm18608_vm1, %v22389_v0  ;;  %v156_v38 = vld [vmem:[%s22386_s1 + $0x82] sm:$0x3] }
 0x104   :  { %v20007_v44 = vpop.f32.mrf.mxu0  ;;  %v20009_v47 = vpop.f32.mrf.mxu1  ;;  %17880 = vmatmul.mubr.msk.f32.vlgmr.msra.gmra.mxu0 %vm307_vm0, %v147_v32  ;;  %17885 = vmatmul.mubr.msk.f32.vlgmr.msra.gmra.mxu1 %vm307_vm0, %v148_v37  ;;  %v155_v37 = vld [vmem:[%s22386_s1 + $0x80] sm:$0x3] }
 0x105   :  { %17887 = vmatprep.subr.mxu0 %v22389_v0  ;;  %17892 = vmatprep.subr.mxu1 %v22389_v0 }
 0x106   :  { %17888 = vmatpush3.msra.mxu0 %v293_v40  ;;  %17893 = vmatpush3.msra.mxu1 %v294_v41  ;;  %v17401_v52 = vpop.f32.mrf.mxu0  ;;  %v17406_v53 = vpop.f32.mrf.mxu1  ;;  %v301_v41 = vld [vmem:[%s22385_s3 + $0x210] sm:$0xff] }
 0x107   :  { %17889 = vmatprep.mubr.msk.f32.mxu0 %vm18608_vm1, %v22389_v0  ;;  %17894 = vmatprep.mubr.msk.f32.mxu1 %vm18608_vm1, %v22389_v0  ;;  %v157_v53 = vld [vmem:[%s22386_s1 + $0x84] sm:$0x3] }
 0x108   :  { %v20031_v60 = vpop.f32.mrf.mxu0  ;;  %v20033_v61 = vpop.f32.mrf.mxu1  ;;  %17890 = vmatmul.mubr.msk.f32.vlgmr.msra.gmra.mxu0 %vm307_vm0, %v149_v48  ;;  %17895 = vmatmul.mubr.msk.f32.vlgmr.msra.gmra.mxu1 %vm307_vm0, %v150_v49  ;;  %v302_v48 = vld [vmem:[%s22385_s3 + $0x218] sm:$0xff] }
 0x109   :  { %17897 = vmatprep.subr.mxu0 %v22389_v0  ;;  %17902 = vmatprep.subr.mxu1 %v22389_v0 }
 0x10a   :  { %17898 = vmatpush3.msra.mxu0 %v295_v54  ;;  %17903 = vmatpush3.msra.mxu1 %v296_v57  ;;  %v17411_v1 = vpop.f32.mrf.mxu0  ;;  %v17416_v6 = vpop.f32.mrf.mxu1  ;;  %v158_v54 = vld [vmem:[%s22386_s1 + $0x86] sm:$0x3] }
 0x10b   :  { %17899 = vmatprep.mubr.msk.f32.mxu0 %vm18608_vm1, %v22389_v0  ;;  %17904 = vmatprep.mubr.msk.f32.mxu1 %vm18608_vm1, %v22389_v0  ;;  %v304_v1 = vld [vmem:[%s22385_s3 + $0x228] sm:$0xff] }
 0x10c   :  { %v20055_v9 = vpop.f32.mrf.mxu0  ;;  %v20057_v12 = vpop.f32.mrf.mxu1  ;;  %17900 = vmatmul.mubr.msk.f32.vlgmr.msra.gmra.mxu0 %vm307_vm0, %v151_v62  ;;  %17905 = vmatmul.mubr.msk.f32.vlgmr.msra.gmra.mxu1 %vm307_vm0, %v152_v63  ;;  %v303_v63 = vld [vmem:[%s22385_s3 + $0x220] sm:$0xff] }
 0x10d   :  { %17907 = vmatprep.subr.mxu0 %v22389_v0  ;;  %17912 = vmatprep.subr.mxu1 %v22389_v0 }
 0x10e   :  { %17908 = vmatpush3.msra.mxu0 %v297_v7  ;;  %17913 = vmatpush3.msra.mxu1 %v298_v8  ;;  %v17421_v21 = vpop.f32.mrf.mxu0  ;;  %v17426_v22 = vpop.f32.mrf.mxu1  ;;  %v159_v8 = vld [vmem:[%s22386_s1 + $0x88] sm:$0x3] }
 0x10f   :  { %17909 = vmatprep.mubr.msk.f32.mxu0 %vm18608_vm1, %v22389_v0  ;;  %17914 = vmatprep.mubr.msk.f32.mxu1 %vm18608_vm1, %v22389_v0  ;;  %v305_v22 = vld [vmem:[%s22385_s3 + $0x230] sm:$0xff] }
 0x110   :  { %v20079_v29 = vpop.f32.mrf.mxu0  ;;  %v20081_v32 = vpop.f32.mrf.mxu1  ;;  %17910 = vmatmul.mubr.msk.f32.vlgmr.msra.gmra.mxu0 %vm307_vm0, %v153_v15  ;;  %17915 = vmatmul.mubr.msk.f32.vlgmr.msra.gmra.mxu1 %vm307_vm0, %v154_v20  ;;  %v160_v15 = vld [vmem:[%s22386_s1 + $0x8a] sm:$0x3] }
 0x111   :  { %17917 = vmatprep.subr.mxu0 %v22389_v0  ;;  %17922 = vmatprep.subr.mxu1 %v22389_v0 }
 0x112   :  { %17918 = vmatpush3.msra.mxu0 %v299_v25  ;;  %17923 = vmatpush3.msra.mxu1 %v300_v28  ;;  %v17431_v39 = vpop.f32.mrf.mxu0  ;;  %v17436_v40 = vpop.f32.mrf.mxu1  ;;  %v306_v25 = vld [vmem:[%s22385_s3 + $0x238] sm:$0xff] }
 0x113   :  { %17919 = vmatprep.mubr.msk.f32.mxu0 %vm18608_vm1, %v22389_v0  ;;  %17924 = vmatprep.mubr.msk.f32.mxu1 %vm18608_vm1, %v22389_v0  ;;  %v162_v39 = vld [vmem:[%s22386_s1 + $0x8e] sm:$0x3]  ;;  %v18319_v40 = vld [vmem:[%s22383_s2] sm:$0xff] }
 0x114   :  { %v20103_v49 = vpop.f32.mrf.mxu0  ;;  %v20105_v52 = vpop.f32.mrf.mxu1  ;;  %17920 = vmatmul.mubr.msk.f32.vlgmr.msra.gmra.mxu0 %vm307_vm0, %v155_v37  ;;  %17925 = vmatmul.mubr.msk.f32.vlgmr.msra.gmra.mxu1 %vm307_vm0, %v156_v38  ;;  %v161_v38 = vld [vmem:[%s22386_s1 + $0x8c] sm:$0x3] }
 0x115   :  { %17927 = vmatprep.subr.mxu0 %v22389_v0  ;;  %17932 = vmatprep.subr.mxu1 %v22389_v0 }
 0x116   :  { %17928 = vmatpush3.msra.mxu0 %v301_v41  ;;  %17933 = vmatpush3.msra.mxu1 %v302_v48  ;;  %v17441_v57 = vpop.f32.mrf.mxu0  ;;  %v17446_v62 = vpop.f32.mrf.mxu1  ;;  %v18320_v41 = vld [vmem:[%s22385_s3] sm:$0xff] }
 0x117   :  { %17929 = vmatprep.mubr.msk.f32.mxu0 %vm18608_vm1, %v22389_v0  ;;  %17934 = vmatprep.mubr.msk.f32.mxu1 %vm18608_vm1, %v22389_v0  ;;  %v10892_v48 = vadd.f32 %v18320_v41, %v18319_v40  ;;  %v18327_v41 = vld [vmem:[%s22383_s2 + $0x10] sm:$0xff] }
 0x118   :  { %v20127_v6 = vpop.f32.mrf.mxu0  ;;  %v20129_v7 = vpop.f32.mrf.mxu1  ;;  %17930 = vmatmul.mubr.msk.f32.vlgmr.msra.gmra.mxu0 %vm307_vm0, %v157_v53  ;;  %17935 = vmatmul.mubr.msk.f32.vlgmr.msra.gmra.mxu1 %vm307_vm0, %v158_v54  ;;  %v18321_v53 = vld [vmem:[%s22383_s2 + $0x8] sm:$0xff] }
 0x119   :  { %17937 = vmatprep.subr.mxu0 %v22389_v0  ;;  %17942 = vmatprep.subr.mxu1 %v22389_v0  ;;  %v18322_v54 = vld [vmem:[%s22385_s3 + $0x8] sm:$0xff] }
 0x11a   :  { %17938 = vmatpush3.msra.mxu0 %v303_v63  ;;  %17943 = vmatpush3.msra.mxu1 %v304_v1  ;;  %v17451_v20 = vpop.f32.mrf.mxu0  ;;  %v17456_v21 = vpop.f32.mrf.mxu1  ;;  %v10893_v57 = vadd.f32 %v18322_v54, %v18321_v53  ;;  %v18323_v1 = vld [vmem:[%s22384_s0] sm:$0x3]  ;;  %v18328_v53 = vld [vmem:[%s22385_s3 + $0x10] sm:$0xff] }
 0x11b   :  { %17939 = vmatprep.mubr.msk.f32.mxu0 %vm18608_vm1, %v22389_v0  ;;  %17944 = vmatprep.mubr.msk.f32.mxu1 %vm18608_vm1, %v22389_v0  ;;  %v18325_v20 = vld [vmem:[%s22384_s0 + $0x2] sm:$0x3]  ;;  %v10894_v54 = vadd.f32 %v18328_v53, %v18327_v41 }
 0x11c   :  { %v20151_v28 = vpop.f32.mrf.mxu0  ;;  %v20153_v37 = vpop.f32.mrf.mxu1  ;;  %17940 = vmatmul.mubr.msk.f32.vlgmr.msra.gmra.mxu0 %vm307_vm0, %v159_v8  ;;  %17945 = vmatmul.mubr.msk.f32.vlgmr.msra.gmra.mxu1 %vm307_vm0, %v160_v15  ;;  %v18324_v8 = vld [vmem:[%s22386_s1] sm:$0x3]  ;;  %v18326_v21 = vld [vmem:[%s22386_s1 + $0x2] sm:$0x3] }
 0x11d   :  { %17947 = vmatprep.subr.mxu0 %v22389_v0  ;;  %17952 = vmatprep.subr.mxu1 %v22389_v0  ;;  %v10820_v15 = vadd.f32 %v18324_v8, %v18323_v1  ;;  %v18331_v8 = vld [vmem:[%s22384_s0 + $0x4] sm:$0x3] }
 0x11e   :  { %17948 = vmatpush3.msra.mxu0 %v305_v22  ;;  %17953 = vmatpush3.msra.mxu1 %v306_v25  ;;  %v17461_v62 = vpop.f32.mrf.mxu0  ;;  %v17466_v63 = vpop.f32.mrf.mxu1  ;;  %v10821_v22 = vadd.f32 %v18326_v21, %v18325_v20  ;;  %v18332_v20 = vld [vmem:[%s22386_s1 + $0x4] sm:$0x3] }
 0x11f   :  { %17949 = vmatprep.mubr.msk.f32.mxu0 %vm18608_vm1, %v22389_v0  ;;  %17954 = vmatprep.mubr.msk.f32.mxu1 %vm18608_vm1, %v22389_v0  ;;  %v18329_v62 = vld [vmem:[%s22383_s2 + $0x18] sm:$0xff]  ;;  %v10822_v21 = vadd.f32 %v18332_v20, %v18331_v8  ;;  %v18337_v8 = vld [vmem:[%s22383_s2 + $0x28] sm:$0xff] }
 0x120   :  { %v20193_v25 = vpop.f32.mrf.mxu0  ;;  %v20195_v40 = vpop.f32.mrf.mxu1  ;;  %17950 = vmatmul.mubr.msk.f32.vlgmr.msra.gmra.mxu0 %vm307_vm0, %v161_v38  ;;  %17955 = vmatmul.mubr.msk.f32.vlgmr.msra.gmra.mxu1 %vm307_vm0, %v162_v39  ;;  %v18330_v38 = vld [vmem:[%s22385_s3 + $0x18] sm:$0xff] }
 0x121   :  { %17957 = vmatprep.subr.mxu0 %v22389_v0  ;;  %17962 = vmatprep.subr.mxu1 %v22389_v0  ;;  %v10895_v39 = vadd.f32 %v18330_v38, %v18329_v62  ;;  %v18335_v38 = vld [vmem:[%s22383_s2 + $0x20] sm:$0xff] }
 0x122   :  { %17958 = vmatpush3.msra.mxu0 %v10892_v48  ;;  %17963 = vmatpush3.msra.mxu1 %v10893_v57  ;;  %v17471_v63 = vpop.f32.mrf.mxu0  ;;  %v17476_v1 = vpop.f32.mrf.mxu1  ;;  %v18333_v48 = vld [vmem:[%s22384_s0 + $0x6] sm:$0x3] }
 0x123   :  { %17959 = vmatprep.mubr.msk.f32.mxu0 %vm18608_vm1, %v22389_v0  ;;  %17964 = vmatprep.mubr.msk.f32.mxu1 %vm18608_vm1, %v22389_v0  ;;  %v18334_v57 = vld [vmem:[%s22386_s1 + $0x6] sm:$0x3] }
 0x124   :  { %v10823_v41 = vadd.f32 %v18334_v57, %v18333_v48  ;;  %v20229_v53 = vpop.f32.mrf.mxu0  ;;  %v20231_v62 = vpop.f32.mrf.mxu1  ;;  %17960 = vmatmul.mubr.msk.f32.vlgmr.msra.gmra.mxu0 %vm307_vm0, %v10820_v15  ;;  %17965 = vmatmul.mubr.msk.f32.vlgmr.msra.gmra.mxu1 %vm307_vm0, %v10821_v22  ;;  %v18336_v63 = vld [vmem:[%s22385_s3 + $0x20] sm:$0xff]  ;;  %v18338_v15 = vld [vmem:[%s22385_s3 + $0x28] sm:$0xff] }
 0x125   :  { %22487 = vst [vmem:[#allocation3_spill] sm:$0xff] %v20229_v53  ;;  %22488 = vst [vmem:[#allocation4_spill] sm:$0xff] %v20231_v62  ;;  %17967 = vmatprep.subr.mxu0 %v22389_v0  ;;  %17972 = vmatprep.subr.mxu1 %v22389_v0  ;;  %v10896_v1 = vadd.f32 %v18336_v63, %v18335_v38  ;;  %v10897_v22 = vadd.f32 %v18338_v15, %v18337_v8  ;;  %v18339_v57 = vld [vmem:[%s22384_s0 + $0x8] sm:$0x3] }
 0x126   :  { %17968 = vmatpush3.msra.mxu0 %v10894_v54  ;;  %17973 = vmatpush3.msra.mxu1 %v10895_v39  ;;  %v17481_v20 = vpop.f32.mrf.mxu0  ;;  %v17486_v48 = vpop.f32.mrf.mxu1  ;;  %v18340_v38 = vld [vmem:[%s22386_s1 + $0x8] sm:$0x3]  ;;  %v18341_v54 = vld [vmem:[%s22384_s0 + $0xa] sm:$0x3] }
 0x127   :  { %17969 = vmatprep.mubr.msk.f32.mxu0 %vm18608_vm1, %v22389_v0  ;;  %17974 = vmatprep.mubr.msk.f32.mxu1 %vm18608_vm1, %v22389_v0  ;;  %v10824_v63 = vadd.f32 %v18340_v38, %v18339_v57  ;;  %v18342_v39 = vld [vmem:[%s22386_s1 + $0xa] sm:$0x3]  ;;  %v18343_v48 = vld [vmem:[%s22383_s2 + $0x30] sm:$0xff] }
 0x128   :  { %v10825_v8 = vadd.f32 %v18342_v39, %v18341_v54  ;;  %v20265_v15 = vpop.f32.mrf.mxu0  ;;  %v20267_v20 = vpop.f32.mrf.mxu1  ;;  %17970 = vmatmul.mubr.msk.f32.vlgmr.msra.gmra.mxu0 %vm307_vm0, %v10822_v21  ;;  %17975 = vmatmul.mubr.msk.f32.vlgmr.msra.gmra.mxu1 %vm307_vm0, %v10823_v41  ;;  %v18344_v57 = vld [vmem:[%s22385_s3 + $0x30] sm:$0xff]  ;;  %v18345_v54 = vld [vmem:[%s22383_s2 + $0x38] sm:$0xff] }
 0x129   :  { %22489 = vst [vmem:[#allocation5_spill] sm:$0xff] %v20265_v15  ;;  %22490 = vst [vmem:[#allocation6_spill] sm:$0xff] %v20267_v20  ;;  %17977 = vmatprep.subr.mxu0 %v22389_v0  ;;  %17982 = vmatprep.subr.mxu1 %v22389_v0  ;;  %v10898_v38 = vadd.f32 %v18344_v57, %v18343_v48  ;;  %v18346_v21 = vld [vmem:[%s22385_s3 + $0x38] sm:$0xff]  ;;  %v22491_v20 = vmov 0.0   ;;  %v18347_v48 = vld [vmem:[%s22384_s0 + $0xc] sm:$0x3] }
 0x12a   :  { %v10899_v41 = vadd.f32 %v18346_v21, %v18345_v54  ;;  %17978 = vmatpush3.msra.mxu0 %v10896_v1  ;;  %17983 = vmatpush3.msra.mxu1 %v10897_v22  ;;  %v17491_v39 = vpop.f32.mrf.mxu0  ;;  %v17496_v0 = vpop.f32.mrf.mxu1  ;;  %v18348_v57 = vld [vmem:[%s22386_s1 + $0xc] sm:$0x3]  ;;  %v18349_v1 = vld [vmem:[%s22384_s0 + $0xe] sm:$0x3] }
 0x12b   :  { %17979 = vmatprep.mubr.msk.f32.mxu0 %vm18608_vm1, %v22491_v20  ;;  %17984 = vmatprep.mubr.msk.f32.mxu1 %vm18608_vm1, %v22491_v20  ;;  %v10826_v15 = vadd.f32 %v18348_v57, %v18347_v48  ;;  %v18350_v0 = vld [vmem:[%s22386_s1 + $0xe] sm:$0x3]  ;;  %v18351_v39 = vld [vmem:[%s22383_s2 + $0x40] sm:$0xff] }
 0x12c   :  { %v10827_v22 = vadd.f32 %v18350_v0, %v18349_v1  ;;  %v20301_v54 = vpop.f32.mrf.mxu0  ;;  %v20303_v21 = vpop.f32.mrf.mxu1  ;;  %17980 = vmatmul.mubr.msk.f32.vlgmr.msra.gmra.mxu0 %vm307_vm0, %v10824_v63  ;;  %17985 = vmatmul.mubr.msk.f32.vlgmr.msra.gmra.mxu1 %vm307_vm0, %v10825_v8  ;;  %v18352_v48 = vld [vmem:[%s22385_s3 + $0x40] sm:$0xff]  ;;  %v18353_v1 = vld [vmem:[%s22383_s2 + $0x48] sm:$0xff] }
 0x12d   :  { %22492 = vst [vmem:[#allocation7_spill] sm:$0xff] %v20301_v54  ;;  %22493 = vst [vmem:[#allocation8_spill] sm:$0xff] %v20303_v21  ;;  %17987 = vmatprep.subr.mxu0 %v22491_v20  ;;  %17992 = vmatprep.subr.mxu1 %v22491_v20  ;;  %v10900_v57 = vadd.f32 %v18352_v48, %v18351_v39  ;;  %v18354_v63 = vld [vmem:[%s22385_s3 + $0x48] sm:$0xff]  ;;  %v18355_v39 = vld [vmem:[%s22384_s0 + $0x10] sm:$0x3] }
 0x12e   :  { %v10901_v8 = vadd.f32 %v18354_v63, %v18353_v1  ;;  %17988 = vmatpush3.msra.mxu0 %v10898_v38  ;;  %17993 = vmatpush3.msra.mxu1 %v10899_v41  ;;  %v17501_v0 = vpop.f32.mrf.mxu0  ;;  %v17506_v21 = vpop.f32.mrf.mxu1  ;;  %v18356_v48 = vld [vmem:[%s22386_s1 + $0x10] sm:$0x3]  ;;  %v18357_v38 = vld [vmem:[%s22384_s0 + $0x12] sm:$0x3] }
 0x12f   :  { %17989 = vmatprep.mubr.msk.f32.mxu0 %vm18608_vm1, %v22491_v20  ;;  %17994 = vmatprep.mubr.msk.f32.mxu1 %vm18608_vm1, %v22491_v20  ;;  %v10828_v54 = vadd.f32 %v18356_v48, %v18355_v39  ;;  %v18358_v41 = vld [vmem:[%s22386_s1 + $0x12] sm:$0x3] }
 0x130   :  { %v10829_v21 = vadd.f32 %v18358_v41, %v18357_v38  ;;  %v20337_v1 = vpop.f32.mrf.mxu0  ;;  %v20339_v63 = vpop.f32.mrf.mxu1  ;;  %17990 = vmatmul.mubr.msk.f32.vlgmr.msra.gmra.mxu0 %vm307_vm0, %v10826_v15  ;;  %17995 = vmatmul.mubr.msk.f32.vlgmr.msra.gmra.mxu1 %vm307_vm0, %v10827_v22  ;;  %v18359_v0 = vld [vmem:[%s22383_s2 + $0x50] sm:$0xff]  ;;  %v18361_v38 = vld [vmem:[%s22383_s2 + $0x58] sm:$0xff] }
 0x131   :  { %22494 = vst [vmem:[#allocation9_spill] sm:$0xff] %v20337_v1  ;;  %22495 = vst [vmem:[#allocation10_spill] sm:$0xff] %v20339_v63  ;;  %17997 = vmatprep.subr.mxu0 %v22491_v20  ;;  %18002 = vmatprep.subr.mxu1 %v22491_v20  ;;  %v18360_v39 = vld [vmem:[%s22385_s3 + $0x50] sm:$0xff]  ;;  %v18362_v15 = vld [vmem:[%s22385_s3 + $0x58] sm:$0xff] }
 0x132   :  { %v10902_v48 = vadd.f32 %v18360_v39, %v18359_v0  ;;  %v10903_v22 = vadd.f32 %v18362_v15, %v18361_v38  ;;  %17998 = vmatpush3.msra.mxu0 %v10900_v57  ;;  %18003 = vmatpush3.msra.mxu1 %v10901_v8  ;;  %v17511_v41 = vpop.f32.mrf.mxu0  ;;  %v17516_v63 = vpop.f32.mrf.mxu1  ;;  %v18363_v0 = vld [vmem:[%s22384_s0 + $0x14] sm:$0x3]  ;;  %v18365_v57 = vld [vmem:[%s22384_s0 + $0x16] sm:$0x3] }
 0x133   :  { %17999 = vmatprep.mubr.msk.f32.mxu0 %vm18608_vm1, %v22491_v20  ;;  %18004 = vmatprep.mubr.msk.f32.mxu1 %vm18608_vm1, %v22491_v20  ;;  %v18364_v39 = vld [vmem:[%s22386_s1 + $0x14] sm:$0x3]  ;;  %v18366_v8 = vld [vmem:[%s22386_s1 + $0x16] sm:$0x3]  ;;  %v18367_v41 = vld [vmem:[%s22383_s2 + $0x60] sm:$0xff] }
 0x134   :  { %v10830_v1 = vadd.f32 %v18364_v39, %v18363_v0  ;;  %v10831_v63 = vadd.f32 %v18366_v8, %v18365_v57  ;;  %v20373_v38 = vpop.f32.mrf.mxu0  ;;  %v20375_v15 = vpop.f32.mrf.mxu1  ;;  %18000 = vmatmul.mubr.msk.f32.vlgmr.msra.gmra.mxu0 %vm307_vm0, %v10828_v54  ;;  %18005 = vmatmul.mubr.msk.f32.vlgmr.msra.gmra.mxu1 %vm307_vm0, %v10829_v21  ;;  %v18368_v0 = vld [vmem:[%s22385_s3 + $0x60] sm:$0xff]  ;;  %v18369_v57 = vld [vmem:[%s22383_s2 + $0x68] sm:$0xff] }
 0x135   :  { %22496 = vst [vmem:[#allocation11_spill] sm:$0xff] %v20373_v38  ;;  %22497 = vst [vmem:[#allocation12_spill] sm:$0xff] %v20375_v15  ;;  %18007 = vmatprep.subr.mxu0 %v22491_v20  ;;  %18012 = vmatprep.subr.mxu1 %v22491_v20  ;;  %v10904_v39 = vadd.f32 %v18368_v0, %v18367_v41  ;;  %v18370_v54 = vld [vmem:[%s22385_s3 + $0x68] sm:$0xff]  ;;  %v18371_v41 = vld [vmem:[%s22384_s0 + $0x18] sm:$0x3] }
 0x136   :  { %v10905_v21 = vadd.f32 %v18370_v54, %v18369_v57  ;;  %18008 = vmatpush3.msra.mxu0 %v10902_v48  ;;  %18013 = vmatpush3.msra.mxu1 %v10903_v22  ;;  %v17521_v8 = vpop.f32.mrf.mxu0  ;;  %v17526_v15 = vpop.f32.mrf.mxu1  ;;  %v18372_v0 = vld [vmem:[%s22386_s1 + $0x18] sm:$0x3]  ;;  %v18373_v48 = vld [vmem:[%s22384_s0 + $0x1a] sm:$0x3] }
 0x137   :  { %18009 = vmatprep.mubr.msk.f32.mxu0 %vm18608_vm1, %v22491_v20  ;;  %18014 = vmatprep.mubr.msk.f32.mxu1 %vm18608_vm1, %v22491_v20  ;;  %v10832_v38 = vadd.f32 %v18372_v0, %v18371_v41  ;;  %v18374_v22 = vld [vmem:[%s22386_s1 + $0x1a] sm:$0x3]  ;;  %v18375_v8 = vld [vmem:[%s22383_s2 + $0x70] sm:$0xff] }
 0x138   :  { %v10833_v15 = vadd.f32 %v18374_v22, %v18373_v48  ;;  %v20409_v57 = vpop.f32.mrf.mxu0  ;;  %v20411_v54 = vpop.f32.mrf.mxu1  ;;  %18010 = vmatmul.mubr.msk.f32.vlgmr.msra.gmra.mxu0 %vm307_vm0, %v10830_v1  ;;  %18015 = vmatmul.mubr.msk.f32.vlgmr.msra.gmra.mxu1 %vm307_vm0, %v10831_v63  ;;  %v18376_v41 = vld [vmem:[%s22385_s3 + $0x70] sm:$0xff]  ;;  %v18377_v48 = vld [vmem:[%s22383_s2 + $0x78] sm:$0xff] }
 0x139   :  { %22498 = vst [vmem:[#allocation13_spill] sm:$0xff] %v20409_v57  ;;  %22499 = vst [vmem:[#allocation14_spill] sm:$0xff] %v20411_v54  ;;  %18017 = vmatprep.subr.mxu0 %v22491_v20  ;;  %18022 = vmatprep.subr.mxu1 %v22491_v20  ;;  %v10906_v0 = vadd.f32 %v18376_v41, %v18375_v8  ;;  %v18378_v1 = vld [vmem:[%s22385_s3 + $0x78] sm:$0xff] }
 0x13a   :  { %v10907_v63 = vadd.f32 %v18378_v1, %v18377_v48  ;;  %18018 = vmatpush3.msra.mxu0 %v10904_v39  ;;  %18023 = vmatpush3.msra.mxu1 %v10905_v21  ;;  %v17531_v22 = vpop.f32.mrf.mxu0  ;;  %v17536_v54 = vpop.f32.mrf.mxu1  ;;  %v18379_v8 = vld [vmem:[%s22384_s0 + $0x1c] sm:$0x3]  ;;  %v18381_v39 = vld [vmem:[%s22384_s0 + $0x1e] sm:$0x3] }
 0x13b   :  { %18019 = vmatprep.mubr.msk.f32.mxu0 %vm18608_vm1, %v22491_v20  ;;  %18024 = vmatprep.mubr.msk.f32.mxu1 %vm18608_vm1, %v22491_v20  ;;  %v18380_v41 = vld [vmem:[%s22386_s1 + $0x1c] sm:$0x3]  ;;  %v18382_v21 = vld [vmem:[%s22386_s1 + $0x1e] sm:$0x3]  ;;  %v18383_v22 = vld [vmem:[%s22383_s2 + $0x80] sm:$0xff] }
 0x13c   :  { %v10834_v57 = vadd.f32 %v18380_v41, %v18379_v8  ;;  %v10835_v54 = vadd.f32 %v18382_v21, %v18381_v39  ;;  %v20445_v48 = vpop.f32.mrf.mxu0  ;;  %v20447_v1 = vpop.f32.mrf.mxu1  ;;  %18020 = vmatmul.mubr.msk.f32.vlgmr.msra.gmra.mxu0 %vm307_vm0, %v10832_v38  ;;  %18025 = vmatmul.mubr.msk.f32.vlgmr.msra.gmra.mxu1 %vm307_vm0, %v10833_v15  ;;  %v18384_v8 = vld [vmem:[%s22385_s3 + $0x80] sm:$0xff]  ;;  %v18385_v39 = vld [vmem:[%s22383_s2 + $0x88] sm:$0xff] }
 0x13d   :  { %22500 = vst [vmem:[#allocation15_spill] sm:$0xff] %v20445_v48  ;;  %22501 = vst [vmem:[#allocation16_spill] sm:$0xff] %v20447_v1  ;;  %18027 = vmatprep.subr.mxu0 %v22491_v20  ;;  %18032 = vmatprep.subr.mxu1 %v22491_v20  ;;  %v10908_v41 = vadd.f32 %v18384_v8, %v18383_v22  ;;  %v18386_v38 = vld [vmem:[%s22385_s3 + $0x88] sm:$0xff]  ;;  %v18387_v22 = vld [vmem:[%s22384_s0 + $0x20] sm:$0x3] }
 0x13e   :  { %v10909_v15 = vadd.f32 %v18386_v38, %v18385_v39  ;;  %18028 = vmatpush3.msra.mxu0 %v10906_v0  ;;  %18033 = vmatpush3.msra.mxu1 %v10907_v63  ;;  %v17541_v21 = vpop.f32.mrf.mxu0  ;;  %v17546_v1 = vpop.f32.mrf.mxu1  ;;  %v18388_v8 = vld [vmem:[%s22386_s1 + $0x20] sm:$0x3]  ;;  %v18389_v0 = vld [vmem:[%s22384_s0 + $0x22] sm:$0x3] }
 0x13f   :  { %18029 = vmatprep.mubr.msk.f32.mxu0 %vm18608_vm1, %v22491_v20  ;;  %18034 = vmatprep.mubr.msk.f32.mxu1 %vm18608_vm1, %v22491_v20  ;;  %v10836_v48 = vadd.f32 %v18388_v8, %v18387_v22  ;;  %v18390_v63 = vld [vmem:[%s22386_s1 + $0x22] sm:$0x3]  ;;  %v18391_v21 = vld [vmem:[%s22383_s2 + $0x90] sm:$0xff] }
 0x140   :  { %v10837_v1 = vadd.f32 %v18390_v63, %v18389_v0  ;;  %v20481_v39 = vpop.f32.mrf.mxu0  ;;  %v20483_v38 = vpop.f32.mrf.mxu1  ;;  %18030 = vmatmul.mubr.msk.f32.vlgmr.msra.gmra.mxu0 %vm307_vm0, %v10834_v57  ;;  %18035 = vmatmul.mubr.msk.f32.vlgmr.msra.gmra.mxu1 %vm307_vm0, %v10835_v54  ;;  %v18392_v22 = vld [vmem:[%s22385_s3 + $0x90] sm:$0xff]  ;;  %v18393_v0 = vld [vmem:[%s22383_s2 + $0x98] sm:$0xff] }
 0x141   :  { %22502 = vst [vmem:[#allocation17_spill] sm:$0xff] %v20481_v39  ;;  %22503 = vst [vmem:[#allocation18_spill] sm:$0xff] %v20483_v38  ;;  %18037 = vmatprep.subr.mxu0 %v22491_v20  ;;  %18042 = vmatprep.subr.mxu1 %v22491_v20  ;;  %v10910_v8 = vadd.f32 %v18392_v22, %v18391_v21  ;;  %v18394_v57 = vld [vmem:[%s22385_s3 + $0x98] sm:$0xff]  ;;  %v18395_v21 = vld [vmem:[%s22384_s0 + $0x24] sm:$0x3] }
 0x142   :  { %v10911_v54 = vadd.f32 %v18394_v57, %v18393_v0  ;;  %18038 = vmatpush3.msra.mxu0 %v10908_v41  ;;  %18043 = vmatpush3.msra.mxu1 %v10909_v15  ;;  %v17551_v63 = vpop.f32.mrf.mxu0  ;;  %v17556_v38 = vpop.f32.mrf.mxu1  ;;  %v18396_v22 = vld [vmem:[%s22386_s1 + $0x24] sm:$0x3]  ;;  %v18397_v41 = vld [vmem:[%s22384_s0 + $0x26] sm:$0x3] }
 0x143   :  { %18039 = vmatprep.mubr.msk.f32.mxu0 %vm18608_vm1, %v22491_v20  ;;  %18044 = vmatprep.mubr.msk.f32.mxu1 %vm18608_vm1, %v22491_v20  ;;  %v10838_v39 = vadd.f32 %v18396_v22, %v18395_v21  ;;  %v18398_v15 = vld [vmem:[%s22386_s1 + $0x26] sm:$0x3] }
 0x144   :  { %v10839_v38 = vadd.f32 %v18398_v15, %v18397_v41  ;;  %v20517_v0 = vpop.f32.mrf.mxu0  ;;  %v20519_v57 = vpop.f32.mrf.mxu1  ;;  %18040 = vmatmul.mubr.msk.f32.vlgmr.msra.gmra.mxu0 %vm307_vm0, %v10836_v48  ;;  %18045 = vmatmul.mubr.msk.f32.vlgmr.msra.gmra.mxu1 %vm307_vm0, %v10837_v1  ;;  %v18399_v63 = vld [vmem:[%s22383_s2 + $0xa0] sm:$0xff]  ;;  %v18401_v41 = vld [vmem:[%s22383_s2 + $0xa8] sm:$0xff] }
 0x145   :  { %22504 = vst [vmem:[#allocation19_spill] sm:$0xff] %v20517_v0  ;;  %22505 = vst [vmem:[#allocation20_spill] sm:$0xff] %v20519_v57  ;;  %18047 = vmatprep.subr.mxu0 %v22491_v20  ;;  %18052 = vmatprep.subr.mxu1 %v22491_v20  ;;  %v18400_v21 = vld [vmem:[%s22385_s3 + $0xa0] sm:$0xff]  ;;  %v18402_v48 = vld [vmem:[%s22385_s3 + $0xa8] sm:$0xff] }
 0x146   :  { %v10912_v22 = vadd.f32 %v18400_v21, %v18399_v63  ;;  %v10913_v1 = vadd.f32 %v18402_v48, %v18401_v41  ;;  %18048 = vmatpush3.msra.mxu0 %v10910_v8  ;;  %18053 = vmatpush3.msra.mxu1 %v10911_v54  ;;  %v17561_v15 = vpop.f32.mrf.mxu0  ;;  %v17566_v57 = vpop.f32.mrf.mxu1  ;;  %v18403_v63 = vld [vmem:[%s22384_s0 + $0x28] sm:$0x3]  ;;  %v18405_v8 = vld [vmem:[%s22384_s0 + $0x2a] sm:$0x3] }
 0x147   :  { %18049 = vmatprep.mubr.msk.f32.mxu0 %vm18608_vm1, %v22491_v20  ;;  %18054 = vmatprep.mubr.msk.f32.mxu1 %vm18608_vm1, %v22491_v20  ;;  %v18404_v21 = vld [vmem:[%s22386_s1 + $0x28] sm:$0x3]  ;;  %v18406_v54 = vld [vmem:[%s22386_s1 + $0x2a] sm:$0x3]  ;;  %v18407_v15 = vld [vmem:[%s22383_s2 + $0xb0] sm:$0xff] }
 0x148   :  { %v10840_v0 = vadd.f32 %v18404_v21, %v18403_v63  ;;  %v10841_v57 = vadd.f32 %v18406_v54, %v18405_v8  ;;  %v20553_v41 = vpop.f32.mrf.mxu0  ;;  %v20555_v48 = vpop.f32.mrf.mxu1  ;;  %18050 = vmatmul.mubr.msk.f32.vlgmr.msra.gmra.mxu0 %vm307_vm0, %v10838_v39  ;;  %18055 = vmatmul.mubr.msk.f32.vlgmr.msra.gmra.mxu1 %vm307_vm0, %v10839_v38  ;;  %v18408_v63 = vld [vmem:[%s22385_s3 + $0xb0] sm:$0xff]  ;;  %v18409_v8 = vld [vmem:[%s22383_s2 + $0xb8] sm:$0xff] }
 0x149   :  { %22506 = vst [vmem:[#allocation21_spill] sm:$0xff] %v20553_v41  ;;  %22507 = vst [vmem:[#allocation22_spill] sm:$0xff] %v20555_v48  ;;  %18057 = vmatprep.subr.mxu0 %v22491_v20  ;;  %18062 = vmatprep.subr.mxu1 %v22491_v20  ;;  %v10914_v21 = vadd.f32 %v18408_v63, %v18407_v15  ;;  %v18410_v39 = vld [vmem:[%s22385_s3 + $0xb8] sm:$0xff]  ;;  %v18411_v15 = vld [vmem:[%s22384_s0 + $0x2c] sm:$0x3] }
 0x14a   :  { %v10915_v38 = vadd.f32 %v18410_v39, %v18409_v8  ;;  %18058 = vmatpush3.msra.mxu0 %v10912_v22  ;;  %18063 = vmatpush3.msra.mxu1 %v10913_v1  ;;  %v17571_v54 = vpop.f32.mrf.mxu0  ;;  %v17576_v48 = vpop.f32.mrf.mxu1  ;;  %v18412_v63 = vld [vmem:[%s22386_s1 + $0x2c] sm:$0x3]  ;;  %v18413_v22 = vld [vmem:[%s22384_s0 + $0x2e] sm:$0x3] }
 0x14b   :  { %18059 = vmatprep.mubr.msk.f32.mxu0 %vm18608_vm1, %v22491_v20  ;;  %18064 = vmatprep.mubr.msk.f32.mxu1 %vm18608_vm1, %v22491_v20  ;;  %v10842_v41 = vadd.f32 %v18412_v63, %v18411_v15  ;;  %v18414_v1 = vld [vmem:[%s22386_s1 + $0x2e] sm:$0x3]  ;;  %v18415_v54 = vld [vmem:[%s22383_s2 + $0xc0] sm:$0xff] }
 0x14c   :  { %v10843_v48 = vadd.f32 %v18414_v1, %v18413_v22  ;;  %v20589_v8 = vpop.f32.mrf.mxu0  ;;  %v20591_v39 = vpop.f32.mrf.mxu1  ;;  %18060 = vmatmul.mubr.msk.f32.vlgmr.msra.gmra.mxu0 %vm307_vm0, %v10840_v0  ;;  %18065 = vmatmul.mubr.msk.f32.vlgmr.msra.gmra.mxu1 %vm307_vm0, %v10841_v57  ;;  %v18416_v15 = vld [vmem:[%s22385_s3 + $0xc0] sm:$0xff]  ;;  %v18417_v22 = vld [vmem:[%s22383_s2 + $0xc8] sm:$0xff] }
 0x14d   :  { %22508 = vst [vmem:[#allocation23_spill] sm:$0xff] %v20589_v8  ;;  %22509 = vst [vmem:[#allocation24_spill] sm:$0xff] %v20591_v39  ;;  %18067 = vmatprep.subr.mxu0 %v22491_v20  ;;  %18072 = vmatprep.subr.mxu1 %v22491_v20  ;;  %v10916_v63 = vadd.f32 %v18416_v15, %v18415_v54  ;;  %v18418_v0 = vld [vmem:[%s22385_s3 + $0xc8] sm:$0xff]  ;;  %v18419_v54 = vld [vmem:[%s22384_s0 + $0x30] sm:$0x3] }
 0x14e   :  { %v10917_v57 = vadd.f32 %v18418_v0, %v18417_v22  ;;  %18068 = vmatpush3.msra.mxu0 %v10914_v21  ;;  %18073 = vmatpush3.msra.mxu1 %v10915_v38  ;;  %v17581_v1 = vpop.f32.mrf.mxu0  ;;  %v17586_v39 = vpop.f32.mrf.mxu1  ;;  %v18420_v15 = vld [vmem:[%s22386_s1 + $0x30] sm:$0x3]  ;;  %v18421_v21 = vld [vmem:[%s22384_s0 + $0x32] sm:$0x3] }
 0x14f   :  { %18069 = vmatprep.mubr.msk.f32.mxu0 %vm18608_vm1, %v22491_v20  ;;  %18074 = vmatprep.mubr.msk.f32.mxu1 %vm18608_vm1, %v22491_v20  ;;  %v10844_v8 = vadd.f32 %v18420_v15, %v18419_v54  ;;  %v18422_v38 = vld [vmem:[%s22386_s1 + $0x32] sm:$0x3] }
 0x150   :  { %v10845_v39 = vadd.f32 %v18422_v38, %v18421_v21  ;;  %v20625_v22 = vpop.f32.mrf.mxu0  ;;  %v20627_v0 = vpop.f32.mrf.mxu1  ;;  %18070 = vmatmul.mubr.msk.f32.vlgmr.msra.gmra.mxu0 %vm307_vm0, %v10842_v41  ;;  %18075 = vmatmul.mubr.msk.f32.vlgmr.msra.gmra.mxu1 %vm307_vm0, %v10843_v48  ;;  %v18423_v1 = vld [vmem:[%s22383_s2 + $0xd0] sm:$0xff]  ;;  %v18425_v21 = vld [vmem:[%s22383_s2 + $0xd8] sm:$0xff] }
 0x151   :  { %22510 = vst [vmem:[#allocation25_spill] sm:$0xff] %v20625_v22  ;;  %22511 = vst [vmem:[#allocation26_spill] sm:$0xff] %v20627_v0  ;;  %18077 = vmatprep.subr.mxu0 %v22491_v20  ;;  %18082 = vmatprep.subr.mxu1 %v22491_v20  ;;  %v18424_v54 = vld [vmem:[%s22385_s3 + $0xd0] sm:$0xff]  ;;  %v18426_v41 = vld [vmem:[%s22385_s3 + $0xd8] sm:$0xff] }
 0x152   :  { %v10918_v15 = vadd.f32 %v18424_v54, %v18423_v1  ;;  %v10919_v48 = vadd.f32 %v18426_v41, %v18425_v21  ;;  %18078 = vmatpush3.msra.mxu0 %v10916_v63  ;;  %18083 = vmatpush3.msra.mxu1 %v10917_v57  ;;  %v17591_v38 = vpop.f32.mrf.mxu0  ;;  %v17596_v0 = vpop.f32.mrf.mxu1  ;;  %v18427_v1 = vld [vmem:[%s22384_s0 + $0x34] sm:$0x3]  ;;  %v18429_v63 = vld [vmem:[%s22384_s0 + $0x36] sm:$0x3] }
 0x153   :  { %18079 = vmatprep.mubr.msk.f32.mxu0 %vm18608_vm1, %v22491_v20  ;;  %18084 = vmatprep.mubr.msk.f32.mxu1 %vm18608_vm1, %v22491_v20  ;;  %v18428_v54 = vld [vmem:[%s22386_s1 + $0x34] sm:$0x3]  ;;  %v18430_v57 = vld [vmem:[%s22386_s1 + $0x36] sm:$0x3] }
 0x154   :  { %v10846_v22 = vadd.f32 %v18428_v54, %v18427_v1  ;;  %v10847_v0 = vadd.f32 %v18430_v57, %v18429_v63  ;;  %v20661_v21 = vpop.f32.mrf.mxu0  ;;  %v20663_v41 = vpop.f32.mrf.mxu1  ;;  %18080 = vmatmul.mubr.msk.f32.vlgmr.msra.gmra.mxu0 %vm307_vm0, %v10844_v8  ;;  %18085 = vmatmul.mubr.msk.f32.vlgmr.msra.gmra.mxu1 %vm307_vm0, %v10845_v39  ;;  %v18431_v54 = vld [vmem:[%s22383_s2 + $0xe0] sm:$0xff]  ;;  %v18433_v39 = vld [vmem:[%s22383_s2 + $0xe8] sm:$0xff] }
 0x155   :  { %22512 = vst [vmem:[#allocation27_spill] sm:$0xff] %v20661_v21  ;;  %22513 = vst [vmem:[#allocation28_spill] sm:$0xff] %v20663_v41  ;;  %v16220_v38 = vsub.f32 %v19623_v10, %v20661_v21  ;;  %v16221_v1 = vsub.f32 %v19625_v11, %v20663_v41  ;;  %18087 = vmatprep.subr.mxu0 %v22491_v20  ;;  %18092 = vmatprep.subr.mxu1 %v22491_v20  ;;  %v18432_v8 = vld [vmem:[%s22385_s3 + $0xe0] sm:$0xff]  ;;  %v18434_v57 = vld [vmem:[%s22385_s3 + $0xe8] sm:$0xff] }
 0x156   :  { %v10920_v63 = vadd.f32 %v18432_v8, %v18431_v54  ;;  %v10921_v41 = vadd.f32 %v18434_v57, %v18433_v39  ;;  %18088 = vmatpush3.msra.mxu0 %v10918_v15  ;;  %18093 = vmatpush3.msra.mxu1 %v10919_v48  ;;  %v17601_v21 = vpop.f32.mrf.mxu0  ;;  %v17606_v11 = vpop.f32.mrf.mxu1  ;;  %v18436_v15 = vld [vmem:[%s22386_s1 + $0x38] sm:$0x3] }
 0x157   :  { %16293 = vst.msk [vmem:[%s22387_s4] sm:$0x3] %vm16292_vm2, %v16220_v38  ;;  %16294 = vst.msk [vmem:[%s22387_s4 + $0x2] sm:$0x3] %vm16292_vm2, %v16221_v1  ;;  %18089 = vmatprep.mubr.msk.f32.mxu0 %vm18608_vm1, %v22491_v20  ;;  %18094 = vmatprep.mubr.msk.f32.mxu1 %vm18608_vm1, %v22491_v20  ;;  %v18435_v11 = vld [vmem:[%s22384_s0 + $0x38] sm:$0x3] }
 0x158   :  { %v10848_v48 = vadd.f32 %v18436_v15, %v18435_v11  ;;  %v18437_v21 = vld [vmem:[%s22384_s0 + $0x3a] sm:$0x3]  ;;  %v20709_v54 = vpop.f32.mrf.mxu0  ;;  %v20711_v8 = vpop.f32.mrf.mxu1  ;;  %18090 = vmatmul.mubr.msk.f32.vlgmr.msra.gmra.mxu0 %vm307_vm0, %v10846_v22  ;;  %18095 = vmatmul.mubr.msk.f32.vlgmr.msra.gmra.mxu1 %vm307_vm0, %v10847_v0  ;;  %v18439_v11 = vld [vmem:[%s22383_s2 + $0xf0] sm:$0xff] }
 0x159   :  { %v18438_v38 = vld [vmem:[%s22386_s1 + $0x3a] sm:$0x3]  ;;  %22514 = vst [vmem:[#allocation29_spill] sm:$0xff] %v20709_v54  ;;  %22515 = vst [vmem:[#allocation30_spill] sm:$0xff] %v20711_v8  ;;  %v16222_v39 = vsub.f32 %v19647_v18, %v20709_v54  ;;  %v16223_v57 = vsub.f32 %v19649_v19, %v20711_v8  ;;  %18097 = vmatprep.subr.mxu0 %v22491_v20  ;;  %18102 = vmatprep.subr.mxu1 %v22491_v20  ;;  %v18440_v22 = vld [vmem:[%s22385_s3 + $0xf0] sm:$0xff] }
 0x15a   :  { %v10849_v1 = vadd.f32 %v18438_v38, %v18437_v21  ;;  %v10922_v15 = vadd.f32 %v18440_v22, %v18439_v11  ;;  %v18441_v0 = vld [vmem:[%s22383_s2 + $0xf8] sm:$0xff]  ;;  %18098 = vmatpush3.msra.mxu0 %v10920_v63  ;;  %18103 = vmatpush3.msra.mxu1 %v10921_v41  ;;  %v17611_v8 = vpop.f32.mrf.mxu0  ;;  %v17616_v54 = vpop.f32.mrf.mxu1 }
 0x15b   :  { %v18442_v21 = vld [vmem:[%s22385_s3 + $0xf8] sm:$0xff]  ;;  %16295 = vst.msk [vmem:[%s22387_s4 + $0x4] sm:$0x3] %vm16292_vm2, %v16222_v39  ;;  %16296 = vst.msk [vmem:[%s22387_s4 + $0x6] sm:$0x3] %vm16292_vm2, %v16223_v57  ;;  %18099 = vmatprep.mubr.msk.f32.mxu0 %vm18608_vm1, %v22491_v20  ;;  %18104 = vmatprep.mubr.msk.f32.mxu1 %vm18608_vm1, %v22491_v20 }
 0x15c   :  { %v10923_v38 = vadd.f32 %v18442_v21, %v18441_v0  ;;  %v18443_v41 = vld [vmem:[%s22384_s0 + $0x3c] sm:$0x3]  ;;  %v18445_v8 = vld [vmem:[%s22384_s0 + $0x3e] sm:$0x3]  ;;  %v20757_v11 = vpop.f32.mrf.mxu0  ;;  %v20759_v22 = vpop.f32.mrf.mxu1  ;;  %18100 = vmatmul.mubr.msk.f32.vlgmr.msra.gmra.mxu0 %vm307_vm0, %v10848_v48  ;;  %18105 = vmatmul.mubr.msk.f32.vlgmr.msra.gmra.mxu1 %vm307_vm0, %v10849_v1  ;;  %v18448_v48 = vld [vmem:[%s22385_s3 + $0x100] sm:$0xff] }
 0x15d   :  { %v18444_v63 = vld [vmem:[%s22386_s1 + $0x3c] sm:$0x3]  ;;  %v18446_v39 = vld [vmem:[%s22386_s1 + $0x3e] sm:$0x3]  ;;  %22516 = vst [vmem:[#allocation31_spill] sm:$0xff] %v20757_v11  ;;  %22517 = vst [vmem:[#allocation32_spill] sm:$0xff] %v20759_v22  ;;  %v16224_v0 = vsub.f32 %v19671_v26, %v20757_v11  ;;  %v16225_v21 = vsub.f32 %v19673_v27, %v20759_v22  ;;  %18107 = vmatprep.subr.mxu0 %v22491_v20  ;;  %18112 = vmatprep.subr.mxu1 %v22491_v20 }
 0x15e   :  { %v10850_v54 = vadd.f32 %v18444_v63, %v18443_v41  ;;  %v10851_v57 = vadd.f32 %v18446_v39, %v18445_v8  ;;  %v18447_v41 = vld [vmem:[%s22383_s2 + $0x100] sm:$0xff]  ;;  %v18449_v1 = vld [vmem:[%s22383_s2 + $0x108] sm:$0xff]  ;;  %18108 = vmatpush3.msra.mxu0 %v10922_v15  ;;  %18113 = vmatpush3.msra.mxu1 %v10923_v38  ;;  %v17621_v22 = vpop.f32.mrf.mxu0  ;;  %v17626_v11 = vpop.f32.mrf.mxu1 }
 0x15f   :  { %v10924_v63 = vadd.f32 %v18448_v48, %v18447_v41  ;;  %v18450_v8 = vld [vmem:[%s22385_s3 + $0x108] sm:$0xff]  ;;  %16297 = vst.msk [vmem:[%s22387_s4 + $0x8] sm:$0x3] %vm16292_vm2, %v16224_v0  ;;  %16298 = vst.msk [vmem:[%s22387_s4 + $0xa] sm:$0x3] %vm16292_vm2, %v16225_v21  ;;  %18109 = vmatprep.mubr.msk.f32.mxu0 %vm18608_vm1, %v22491_v20  ;;  %18114 = vmatprep.mubr.msk.f32.mxu1 %vm18608_vm1, %v22491_v20 }
 0x160   :  { %v10925_v39 = vadd.f32 %v18450_v8, %v18449_v1  ;;  %v18451_v15 = vld [vmem:[%s22384_s0 + $0x40] sm:$0x3]  ;;  %v18453_v22 = vld [vmem:[%s22384_s0 + $0x42] sm:$0x3]  ;;  %v20805_v41 = vpop.f32.mrf.mxu0  ;;  %v20807_v48 = vpop.f32.mrf.mxu1  ;;  %18110 = vmatmul.mubr.msk.f32.vlgmr.msra.gmra.mxu0 %vm307_vm0, %v10850_v54  ;;  %18115 = vmatmul.mubr.msk.f32.vlgmr.msra.gmra.mxu1 %vm307_vm0, %v10851_v57  ;;  %v18456_v54 = vld [vmem:[%s22385_s3 + $0x110] sm:$0xff] }
 0x161   :  { %v18452_v38 = vld [vmem:[%s22386_s1 + $0x40] sm:$0x3]  ;;  %v18454_v0 = vld [vmem:[%s22386_s1 + $0x42] sm:$0x3]  ;;  %22518 = vst [vmem:[#allocation33_spill] sm:$0xff] %v20805_v41  ;;  %22519 = vst [vmem:[#allocation34_spill] sm:$0xff] %v20807_v48  ;;  %v16226_v1 = vsub.f32 %v19695_v34, %v20805_v41  ;;  %v16227_v8 = vsub.f32 %v19697_v35, %v20807_v48  ;;  %18117 = vmatprep.subr.mxu0 %v22491_v20  ;;  %18122 = vmatprep.subr.mxu1 %v22491_v20 }
 0x162   :  { %v10852_v11 = vadd.f32 %v18452_v38, %v18451_v15  ;;  %v10853_v21 = vadd.f32 %v18454_v0, %v18453_v22  ;;  %v18455_v15 = vld [vmem:[%s22383_s2 + $0x110] sm:$0xff]  ;;  %v18457_v57 = vld [vmem:[%s22383_s2 + $0x118] sm:$0xff]  ;;  %18118 = vmatpush3.msra.mxu0 %v10924_v63  ;;  %18123 = vmatpush3.msra.mxu1 %v10925_v39  ;;  %v17631_v48 = vpop.f32.mrf.mxu0  ;;  %v17636_v41 = vpop.f32.mrf.mxu1  ;;  %v18459_v63 = vld [vmem:[%s22384_s0 + $0x44] sm:$0x3] }
 0x163   :  { %v10926_v38 = vadd.f32 %v18456_v54, %v18455_v15  ;;  %v18458_v22 = vld [vmem:[%s22385_s3 + $0x118] sm:$0xff]  ;;  %16299 = vst.msk [vmem:[%s22387_s4 + $0xc] sm:$0x3] %vm16292_vm2, %v16226_v1  ;;  %16300 = vst.msk [vmem:[%s22387_s4 + $0xe] sm:$0x3] %vm16292_vm2, %v16227_v8  ;;  %18119 = vmatprep.mubr.msk.f32.mxu0 %vm18608_vm1, %v22491_v20  ;;  %18124 = vmatprep.mubr.msk.f32.mxu1 %vm18608_vm1, %v22491_v20 }
 0x164   :  { %v10927_v0 = vadd.f32 %v18458_v22, %v18457_v57  ;;  %v18460_v39 = vld [vmem:[%s22386_s1 + $0x44] sm:$0x3]  ;;  %v18461_v48 = vld [vmem:[%s22384_s0 + $0x46] sm:$0x3]  ;;  %v20853_v15 = vpop.f32.mrf.mxu0  ;;  %v20855_v54 = vpop.f32.mrf.mxu1  ;;  %18120 = vmatmul.mubr.msk.f32.vlgmr.msra.gmra.mxu0 %vm307_vm0, %v10852_v11  ;;  %18125 = vmatmul.mubr.msk.f32.vlgmr.msra.gmra.mxu1 %vm307_vm0, %v10853_v21  ;;  %v18465_v21 = vld [vmem:[%s22383_s2 + $0x128] sm:$0xff] }
 0x165   :  { %v10854_v41 = vadd.f32 %v18460_v39, %v18459_v63  ;;  %v18462_v1 = vld [vmem:[%s22386_s1 + $0x46] sm:$0x3]  ;;  %22520 = vst [vmem:[#allocation35_spill] sm:$0xff] %v20853_v15  ;;  %22521 = vst [vmem:[#allocation36_spill] sm:$0xff] %v20855_v54  ;;  %v16228_v57 = vsub.f32 %v19719_v42, %v20853_v15  ;;  %v16229_v22 = vsub.f32 %v19721_v43, %v20855_v54  ;;  %18127 = vmatprep.subr.mxu0 %v22491_v20 }
 0x166   :  { %v10855_v8 = vadd.f32 %v18462_v1, %v18461_v48  ;;  %18132 = vmatprep.subr.mxu1 %v22491_v20  ;;  %v18463_v63 = vld [vmem:[%s22383_s2 + $0x120] sm:$0xff]  ;;  %v18466_v48 = vld [vmem:[%s22385_s3 + $0x128] sm:$0xff]  ;;  %18128 = vmatpush3.msra.mxu0 %v10926_v38  ;;  %v17641_v54 = vpop.f32.mrf.mxu0  ;;  %v17646_v15 = vpop.f32.mrf.mxu1 }
 0x167   :  { %v18464_v11 = vld [vmem:[%s22385_s3 + $0x120] sm:$0xff]  ;;  %v10929_v1 = vadd.f32 %v18466_v48, %v18465_v21  ;;  %18133 = vmatpush3.msra.mxu1 %v10927_v0  ;;  %16301 = vst.msk [vmem:[%s22387_s4 + $0x10] sm:$0x3] %vm16292_vm2, %v16228_v57  ;;  %16302 = vst.msk [vmem:[%s22387_s4 + $0x12] sm:$0x3] %vm16292_vm2, %v16229_v22  ;;  %18129 = vmatprep.mubr.msk.f32.mxu0 %vm18608_vm1, %v22491_v20 }
 0x168   :  { %v10928_v39 = vadd.f32 %v18464_v11, %v18463_v63  ;;  %18134 = vmatprep.mubr.msk.f32.mxu1 %vm18608_vm1, %v22491_v20  ;;  %v18467_v38 = vld [vmem:[%s22384_s0 + $0x48] sm:$0x3]  ;;  %v18469_v54 = vld [vmem:[%s22384_s0 + $0x4a] sm:$0x3]  ;;  %v20901_v63 = vpop.f32.mrf.mxu0  ;;  %v20903_v11 = vpop.f32.mrf.mxu1  ;;  %18130 = vmatmul.mubr.msk.f32.vlgmr.msra.gmra.mxu0 %vm307_vm0, %v10854_v41  ;;  %v18472_v41 = vld [vmem:[%s22385_s3 + $0x130] sm:$0xff] }
 0x169   :  { %v18468_v0 = vld [vmem:[%s22386_s1 + $0x48] sm:$0x3]  ;;  %v18470_v57 = vld [vmem:[%s22386_s1 + $0x4a] sm:$0x3]  ;;  %22522 = vst [vmem:[#allocation37_spill] sm:$0xff] %v20901_v63  ;;  %22523 = vst [vmem:[#allocation38_spill] sm:$0xff] %v20903_v11  ;;  %18135 = vmatmul.mubr.msk.f32.vlgmr.msra.gmra.mxu1 %vm307_vm0, %v10855_v8  ;;  %v16230_v21 = vsub.f32 %v19743_v50, %v20901_v63  ;;  %v16231_v48 = vsub.f32 %v19745_v51, %v20903_v11  ;;  %18137 = vmatprep.subr.mxu0 %v22491_v20 }
 0x16a   :  { %v10856_v15 = vadd.f32 %v18468_v0, %v18467_v38  ;;  %v10857_v22 = vadd.f32 %v18470_v57, %v18469_v54  ;;  %18142 = vmatprep.subr.mxu1 %v22491_v20  ;;  %v18471_v38 = vld [vmem:[%s22383_s2 + $0x130] sm:$0xff]  ;;  %v18473_v8 = vld [vmem:[%s22383_s2 + $0x138] sm:$0xff]  ;;  %18138 = vmatpush3.msra.mxu0 %v10928_v39  ;;  %v17651_v11 = vpop.f32.mrf.mxu0  ;;  %v17656_v63 = vpop.f32.mrf.mxu1  ;;  %v18475_v39 = vld [vmem:[%s22384_s0 + $0x4c] sm:$0x3] }
 0x16b   :  { %v10930_v0 = vadd.f32 %v18472_v41, %v18471_v38  ;;  %v18474_v54 = vld [vmem:[%s22385_s3 + $0x138] sm:$0xff]  ;;  %18143 = vmatpush3.msra.mxu1 %v10929_v1  ;;  %16303 = vst.msk [vmem:[%s22387_s4 + $0x14] sm:$0x3] %vm16292_vm2, %v16230_v21  ;;  %16304 = vst.msk [vmem:[%s22387_s4 + $0x16] sm:$0x3] %vm16292_vm2, %v16231_v48  ;;  %18139 = vmatprep.mubr.msk.f32.mxu0 %vm18608_vm1, %v22491_v20 }
 0x16c   :  { %v10931_v57 = vadd.f32 %v18474_v54, %v18473_v8  ;;  %18144 = vmatprep.mubr.msk.f32.mxu1 %vm18608_vm1, %v22491_v20  ;;  %v18476_v1 = vld [vmem:[%s22386_s1 + $0x4c] sm:$0x3]  ;;  %v18477_v11 = vld [vmem:[%s22384_s0 + $0x4e] sm:$0x3]  ;;  %v20949_v38 = vpop.f32.mrf.mxu0  ;;  %v20951_v41 = vpop.f32.mrf.mxu1  ;;  %18140 = vmatmul.mubr.msk.f32.vlgmr.msra.gmra.mxu0 %vm307_vm0, %v10856_v15  ;;  %v18480_v15 = vld [vmem:[%s22385_s3 + $0x140] sm:$0xff] }
 0x16d   :  { %v10858_v63 = vadd.f32 %v18476_v1, %v18475_v39  ;;  %v18478_v21 = vld [vmem:[%s22386_s1 + $0x4e] sm:$0x3]  ;;  %22524 = vst [vmem:[#allocation39_spill] sm:$0xff] %v20949_v38  ;;  %22525 = vst [vmem:[#allocation40_spill] sm:$0xff] %v20951_v41  ;;  %18145 = vmatmul.mubr.msk.f32.vlgmr.msra.gmra.mxu1 %vm307_vm0, %v10857_v22  ;;  %v16232_v8 = vsub.f32 %v19767_v58, %v20949_v38  ;;  %v16233_v54 = vsub.f32 %v19769_v59, %v20951_v41  ;;  %v18479_v39 = vld [vmem:[%s22383_s2 + $0x140] sm:$0xff] }
 0x16e   :  { %v10859_v48 = vadd.f32 %v18478_v21, %v18477_v11  ;;  %18147 = vmatprep.subr.mxu0 %v22491_v20  ;;  %18152 = vmatprep.subr.mxu1 %v22491_v20  ;;  %v10932_v1 = vadd.f32 %v18480_v15, %v18479_v39  ;;  %v18481_v22 = vld [vmem:[%s22383_s2 + $0x148] sm:$0xff]  ;;  %v17661_v41 = vpop.f32.mrf.mxu0  ;;  %v17666_v38 = vpop.f32.mrf.mxu1 }
 0x16f   :  { %v18482_v11 = vld [vmem:[%s22385_s3 + $0x148] sm:$0xff]  ;;  %18148 = vmatpush3.msra.mxu0 %v10930_v0  ;;  %18153 = vmatpush3.msra.mxu1 %v10931_v57  ;;  %16305 = vst.msk [vmem:[%s22387_s4 + $0x18] sm:$0x3] %vm16292_vm2, %v16232_v8  ;;  %16306 = vst.msk [vmem:[%s22387_s4 + $0x1a] sm:$0x3] %vm16292_vm2, %v16233_v54 }
 0x170   :  { %v10933_v21 = vadd.f32 %v18482_v11, %v18481_v22  ;;  %18149 = vmatprep.mubr.msk.f32.mxu0 %vm18608_vm1, %v22491_v20  ;;  %18154 = vmatprep.mubr.msk.f32.mxu1 %vm18608_vm1, %v22491_v20  ;;  %v18483_v0 = vld [vmem:[%s22384_s0 + $0x50] sm:$0x3]  ;;  %v18485_v41 = vld [vmem:[%s22384_s0 + $0x52] sm:$0x3]  ;;  %v20997_v39 = vpop.f32.mrf.mxu0  ;;  %v20999_v15 = vpop.f32.mrf.mxu1 }
 0x171   :  { %v18484_v57 = vld [vmem:[%s22386_s1 + $0x50] sm:$0x3]  ;;  %v18486_v8 = vld [vmem:[%s22386_s1 + $0x52] sm:$0x3]  ;;  %22526 = vst [vmem:[#allocation41_spill] sm:$0xff] %v20997_v39  ;;  %22527 = vst [vmem:[#allocation42_spill] sm:$0xff] %v20999_v15  ;;  %18150 = vmatmul.mubr.msk.f32.vlgmr.msra.gmra.mxu0 %vm307_vm0, %v10858_v63  ;;  %18155 = vmatmul.mubr.msk.f32.vlgmr.msra.gmra.mxu1 %vm307_vm0, %v10859_v48  ;;  %v16234_v22 = vsub.f32 %v19791_v3, %v20997_v39  ;;  %v16235_v11 = vsub.f32 %v19793_v4, %v20999_v15 }
 0x172   :  { %v10860_v38 = vadd.f32 %v18484_v57, %v18483_v0  ;;  %v10861_v54 = vadd.f32 %v18486_v8, %v18485_v41  ;;  %18157 = vmatprep.subr.mxu0 %v22491_v20  ;;  %18162 = vmatprep.subr.mxu1 %v22491_v20  ;;  %v18487_v0 = vld [vmem:[%s22383_s2 + $0x150] sm:$0xff]  ;;  %v18489_v48 = vld [vmem:[%s22383_s2 + $0x158] sm:$0xff]  ;;  %v17671_v15 = vpop.f32.mrf.mxu0  ;;  %v17676_v39 = vpop.f32.mrf.mxu1 }
 0x173   :  { %v18488_v63 = vld [vmem:[%s22385_s3 + $0x150] sm:$0xff]  ;;  %v18490_v41 = vld [vmem:[%s22385_s3 + $0x158] sm:$0xff]  ;;  %18158 = vmatpush3.msra.mxu0 %v10932_v1  ;;  %18163 = vmatpush3.msra.mxu1 %v10933_v21  ;;  %16307 = vst.msk [vmem:[%s22387_s4 + $0x1c] sm:$0x3] %vm16292_vm2, %v16234_v22  ;;  %16308 = vst.msk [vmem:[%s22387_s4 + $0x1e] sm:$0x3] %vm16292_vm2, %v16235_v11 }
 0x174   :  { %v10934_v57 = vadd.f32 %v18488_v63, %v18487_v0  ;;  %v10935_v8 = vadd.f32 %v18490_v41, %v18489_v48  ;;  %18159 = vmatprep.mubr.msk.f32.mxu0 %vm18608_vm1, %v22491_v20  ;;  %18164 = vmatprep.mubr.msk.f32.mxu1 %vm18608_vm1, %v22491_v20  ;;  %v18491_v1 = vld [vmem:[%s22384_s0 + $0x54] sm:$0x3]  ;;  %v18493_v15 = vld [vmem:[%s22384_s0 + $0x56] sm:$0x3]  ;;  %v21045_v0 = vpop.f32.mrf.mxu0  ;;  %v21047_v63 = vpop.f32.mrf.mxu1 }
 0x175   :  { %v18492_v21 = vld [vmem:[%s22386_s1 + $0x54] sm:$0x3]  ;;  %v18494_v22 = vld [vmem:[%s22386_s1 + $0x56] sm:$0x3]  ;;  %22528 = vst [vmem:[#allocation43_spill] sm:$0xff] %v21045_v0  ;;  %22529 = vst [vmem:[#allocation44_spill] sm:$0xff] %v21047_v63  ;;  %18160 = vmatmul.mubr.msk.f32.vlgmr.msra.gmra.mxu0 %vm307_vm0, %v10860_v38  ;;  %18165 = vmatmul.mubr.msk.f32.vlgmr.msra.gmra.mxu1 %vm307_vm0, %v10861_v54  ;;  %v16236_v48 = vsub.f32 %v19815_v13, %v21045_v0  ;;  %v16237_v41 = vsub.f32 %v19817_v14, %v21047_v63 }
 0x176   :  { %v10862_v39 = vadd.f32 %v18492_v21, %v18491_v1  ;;  %v10863_v11 = vadd.f32 %v18494_v22, %v18493_v15  ;;  %18167 = vmatprep.subr.mxu0 %v22491_v20  ;;  %18172 = vmatprep.subr.mxu1 %v22491_v20  ;;  %v18495_v1 = vld [vmem:[%s22383_s2 + $0x160] sm:$0xff]  ;;  %v18497_v54 = vld [vmem:[%s22383_s2 + $0x168] sm:$0xff]  ;;  %v17681_v63 = vpop.f32.mrf.mxu0  ;;  %v17686_v0 = vpop.f32.mrf.mxu1 }
 0x177   :  { %v18496_v38 = vld [vmem:[%s22385_s3 + $0x160] sm:$0xff]  ;;  %v18498_v15 = vld [vmem:[%s22385_s3 + $0x168] sm:$0xff]  ;;  %18168 = vmatpush3.msra.mxu0 %v10934_v57  ;;  %18173 = vmatpush3.msra.mxu1 %v10935_v8  ;;  %16309 = vst.msk [vmem:[%s22387_s4 + $0x20] sm:$0x3] %vm16292_vm2, %v16236_v48  ;;  %16310 = vst.msk [vmem:[%s22387_s4 + $0x22] sm:$0x3] %vm16292_vm2, %v16237_v41 }
 0x178   :  { %v10936_v21 = vadd.f32 %v18496_v38, %v18495_v1  ;;  %v10937_v22 = vadd.f32 %v18498_v15, %v18497_v54  ;;  %18169 = vmatprep.mubr.msk.f32.mxu0 %vm18608_vm1, %v22491_v20  ;;  %18174 = vmatprep.mubr.msk.f32.mxu1 %vm18608_vm1, %v22491_v20  ;;  %v18499_v57 = vld [vmem:[%s22384_s0 + $0x58] sm:$0x3]  ;;  %v18501_v63 = vld [vmem:[%s22384_s0 + $0x5a] sm:$0x3]  ;;  %v21093_v1 = vpop.f32.mrf.mxu0  ;;  %v21095_v38 = vpop.f32.mrf.mxu1 }
 0x179   :  { %v18500_v8 = vld [vmem:[%s22386_s1 + $0x58] sm:$0x3]  ;;  %v18502_v48 = vld [vmem:[%s22386_s1 + $0x5a] sm:$0x3]  ;;  %22530 = vst [vmem:[#allocation45_spill] sm:$0xff] %v21093_v1  ;;  %22531 = vst [vmem:[#allocation46_spill] sm:$0xff] %v21095_v38  ;;  %18170 = vmatmul.mubr.msk.f32.vlgmr.msra.gmra.mxu0 %vm307_vm0, %v10862_v39  ;;  %18175 = vmatmul.mubr.msk.f32.vlgmr.msra.gmra.mxu1 %vm307_vm0, %v10863_v11  ;;  %v16238_v54 = vsub.f32 %v19839_v23, %v21093_v1  ;;  %v16239_v15 = vsub.f32 %v19841_v24, %v21095_v38 }
 0x17a   :  { %v10864_v0 = vadd.f32 %v18500_v8, %v18499_v57  ;;  %v10865_v41 = vadd.f32 %v18502_v48, %v18501_v63  ;;  %18177 = vmatprep.subr.mxu0 %v22491_v20  ;;  %18182 = vmatprep.subr.mxu1 %v22491_v20  ;;  %v18503_v57 = vld [vmem:[%s22383_s2 + $0x170] sm:$0xff]  ;;  %v18505_v11 = vld [vmem:[%s22383_s2 + $0x178] sm:$0xff]  ;;  %v17691_v38 = vpop.f32.mrf.mxu0  ;;  %v17696_v1 = vpop.f32.mrf.mxu1 }
 0x17b   :  { %v18504_v39 = vld [vmem:[%s22385_s3 + $0x170] sm:$0xff]  ;;  %v18506_v63 = vld [vmem:[%s22385_s3 + $0x178] sm:$0xff]  ;;  %18178 = vmatpush3.msra.mxu0 %v10936_v21  ;;  %18183 = vmatpush3.msra.mxu1 %v10937_v22  ;;  %16311 = vst.msk [vmem:[%s22387_s4 + $0x24] sm:$0x3] %vm16292_vm2, %v16238_v54  ;;  %16312 = vst.msk [vmem:[%s22387_s4 + $0x26] sm:$0x3] %vm16292_vm2, %v16239_v15 }
 0x17c   :  { %v10938_v8 = vadd.f32 %v18504_v39, %v18503_v57  ;;  %v10939_v48 = vadd.f32 %v18506_v63, %v18505_v11  ;;  %18179 = vmatprep.mubr.msk.f32.mxu0 %vm18608_vm1, %v22491_v20  ;;  %18184 = vmatprep.mubr.msk.f32.mxu1 %vm18608_vm1, %v22491_v20  ;;  %v18507_v21 = vld [vmem:[%s22384_s0 + $0x5c] sm:$0x3]  ;;  %v18509_v38 = vld [vmem:[%s22384_s0 + $0x5e] sm:$0x3]  ;;  %v21141_v57 = vpop.f32.mrf.mxu0  ;;  %v21143_v39 = vpop.f32.mrf.mxu1 }
 0x17d   :  { %v18508_v22 = vld [vmem:[%s22386_s1 + $0x5c] sm:$0x3]  ;;  %v18510_v54 = vld [vmem:[%s22386_s1 + $0x5e] sm:$0x3]  ;;  %22532 = vst [vmem:[#allocation47_spill] sm:$0xff] %v21141_v57  ;;  %22533 = vst [vmem:[#allocation48_spill] sm:$0xff] %v21143_v39  ;;  %18180 = vmatmul.mubr.msk.f32.vlgmr.msra.gmra.mxu0 %vm307_vm0, %v10864_v0  ;;  %18185 = vmatmul.mubr.msk.f32.vlgmr.msra.gmra.mxu1 %vm307_vm0, %v10865_v41  ;;  %v16240_v11 = vsub.f32 %v19863_v33, %v21141_v57  ;;  %v16241_v63 = vsub.f32 %v19865_v36, %v21143_v39 }
 0x17e   :  { %v10866_v1 = vadd.f32 %v18508_v22, %v18507_v21  ;;  %v10867_v15 = vadd.f32 %v18510_v54, %v18509_v38  ;;  %18187 = vmatprep.subr.mxu0 %v22491_v20  ;;  %18192 = vmatprep.subr.mxu1 %v22491_v20  ;;  %v18511_v21 = vld [vmem:[%s22383_s2 + $0x180] sm:$0xff]  ;;  %v18513_v41 = vld [vmem:[%s22383_s2 + $0x188] sm:$0xff]  ;;  %v17701_v39 = vpop.f32.mrf.mxu0  ;;  %v17706_v57 = vpop.f32.mrf.mxu1 }
 0x17f   :  { %v18512_v0 = vld [vmem:[%s22385_s3 + $0x180] sm:$0xff]  ;;  %v18514_v38 = vld [vmem:[%s22385_s3 + $0x188] sm:$0xff]  ;;  %18188 = vmatpush3.msra.mxu0 %v10938_v8  ;;  %18193 = vmatpush3.msra.mxu1 %v10939_v48  ;;  %16313 = vst.msk [vmem:[%s22387_s4 + $0x28] sm:$0x3] %vm16292_vm2, %v16240_v11  ;;  %16314 = vst.msk [vmem:[%s22387_s4 + $0x2a] sm:$0x3] %vm16292_vm2, %v16241_v63 }
 0x180   :  { %v10940_v22 = vadd.f32 %v18512_v0, %v18511_v21  ;;  %v10941_v54 = vadd.f32 %v18514_v38, %v18513_v41  ;;  %18189 = vmatprep.mubr.msk.f32.mxu0 %vm18608_vm1, %v22491_v20  ;;  %18194 = vmatprep.mubr.msk.f32.mxu1 %vm18608_vm1, %v22491_v20  ;;  %v18515_v8 = vld [vmem:[%s22384_s0 + $0x60] sm:$0x3]  ;;  %v18517_v39 = vld [vmem:[%s22384_s0 + $0x62] sm:$0x3]  ;;  %v21189_v21 = vpop.f32.mrf.mxu0  ;;  %v21191_v0 = vpop.f32.mrf.mxu1 }
 0x181   :  { %v18516_v48 = vld [vmem:[%s22386_s1 + $0x60] sm:$0x3]  ;;  %v18518_v11 = vld [vmem:[%s22386_s1 + $0x62] sm:$0x3]  ;;  %22534 = vst [vmem:[#allocation49_spill] sm:$0xff] %v21189_v21  ;;  %22535 = vst [vmem:[#allocation50_spill] sm:$0xff] %v21191_v0  ;;  %18190 = vmatmul.mubr.msk.f32.vlgmr.msra.gmra.mxu0 %vm307_vm0, %v10866_v1  ;;  %18195 = vmatmul.mubr.msk.f32.vlgmr.msra.gmra.mxu1 %vm307_vm0, %v10867_v15  ;;  %v16242_v41 = vsub.f32 %v19887_v45, %v21189_v21  ;;  %v16243_v38 = vsub.f32 %v19889_v46, %v21191_v0 }
 0x182   :  { %v10868_v57 = vadd.f32 %v18516_v48, %v18515_v8  ;;  %v10869_v63 = vadd.f32 %v18518_v11, %v18517_v39  ;;  %18197 = vmatprep.subr.mxu0 %v22491_v20  ;;  %18202 = vmatprep.subr.mxu1 %v22491_v20  ;;  %v18519_v8 = vld [vmem:[%s22383_s2 + $0x190] sm:$0xff]  ;;  %v18521_v15 = vld [vmem:[%s22383_s2 + $0x198] sm:$0xff]  ;;  %v17711_v0 = vpop.f32.mrf.mxu0  ;;  %v17716_v21 = vpop.f32.mrf.mxu1 }
 0x183   :  { %v18520_v1 = vld [vmem:[%s22385_s3 + $0x190] sm:$0xff]  ;;  %v18522_v39 = vld [vmem:[%s22385_s3 + $0x198] sm:$0xff]  ;;  %18198 = vmatpush3.msra.mxu0 %v10940_v22  ;;  %18203 = vmatpush3.msra.mxu1 %v10941_v54  ;;  %16315 = vst.msk [vmem:[%s22387_s4 + $0x2c] sm:$0x3] %vm16292_vm2, %v16242_v41  ;;  %16316 = vst.msk [vmem:[%s22387_s4 + $0x2e] sm:$0x3] %vm16292_vm2, %v16243_v38 }
 0x184   :  { %v10942_v48 = vadd.f32 %v18520_v1, %v18519_v8  ;;  %v10943_v11 = vadd.f32 %v18522_v39, %v18521_v15  ;;  %18199 = vmatprep.mubr.msk.f32.mxu0 %vm18608_vm1, %v22491_v20  ;;  %18204 = vmatprep.mubr.msk.f32.mxu1 %vm18608_vm1, %v22491_v20  ;;  %v18523_v22 = vld [vmem:[%s22384_s0 + $0x64] sm:$0x3]  ;;  %v18525_v0 = vld [vmem:[%s22384_s0 + $0x66] sm:$0x3]  ;;  %v21237_v8 = vpop.f32.mrf.mxu0  ;;  %v21239_v1 = vpop.f32.mrf.mxu1 }
 0x185   :  { %v18524_v54 = vld [vmem:[%s22386_s1 + $0x64] sm:$0x3]  ;;  %v18526_v41 = vld [vmem:[%s22386_s1 + $0x66] sm:$0x3]  ;;  %22536 = vst [vmem:[#allocation51_spill] sm:$0xff] %v21237_v8  ;;  %22537 = vst [vmem:[#allocation52_spill] sm:$0xff] %v21239_v1  ;;  %18200 = vmatmul.mubr.msk.f32.vlgmr.msra.gmra.mxu0 %vm307_vm0, %v10868_v57  ;;  %18205 = vmatmul.mubr.msk.f32.vlgmr.msra.gmra.mxu1 %vm307_vm0, %v10869_v63  ;;  %v16244_v15 = vsub.f32 %v19911_v55, %v21237_v8  ;;  %v16245_v39 = vsub.f32 %v19913_v56, %v21239_v1 }
 0x186   :  { %v10870_v21 = vadd.f32 %v18524_v54, %v18523_v22  ;;  %v10871_v38 = vadd.f32 %v18526_v41, %v18525_v0  ;;  %18207 = vmatprep.subr.mxu0 %v22491_v20  ;;  %18212 = vmatprep.subr.mxu1 %v22491_v20  ;;  %v18527_v22 = vld [vmem:[%s22383_s2 + $0x1a0] sm:$0xff]  ;;  %v18529_v63 = vld [vmem:[%s22383_s2 + $0x1a8] sm:$0xff]  ;;  %v17721_v1 = vpop.f32.mrf.mxu0  ;;  %v17726_v8 = vpop.f32.mrf.mxu1 }
 0x187   :  { %v18528_v57 = vld [vmem:[%s22385_s3 + $0x1a0] sm:$0xff]  ;;  %v18530_v0 = vld [vmem:[%s22385_s3 + $0x1a8] sm:$0xff]  ;;  %18208 = vmatpush3.msra.mxu0 %v10942_v48  ;;  %18213 = vmatpush3.msra.mxu1 %v10943_v11  ;;  %16317 = vst.msk [vmem:[%s22387_s4 + $0x30] sm:$0x3] %vm16292_vm2, %v16244_v15  ;;  %16318 = vst.msk [vmem:[%s22387_s4 + $0x32] sm:$0x3] %vm16292_vm2, %v16245_v39 }
 0x188   :  { %v10944_v54 = vadd.f32 %v18528_v57, %v18527_v22  ;;  %v10945_v41 = vadd.f32 %v18530_v0, %v18529_v63  ;;  %18209 = vmatprep.mubr.msk.f32.mxu0 %vm18608_vm1, %v22491_v20  ;;  %18214 = vmatprep.mubr.msk.f32.mxu1 %vm18608_vm1, %v22491_v20  ;;  %v18531_v48 = vld [vmem:[%s22384_s0 + $0x68] sm:$0x3]  ;;  %v18533_v1 = vld [vmem:[%s22384_s0 + $0x6a] sm:$0x3]  ;;  %v21285_v22 = vpop.f32.mrf.mxu0  ;;  %v21287_v57 = vpop.f32.mrf.mxu1 }
 0x189   :  { %v18532_v11 = vld [vmem:[%s22386_s1 + $0x68] sm:$0x3]  ;;  %v18534_v15 = vld [vmem:[%s22386_s1 + $0x6a] sm:$0x3]  ;;  %22538 = vst [vmem:[#allocation53_spill] sm:$0xff] %v21285_v22  ;;  %22539 = vst [vmem:[#allocation54_spill] sm:$0xff] %v21287_v57  ;;  %18210 = vmatmul.mubr.msk.f32.vlgmr.msra.gmra.mxu0 %vm307_vm0, %v10870_v21  ;;  %18215 = vmatmul.mubr.msk.f32.vlgmr.msra.gmra.mxu1 %vm307_vm0, %v10871_v38  ;;  %v16246_v63 = vsub.f32 %v19935_v2, %v21285_v22  ;;  %v16247_v0 = vsub.f32 %v19937_v5, %v21287_v57 }
 0x18a   :  { %v10872_v8 = vadd.f32 %v18532_v11, %v18531_v48  ;;  %v10873_v39 = vadd.f32 %v18534_v15, %v18533_v1  ;;  %18217 = vmatprep.subr.mxu0 %v22491_v20  ;;  %18222 = vmatprep.subr.mxu1 %v22491_v20  ;;  %v18535_v48 = vld [vmem:[%s22383_s2 + $0x1b0] sm:$0xff]  ;;  %v18537_v38 = vld [vmem:[%s22383_s2 + $0x1b8] sm:$0xff]  ;;  %v17731_v57 = vpop.f32.mrf.mxu0  ;;  %v17736_v22 = vpop.f32.mrf.mxu1 }
 0x18b   :  { %v18536_v21 = vld [vmem:[%s22385_s3 + $0x1b0] sm:$0xff]  ;;  %v18538_v1 = vld [vmem:[%s22385_s3 + $0x1b8] sm:$0xff]  ;;  %18218 = vmatpush3.msra.mxu0 %v10944_v54  ;;  %18223 = vmatpush3.msra.mxu1 %v10945_v41  ;;  %16319 = vst.msk [vmem:[%s22387_s4 + $0x34] sm:$0x3] %vm16292_vm2, %v16246_v63  ;;  %16320 = vst.msk [vmem:[%s22387_s4 + $0x36] sm:$0x3] %vm16292_vm2, %v16247_v0 }
 0x18c   :  { %v10946_v11 = vadd.f32 %v18536_v21, %v18535_v48  ;;  %v10947_v15 = vadd.f32 %v18538_v1, %v18537_v38  ;;  %18219 = vmatprep.mubr.msk.f32.mxu0 %vm18608_vm1, %v22491_v20  ;;  %18224 = vmatprep.mubr.msk.f32.mxu1 %vm18608_vm1, %v22491_v20  ;;  %v18539_v54 = vld [vmem:[%s22384_s0 + $0x6c] sm:$0x3]  ;;  %v18541_v57 = vld [vmem:[%s22384_s0 + $0x6e] sm:$0x3]  ;;  %v21333_v48 = vpop.f32.mrf.mxu0  ;;  %v21335_v21 = vpop.f32.mrf.mxu1 }
 0x18d   :  { %v18540_v41 = vld [vmem:[%s22386_s1 + $0x6c] sm:$0x3]  ;;  %v18542_v63 = vld [vmem:[%s22386_s1 + $0x6e] sm:$0x3]  ;;  %22540 = vst [vmem:[#allocation55_spill] sm:$0xff] %v21333_v48  ;;  %22541 = vst [vmem:[#allocation56_spill] sm:$0xff] %v21335_v21  ;;  %18220 = vmatmul.mubr.msk.f32.vlgmr.msra.gmra.mxu0 %vm307_vm0, %v10872_v8  ;;  %18225 = vmatmul.mubr.msk.f32.vlgmr.msra.gmra.mxu1 %vm307_vm0, %v10873_v39  ;;  %v16248_v38 = vsub.f32 %v19959_v16, %v21333_v48  ;;  %v16249_v1 = vsub.f32 %v19961_v17, %v21335_v21 }
 0x18e   :  { %v10874_v22 = vadd.f32 %v18540_v41, %v18539_v54  ;;  %v10875_v0 = vadd.f32 %v18542_v63, %v18541_v57  ;;  %18227 = vmatprep.subr.mxu0 %v22491_v20  ;;  %18232 = vmatprep.subr.mxu1 %v22491_v20  ;;  %v18543_v54 = vld [vmem:[%s22383_s2 + $0x1c0] sm:$0xff]  ;;  %v18545_v39 = vld [vmem:[%s22383_s2 + $0x1c8] sm:$0xff]  ;;  %v17741_v21 = vpop.f32.mrf.mxu0  ;;  %v17746_v48 = vpop.f32.mrf.mxu1 }
 0x18f   :  { %v18544_v8 = vld [vmem:[%s22385_s3 + $0x1c0] sm:$0xff]  ;;  %v18546_v57 = vld [vmem:[%s22385_s3 + $0x1c8] sm:$0xff]  ;;  %18228 = vmatpush3.msra.mxu0 %v10946_v11  ;;  %18233 = vmatpush3.msra.mxu1 %v10947_v15  ;;  %16321 = vst.msk [vmem:[%s22387_s4 + $0x38] sm:$0x3] %vm16292_vm2, %v16248_v38  ;;  %16322 = vst.msk [vmem:[%s22387_s4 + $0x3a] sm:$0x3] %vm16292_vm2, %v16249_v1 }
 0x190   :  { %v10948_v41 = vadd.f32 %v18544_v8, %v18543_v54  ;;  %v10949_v63 = vadd.f32 %v18546_v57, %v18545_v39  ;;  %18229 = vmatprep.mubr.msk.f32.mxu0 %vm18608_vm1, %v22491_v20  ;;  %18234 = vmatprep.mubr.msk.f32.mxu1 %vm18608_vm1, %v22491_v20  ;;  %v18547_v11 = vld [vmem:[%s22384_s0 + $0x70] sm:$0x3]  ;;  %v18549_v21 = vld [vmem:[%s22384_s0 + $0x72] sm:$0x3]  ;;  %v21381_v54 = vpop.f32.mrf.mxu0  ;;  %v21383_v8 = vpop.f32.mrf.mxu1 }
 0x191   :  { %v18548_v15 = vld [vmem:[%s22386_s1 + $0x70] sm:$0x3]  ;;  %v18550_v38 = vld [vmem:[%s22386_s1 + $0x72] sm:$0x3]  ;;  %22542 = vst [vmem:[#allocation57_spill] sm:$0xff] %v21381_v54  ;;  %22543 = vst [vmem:[#allocation58_spill] sm:$0xff] %v21383_v8  ;;  %18230 = vmatmul.mubr.msk.f32.vlgmr.msra.gmra.mxu0 %vm307_vm0, %v10874_v22  ;;  %18235 = vmatmul.mubr.msk.f32.vlgmr.msra.gmra.mxu1 %vm307_vm0, %v10875_v0  ;;  %v16250_v39 = vsub.f32 %v19983_v30, %v21381_v54  ;;  %v16251_v57 = vsub.f32 %v19985_v31, %v21383_v8 }
 0x192   :  { %v10876_v48 = vadd.f32 %v18548_v15, %v18547_v11  ;;  %v10877_v1 = vadd.f32 %v18550_v38, %v18549_v21  ;;  %18237 = vmatprep.subr.mxu0 %v22491_v20  ;;  %18242 = vmatprep.subr.mxu1 %v22491_v20  ;;  %v18551_v11 = vld [vmem:[%s22383_s2 + $0x1d0] sm:$0xff]  ;;  %v18553_v0 = vld [vmem:[%s22383_s2 + $0x1d8] sm:$0xff]  ;;  %v17751_v8 = vpop.f32.mrf.mxu0  ;;  %v17756_v54 = vpop.f32.mrf.mxu1 }
 0x193   :  { %v18552_v22 = vld [vmem:[%s22385_s3 + $0x1d0] sm:$0xff]  ;;  %v18554_v21 = vld [vmem:[%s22385_s3 + $0x1d8] sm:$0xff]  ;;  %18238 = vmatpush3.msra.mxu0 %v10948_v41  ;;  %18243 = vmatpush3.msra.mxu1 %v10949_v63  ;;  %16323 = vst.msk [vmem:[%s22387_s4 + $0x3c] sm:$0x3] %vm16292_vm2, %v16250_v39  ;;  %16324 = vst.msk [vmem:[%s22387_s4 + $0x3e] sm:$0x3] %vm16292_vm2, %v16251_v57 }
 0x194   :  { %v10950_v15 = vadd.f32 %v18552_v22, %v18551_v11  ;;  %v10951_v38 = vadd.f32 %v18554_v21, %v18553_v0  ;;  %18239 = vmatprep.mubr.msk.f32.mxu0 %vm18608_vm1, %v22491_v20  ;;  %18244 = vmatprep.mubr.msk.f32.mxu1 %vm18608_vm1, %v22491_v20  ;;  %v18555_v41 = vld [vmem:[%s22384_s0 + $0x74] sm:$0x3]  ;;  %v18557_v8 = vld [vmem:[%s22384_s0 + $0x76] sm:$0x3]  ;;  %v21429_v11 = vpop.f32.mrf.mxu0  ;;  %v21431_v22 = vpop.f32.mrf.mxu1 }
 0x195   :  { %v18556_v63 = vld [vmem:[%s22386_s1 + $0x74] sm:$0x3]  ;;  %v18558_v39 = vld [vmem:[%s22386_s1 + $0x76] sm:$0x3]  ;;  %22544 = vst [vmem:[#allocation59_spill] sm:$0xff] %v21429_v11  ;;  %22545 = vst [vmem:[#allocation60_spill] sm:$0xff] %v21431_v22  ;;  %18240 = vmatmul.mubr.msk.f32.vlgmr.msra.gmra.mxu0 %vm307_vm0, %v10876_v48  ;;  %18245 = vmatmul.mubr.msk.f32.vlgmr.msra.gmra.mxu1 %vm307_vm0, %v10877_v1  ;;  %v16252_v0 = vsub.f32 %v20007_v44, %v21429_v11  ;;  %v16253_v21 = vsub.f32 %v20009_v47, %v21431_v22 }
 0x196   :  { %v10878_v54 = vadd.f32 %v18556_v63, %v18555_v41  ;;  %v10879_v57 = vadd.f32 %v18558_v39, %v18557_v8  ;;  %18247 = vmatprep.subr.mxu0 %v22491_v20  ;;  %18252 = vmatprep.subr.mxu1 %v22491_v20  ;;  %v18559_v41 = vld [vmem:[%s22383_s2 + $0x1e0] sm:$0xff]  ;;  %v18561_v1 = vld [vmem:[%s22383_s2 + $0x1e8] sm:$0xff]  ;;  %v17761_v22 = vpop.f32.mrf.mxu0  ;;  %v17766_v11 = vpop.f32.mrf.mxu1 }
 0x197   :  { %v18560_v48 = vld [vmem:[%s22385_s3 + $0x1e0] sm:$0xff]  ;;  %v18562_v8 = vld [vmem:[%s22385_s3 + $0x1e8] sm:$0xff]  ;;  %18248 = vmatpush3.msra.mxu0 %v10950_v15  ;;  %18253 = vmatpush3.msra.mxu1 %v10951_v38  ;;  %16325 = vst.msk [vmem:[%s22387_s4 + $0x40] sm:$0x3] %vm16292_vm2, %v16252_v0  ;;  %16326 = vst.msk [vmem:[%s22387_s4 + $0x42] sm:$0x3] %vm16292_vm2, %v16253_v21 }
 0x198   :  { %v10952_v63 = vadd.f32 %v18560_v48, %v18559_v41  ;;  %v10953_v39 = vadd.f32 %v18562_v8, %v18561_v1  ;;  %18249 = vmatprep.mubr.msk.f32.mxu0 %vm18608_vm1, %v22491_v20  ;;  %18254 = vmatprep.mubr.msk.f32.mxu1 %vm18608_vm1, %v22491_v20  ;;  %v18563_v15 = vld [vmem:[%s22384_s0 + $0x78] sm:$0x3]  ;;  %v18565_v22 = vld [vmem:[%s22384_s0 + $0x7a] sm:$0x3]  ;;  %v21477_v41 = vpop.f32.mrf.mxu0  ;;  %v21479_v48 = vpop.f32.mrf.mxu1 }
 0x199   :  { %v18564_v38 = vld [vmem:[%s22386_s1 + $0x78] sm:$0x3]  ;;  %v18566_v0 = vld [vmem:[%s22386_s1 + $0x7a] sm:$0x3]  ;;  %22546 = vst [vmem:[#allocation61_spill] sm:$0xff] %v21477_v41  ;;  %22547 = vst [vmem:[#allocation62_spill] sm:$0xff] %v21479_v48  ;;  %18250 = vmatmul.mubr.msk.f32.vlgmr.msra.gmra.mxu0 %vm307_vm0, %v10878_v54  ;;  %18255 = vmatmul.mubr.msk.f32.vlgmr.msra.gmra.mxu1 %vm307_vm0, %v10879_v57  ;;  %v16254_v1 = vsub.f32 %v20031_v60, %v21477_v41  ;;  %v16255_v8 = vsub.f32 %v20033_v61, %v21479_v48 }
 0x19a   :  { %v10880_v11 = vadd.f32 %v18564_v38, %v18563_v15  ;;  %v10881_v21 = vadd.f32 %v18566_v0, %v18565_v22  ;;  %18257 = vmatprep.subr.mxu0 %v22491_v20  ;;  %18262 = vmatprep.subr.mxu1 %v22491_v20  ;;  %v18567_v15 = vld [vmem:[%s22383_s2 + $0x1f0] sm:$0xff]  ;;  %v18569_v57 = vld [vmem:[%s22383_s2 + $0x1f8] sm:$0xff]  ;;  %v17771_v48 = vpop.f32.mrf.mxu0  ;;  %v17776_v41 = vpop.f32.mrf.mxu1 }
 0x19b   :  { %v18568_v54 = vld [vmem:[%s22385_s3 + $0x1f0] sm:$0xff]  ;;  %v18570_v22 = vld [vmem:[%s22385_s3 + $0x1f8] sm:$0xff]  ;;  %18258 = vmatpush3.msra.mxu0 %v10952_v63  ;;  %18263 = vmatpush3.msra.mxu1 %v10953_v39  ;;  %16327 = vst.msk [vmem:[%s22387_s4 + $0x44] sm:$0x3] %vm16292_vm2, %v16254_v1  ;;  %16328 = vst.msk [vmem:[%s22387_s4 + $0x46] sm:$0x3] %vm16292_vm2, %v16255_v8 }
 0x19c   :  { %v10954_v38 = vadd.f32 %v18568_v54, %v18567_v15  ;;  %v10955_v0 = vadd.f32 %v18570_v22, %v18569_v57  ;;  %18259 = vmatprep.mubr.msk.f32.mxu0 %vm18608_vm1, %v22491_v20  ;;  %18264 = vmatprep.mubr.msk.f32.mxu1 %vm18608_vm1, %v22491_v20  ;;  %v18571_v63 = vld [vmem:[%s22384_s0 + $0x7c] sm:$0x3]  ;;  %v18573_v48 = vld [vmem:[%s22384_s0 + $0x7e] sm:$0x3]  ;;  %v21525_v15 = vpop.f32.mrf.mxu0  ;;  %v21527_v54 = vpop.f32.mrf.mxu1 }
 0x19d   :  { %v18572_v39 = vld [vmem:[%s22386_s1 + $0x7c] sm:$0x3]  ;;  %v18574_v1 = vld [vmem:[%s22386_s1 + $0x7e] sm:$0x3]  ;;  %22548 = vst [vmem:[#allocation63_spill] sm:$0xff] %v21525_v15  ;;  %22549 = vst [vmem:[#allocation64_spill] sm:$0xff] %v21527_v54  ;;  %18260 = vmatmul.mubr.msk.f32.vlgmr.msra.gmra.mxu0 %vm307_vm0, %v10880_v11  ;;  %18265 = vmatmul.mubr.msk.f32.vlgmr.msra.gmra.mxu1 %vm307_vm0, %v10881_v21  ;;  %v16256_v57 = vsub.f32 %v20055_v9, %v21525_v15  ;;  %v16257_v22 = vsub.f32 %v20057_v12, %v21527_v54 }
 0x19e   :  { %v10882_v41 = vadd.f32 %v18572_v39, %v18571_v63  ;;  %v10883_v8 = vadd.f32 %v18574_v1, %v18573_v48  ;;  %18267 = vmatprep.subr.mxu0 %v22491_v20  ;;  %18272 = vmatprep.subr.mxu1 %v22491_v20  ;;  %v18575_v63 = vld [vmem:[%s22383_s2 + $0x200] sm:$0xff]  ;;  %v18577_v21 = vld [vmem:[%s22383_s2 + $0x208] sm:$0xff]  ;;  %v17781_v54 = vpop.f32.mrf.mxu0  ;;  %v17786_v15 = vpop.f32.mrf.mxu1 }
 0x19f   :  { %v18576_v11 = vld [vmem:[%s22385_s3 + $0x200] sm:$0xff]  ;;  %v18578_v48 = vld [vmem:[%s22385_s3 + $0x208] sm:$0xff]  ;;  %18268 = vmatpush3.msra.mxu0 %v10954_v38  ;;  %18273 = vmatpush3.msra.mxu1 %v10955_v0  ;;  %16329 = vst.msk [vmem:[%s22387_s4 + $0x48] sm:$0x3] %vm16292_vm2, %v16256_v57  ;;  %16330 = vst.msk [vmem:[%s22387_s4 + $0x4a] sm:$0x3] %vm16292_vm2, %v16257_v22 }
 0x1a0   :  { %v10956_v39 = vadd.f32 %v18576_v11, %v18575_v63  ;;  %v10957_v1 = vadd.f32 %v18578_v48, %v18577_v21  ;;  %18269 = vmatprep.mubr.msk.f32.mxu0 %vm18608_vm1, %v22491_v20  ;;  %18274 = vmatprep.mubr.msk.f32.mxu1 %vm18608_vm1, %v22491_v20  ;;  %v18579_v38 = vld [vmem:[%s22384_s0 + $0x80] sm:$0x3]  ;;  %v18581_v54 = vld [vmem:[%s22384_s0 + $0x82] sm:$0x3]  ;;  %v21573_v63 = vpop.f32.mrf.mxu0  ;;  %v21575_v11 = vpop.f32.mrf.mxu1 }
 0x1a1   :  { %v18580_v0 = vld [vmem:[%s22386_s1 + $0x80] sm:$0x3]  ;;  %v18582_v57 = vld [vmem:[%s22386_s1 + $0x82] sm:$0x3]  ;;  %22550 = vst [vmem:[#allocation65_spill] sm:$0xff] %v21573_v63  ;;  %22551 = vst [vmem:[#allocation66_spill] sm:$0xff] %v21575_v11  ;;  %18270 = vmatmul.mubr.msk.f32.vlgmr.msra.gmra.mxu0 %vm307_vm0, %v10882_v41  ;;  %18275 = vmatmul.mubr.msk.f32.vlgmr.msra.gmra.mxu1 %vm307_vm0, %v10883_v8  ;;  %v16258_v21 = vsub.f32 %v20079_v29, %v21573_v63  ;;  %v16259_v48 = vsub.f32 %v20081_v32, %v21575_v11 }
 0x1a2   :  { %v10884_v15 = vadd.f32 %v18580_v0, %v18579_v38  ;;  %v10885_v22 = vadd.f32 %v18582_v57, %v18581_v54  ;;  %18277 = vmatprep.subr.mxu0 %v22491_v20  ;;  %18282 = vmatprep.subr.mxu1 %v22491_v20  ;;  %v18583_v38 = vld [vmem:[%s22383_s2 + $0x210] sm:$0xff]  ;;  %v18585_v8 = vld [vmem:[%s22383_s2 + $0x218] sm:$0xff]  ;;  %v17791_v11 = vpop.f32.mrf.mxu0  ;;  %v17796_v63 = vpop.f32.mrf.mxu1 }
 0x1a3   :  { %v18584_v41 = vld [vmem:[%s22385_s3 + $0x210] sm:$0xff]  ;;  %v18586_v54 = vld [vmem:[%s22385_s3 + $0x218] sm:$0xff]  ;;  %18278 = vmatpush3.msra.mxu0 %v10956_v39  ;;  %18283 = vmatpush3.msra.mxu1 %v10957_v1  ;;  %16331 = vst.msk [vmem:[%s22387_s4 + $0x4c] sm:$0x3] %vm16292_vm2, %v16258_v21  ;;  %16332 = vst.msk [vmem:[%s22387_s4 + $0x4e] sm:$0x3] %vm16292_vm2, %v16259_v48 }
 0x1a4   :  { %v10958_v0 = vadd.f32 %v18584_v41, %v18583_v38  ;;  %v10959_v57 = vadd.f32 %v18586_v54, %v18585_v8  ;;  %18279 = vmatprep.mubr.msk.f32.mxu0 %vm18608_vm1, %v22491_v20  ;;  %18284 = vmatprep.mubr.msk.f32.mxu1 %vm18608_vm1, %v22491_v20  ;;  %v18587_v39 = vld [vmem:[%s22384_s0 + $0x84] sm:$0x3]  ;;  %v18589_v11 = vld [vmem:[%s22384_s0 + $0x86] sm:$0x3]  ;;  %v21621_v38 = vpop.f32.mrf.mxu0  ;;  %v21623_v41 = vpop.f32.mrf.mxu1 }
 0x1a5   :  { %v18588_v1 = vld [vmem:[%s22386_s1 + $0x84] sm:$0x3]  ;;  %v18590_v21 = vld [vmem:[%s22386_s1 + $0x86] sm:$0x3]  ;;  %22552 = vst [vmem:[#allocation67_spill] sm:$0xff] %v21621_v38  ;;  %22553 = vst [vmem:[#allocation68_spill] sm:$0xff] %v21623_v41  ;;  %18280 = vmatmul.mubr.msk.f32.vlgmr.msra.gmra.mxu0 %vm307_vm0, %v10884_v15  ;;  %18285 = vmatmul.mubr.msk.f32.vlgmr.msra.gmra.mxu1 %vm307_vm0, %v10885_v22  ;;  %v16260_v8 = vsub.f32 %v20103_v49, %v21621_v38  ;;  %v16261_v54 = vsub.f32 %v20105_v52, %v21623_v41 }
 0x1a6   :  { %v10886_v63 = vadd.f32 %v18588_v1, %v18587_v39  ;;  %v10887_v48 = vadd.f32 %v18590_v21, %v18589_v11  ;;  %18287 = vmatprep.subr.mxu0 %v22491_v20  ;;  %18292 = vmatprep.subr.mxu1 %v22491_v20  ;;  %v18591_v39 = vld [vmem:[%s22383_s2 + $0x220] sm:$0xff]  ;;  %v18593_v22 = vld [vmem:[%s22383_s2 + $0x228] sm:$0xff]  ;;  %v17801_v41 = vpop.f32.mrf.mxu0  ;;  %v17806_v38 = vpop.f32.mrf.mxu1 }
 0x1a7   :  { %v18592_v15 = vld [vmem:[%s22385_s3 + $0x220] sm:$0xff]  ;;  %v18594_v11 = vld [vmem:[%s22385_s3 + $0x228] sm:$0xff]  ;;  %18288 = vmatpush3.msra.mxu0 %v10958_v0  ;;  %18293 = vmatpush3.msra.mxu1 %v10959_v57  ;;  %16333 = vst.msk [vmem:[%s22387_s4 + $0x50] sm:$0x3] %vm16292_vm2, %v16260_v8  ;;  %16334 = vst.msk [vmem:[%s22387_s4 + $0x52] sm:$0x3] %vm16292_vm2, %v16261_v54 }
 0x1a8   :  { %v10960_v1 = vadd.f32 %v18592_v15, %v18591_v39  ;;  %v10961_v21 = vadd.f32 %v18594_v11, %v18593_v22  ;;  %18289 = vmatprep.mubr.msk.f32.mxu0 %vm18608_vm1, %v22491_v20  ;;  %18294 = vmatprep.mubr.msk.f32.mxu1 %vm18608_vm1, %v22491_v20  ;;  %v18595_v0 = vld [vmem:[%s22384_s0 + $0x88] sm:$0x3]  ;;  %v18597_v41 = vld [vmem:[%s22384_s0 + $0x8a] sm:$0x3]  ;;  %v21669_v39 = vpop.f32.mrf.mxu0  ;;  %v21671_v15 = vpop.f32.mrf.mxu1 }
 0x1a9   :  { %v18596_v57 = vld [vmem:[%s22386_s1 + $0x88] sm:$0x3]  ;;  %v18598_v8 = vld [vmem:[%s22386_s1 + $0x8a] sm:$0x3]  ;;  %22554 = vst [vmem:[#allocation69_spill] sm:$0xff] %v21669_v39  ;;  %22555 = vst [vmem:[#allocation70_spill] sm:$0xff] %v21671_v15  ;;  %18290 = vmatmul.mubr.msk.f32.vlgmr.msra.gmra.mxu0 %vm307_vm0, %v10886_v63  ;;  %18295 = vmatmul.mubr.msk.f32.vlgmr.msra.gmra.mxu1 %vm307_vm0, %v10887_v48  ;;  %v16262_v22 = vsub.f32 %v20127_v6, %v21669_v39  ;;  %v16263_v11 = vsub.f32 %v20129_v7, %v21671_v15 }
 0x1aa   :  { %v10888_v38 = vadd.f32 %v18596_v57, %v18595_v0  ;;  %v10889_v54 = vadd.f32 %v18598_v8, %v18597_v41  ;;  %18297 = vmatprep.subr.mxu0 %v22491_v20  ;;  %18302 = vmatprep.subr.mxu1 %v22491_v20  ;;  %v18599_v0 = vld [vmem:[%s22383_s2 + $0x230] sm:$0xff]  ;;  %v18601_v48 = vld [vmem:[%s22383_s2 + $0x238] sm:$0xff]  ;;  %v17811_v15 = vpop.f32.mrf.mxu0  ;;  %v17816_v39 = vpop.f32.mrf.mxu1 }
 0x1ab   :  { %v18600_v63 = vld [vmem:[%s22385_s3 + $0x230] sm:$0xff]  ;;  %v18602_v41 = vld [vmem:[%s22385_s3 + $0x238] sm:$0xff]  ;;  %18298 = vmatpush3.msra.mxu0 %v10960_v1  ;;  %18303 = vmatpush3.msra.mxu1 %v10961_v21  ;;  %16335 = vst.msk [vmem:[%s22387_s4 + $0x54] sm:$0x3] %vm16292_vm2, %v16262_v22  ;;  %16336 = vst.msk [vmem:[%s22387_s4 + $0x56] sm:$0x3] %vm16292_vm2, %v16263_v11 }
 0x1ac   :  { %v10962_v57 = vadd.f32 %v18600_v63, %v18599_v0  ;;  %v10963_v8 = vadd.f32 %v18602_v41, %v18601_v48  ;;  %18299 = vmatprep.mubr.msk.f32.mxu0 %vm18608_vm1, %v22491_v20  ;;  %18304 = vmatprep.mubr.msk.f32.mxu1 %vm18608_vm1, %v22491_v20  ;;  %v18603_v1 = vld [vmem:[%s22384_s0 + $0x8c] sm:$0x3]  ;;  %v18605_v15 = vld [vmem:[%s22384_s0 + $0x8e] sm:$0x3]  ;;  %v21717_v0 = vpop.f32.mrf.mxu0  ;;  %v21719_v63 = vpop.f32.mrf.mxu1 }
 0x1ad   :  { %v18604_v21 = vld [vmem:[%s22386_s1 + $0x8c] sm:$0x3]  ;;  %v18606_v22 = vld [vmem:[%s22386_s1 + $0x8e] sm:$0x3]  ;;  %18300 = vmatmul.mubr.msk.f32.vlgmr.msra.gmra.mxu0 %vm307_vm0, %v10888_v38  ;;  %18305 = vmatmul.mubr.msk.f32.vlgmr.msra.gmra.mxu1 %vm307_vm0, %v10889_v54  ;;  %v16264_v48 = vsub.f32 %v20151_v28, %v21717_v0  ;;  %v16265_v41 = vsub.f32 %v20153_v37, %v21719_v63 }
 0x1ae   :  { %v10890_v39 = vadd.f32 %v18604_v21, %v18603_v1  ;;  %v10891_v11 = vadd.f32 %v18606_v22, %v18605_v15  ;;  %18307 = vmatprep.subr.mxu0 %v22491_v20  ;;  %18312 = vmatprep.subr.mxu1 %v22491_v20  ;;  %v17821_v1 = vpop.f32.mrf.mxu0  ;;  %v17826_v21 = vpop.f32.mrf.mxu1 }
 0x1af   :  { %18308 = vmatpush3.msra.mxu0 %v10962_v57  ;;  %18313 = vmatpush3.msra.mxu1 %v10963_v8  ;;  %16337 = vst.msk [vmem:[%s22387_s4 + $0x58] sm:$0x3] %vm16292_vm2, %v16264_v48  ;;  %16338 = vst.msk [vmem:[%s22387_s4 + $0x5a] sm:$0x3] %vm16292_vm2, %v16265_v41 }
 0x1b0   :  { %18309 = vmatprep.mubr.msk.f32.mxu0 %vm18608_vm1, %v22491_v20  ;;  %18314 = vmatprep.mubr.msk.f32.mxu1 %vm18608_vm1, %v22491_v20  ;;  %v21741_v38 = vpop.f32.mrf.mxu0  ;;  %v21743_v54 = vpop.f32.mrf.mxu1 }
 0x1b1   :  { %22556 = vst [vmem:[#allocation71_spill] sm:$0xff] %v21741_v38  ;;  %22557 = vst [vmem:[#allocation72_spill] sm:$0xff] %v21743_v54  ;;  %18310 = vmatmul.mubr.msk.f32.vlgmr.msra.gmra.mxu0 %vm307_vm0, %v10890_v39  ;;  %18315 = vmatmul.mubr.msk.f32.vlgmr.msra.gmra.mxu1 %vm307_vm0, %v10891_v11  ;;  %v16266_v57 = vsub.f32 %v20193_v25, %v21741_v38  ;;  %v16267_v8 = vsub.f32 %v20195_v40, %v21743_v54 }
 0x1b2   :  { %v17831_v15 = vpop.f32.mrf.mxu0  ;;  %v17836_v22 = vpop.f32.mrf.mxu1 }
 0x1b3   :  { %16339 = vst.msk [vmem:[%s22387_s4 + $0x5c] sm:$0x3] %vm16292_vm2, %v16266_v57  ;;  %16340 = vst.msk [vmem:[%s22387_s4 + $0x5e] sm:$0x3] %vm16292_vm2, %v16267_v8  ;;  %v22562_v8 = vld [vmem:[#allocation5_spill] sm:$0xff]  ;;  %v22563_v22 = vld [vmem:[#allocation6_spill] sm:$0xff] }
 0x1b4   :  { %v21759_v20 = vpop.f32.mrf.mxu0  ;;  %v21761_v39 = vpop.f32.mrf.mxu1 }
 0x1b5   :  { %22558 = vst [vmem:[#allocation73_spill] sm:$0xff] %v21759_v20  ;;  %22559 = vst [vmem:[#allocation74_spill] sm:$0xff] %v21761_v39  ;;  %v16268_v11 = vsub.f32 %v20229_v53, %v21759_v20  ;;  %v16269_v48 = vsub.f32 %v20231_v62, %v21761_v39 }
 0x1b6   :  { %v17841_v41 = vpop.f32.mrf.mxu0  ;;  %v17846_v1 = vpop.f32.mrf.mxu1 }
 0x1b7   :  { %16341 = vst.msk [vmem:[%s22387_s4 + $0x60] sm:$0x3] %vm16292_vm2, %v16268_v11  ;;  %16342 = vst.msk [vmem:[%s22387_s4 + $0x62] sm:$0x3] %vm16292_vm2, %v16269_v48 }
 0x1b8   :  { %v21775_v21 = vpop.f32.mrf.mxu0  ;;  %v21777_v57 = vpop.f32.mrf.mxu1 }
 0x1b9   :  { %22560 = vst [vmem:[#allocation75_spill] sm:$0xff] %v21775_v21  ;;  %22561 = vst [vmem:[#allocation76_spill] sm:$0xff] %v21777_v57  ;;  %v16270_v15 = vsub.f32 %v22562_v8, %v21775_v21  ;;  %v16271_v41 = vsub.f32 %v22563_v22, %v21777_v57  ;;  %v22566_v21 = vld [vmem:[#allocation7_spill] sm:$0xff] }
 0x1ba   :  { %v17851_v1 = vpop.f32.mrf.mxu0  ;;  %v17856_v39 = vpop.f32.mrf.mxu1 }
 0x1bb   :  { %16343 = vst.msk [vmem:[%s22387_s4 + $0x64] sm:$0x3] %vm16292_vm2, %v16270_v15  ;;  %16344 = vst.msk [vmem:[%s22387_s4 + $0x66] sm:$0x3] %vm16292_vm2, %v16271_v41  ;;  %v22567_v1 = vld [vmem:[#allocation8_spill] sm:$0xff] }
 0x1bc   :  { %v21791_v11 = vpop.f32.mrf.mxu0  ;;  %v21793_v48 = vpop.f32.mrf.mxu1 }
 0x1bd   :  { %22564 = vst [vmem:[#allocation77_spill] sm:$0xff] %v21791_v11  ;;  %22565 = vst [vmem:[#allocation78_spill] sm:$0xff] %v21793_v48  ;;  %v16272_v8 = vsub.f32 %v22566_v21, %v21791_v11  ;;  %v16273_v39 = vsub.f32 %v22567_v1, %v21793_v48  ;;  %v22570_v11 = vld [vmem:[#allocation9_spill] sm:$0xff] }
 0x1be   :  { %v17861_v57 = vpop.f32.mrf.mxu0  ;;  %v17866_v22 = vpop.f32.mrf.mxu1 }
 0x1bf   :  { %16345 = vst.msk [vmem:[%s22387_s4 + $0x68] sm:$0x3] %vm16292_vm2, %v16272_v8  ;;  %16346 = vst.msk [vmem:[%s22387_s4 + $0x6a] sm:$0x3] %vm16292_vm2, %v16273_v39  ;;  %v22571_v57 = vld [vmem:[#allocation10_spill] sm:$0xff] }
 0x1c0   :  { %v21807_v15 = vpop.f32.mrf.mxu0  ;;  %v21809_v41 = vpop.f32.mrf.mxu1 }
 0x1c1   :  { %22568 = vst [vmem:[#allocation79_spill] sm:$0xff] %v21807_v15  ;;  %22569 = vst [vmem:[#allocation80_spill] sm:$0xff] %v21809_v41  ;;  %v16274_v21 = vsub.f32 %v22570_v11, %v21807_v15  ;;  %v16275_v22 = vsub.f32 %v22571_v57, %v21809_v41  ;;  %v22574_v15 = vld [vmem:[#allocation11_spill] sm:$0xff] }
 0x1c2   :  { %v17871_v48 = vpop.f32.mrf.mxu0  ;;  %v17876_v1 = vpop.f32.mrf.mxu1 }
 0x1c3   :  { %16347 = vst.msk [vmem:[%s22387_s4 + $0x6c] sm:$0x3] %vm16292_vm2, %v16274_v21  ;;  %16348 = vst.msk [vmem:[%s22387_s4 + $0x6e] sm:$0x3] %vm16292_vm2, %v16275_v22  ;;  %v22575_v48 = vld [vmem:[#allocation12_spill] sm:$0xff] }
 0x1c4   :  { %v21823_v8 = vpop.f32.mrf.mxu0  ;;  %v21825_v39 = vpop.f32.mrf.mxu1 }
 0x1c5   :  { %22572 = vst [vmem:[#allocation81_spill] sm:$0xff] %v21823_v8  ;;  %22573 = vst [vmem:[#allocation82_spill] sm:$0xff] %v21825_v39  ;;  %v16276_v11 = vsub.f32 %v22574_v15, %v21823_v8  ;;  %v16277_v1 = vsub.f32 %v22575_v48, %v21825_v39  ;;  %v22578_v8 = vld [vmem:[#allocation13_spill] sm:$0xff] }
 0x1c6   :  { %v17881_v41 = vpop.f32.mrf.mxu0  ;;  %v17886_v57 = vpop.f32.mrf.mxu1 }
 0x1c7   :  { %16349 = vst.msk [vmem:[%s22387_s4 + $0x70] sm:$0x3] %vm16292_vm2, %v16276_v11  ;;  %16350 = vst.msk [vmem:[%s22387_s4 + $0x72] sm:$0x3] %vm16292_vm2, %v16277_v1  ;;  %v22579_v41 = vld [vmem:[#allocation14_spill] sm:$0xff] }
 0x1c8   :  { %v21839_v21 = vpop.f32.mrf.mxu0  ;;  %v21841_v22 = vpop.f32.mrf.mxu1 }
 0x1c9   :  { %22576 = vst [vmem:[#allocation83_spill] sm:$0xff] %v21839_v21  ;;  %22577 = vst [vmem:[#allocation84_spill] sm:$0xff] %v21841_v22  ;;  %v16278_v15 = vsub.f32 %v22578_v8, %v21839_v21  ;;  %v16279_v57 = vsub.f32 %v22579_v41, %v21841_v22  ;;  %v22582_v21 = vld [vmem:[#allocation15_spill] sm:$0xff] }
 0x1ca   :  { %v17891_v39 = vpop.f32.mrf.mxu0  ;;  %v17896_v48 = vpop.f32.mrf.mxu1 }
 0x1cb   :  { %16351 = vst.msk [vmem:[%s22387_s4 + $0x74] sm:$0x3] %vm16292_vm2, %v16278_v15  ;;  %16352 = vst.msk [vmem:[%s22387_s4 + $0x76] sm:$0x3] %vm16292_vm2, %v16279_v57  ;;  %v22583_v39 = vld [vmem:[#allocation16_spill] sm:$0xff] }
 0x1cc   :  { %v21855_v11 = vpop.f32.mrf.mxu0  ;;  %v21857_v1 = vpop.f32.mrf.mxu1 }
 0x1cd   :  { %22580 = vst [vmem:[#allocation85_spill] sm:$0xff] %v21855_v11  ;;  %22581 = vst [vmem:[#allocation86_spill] sm:$0xff] %v21857_v1  ;;  %v16280_v8 = vsub.f32 %v22582_v21, %v21855_v11  ;;  %v16281_v48 = vsub.f32 %v22583_v39, %v21857_v1  ;;  %v22586_v11 = vld [vmem:[#allocation17_spill] sm:$0xff] }
 0x1ce   :  { %v17901_v22 = vpop.f32.mrf.mxu0  ;;  %v17906_v41 = vpop.f32.mrf.mxu1 }
 0x1cf   :  { %16353 = vst.msk [vmem:[%s22387_s4 + $0x78] sm:$0x3] %vm16292_vm2, %v16280_v8  ;;  %16354 = vst.msk [vmem:[%s22387_s4 + $0x7a] sm:$0x3] %vm16292_vm2, %v16281_v48  ;;  %v22587_v22 = vld [vmem:[#allocation18_spill] sm:$0xff] }
 0x1d0   :  { %v21871_v15 = vpop.f32.mrf.mxu0  ;;  %v21873_v57 = vpop.f32.mrf.mxu1 }
 0x1d1   :  { %22584 = vst [vmem:[#allocation87_spill] sm:$0xff] %v21871_v15  ;;  %22585 = vst [vmem:[#allocation88_spill] sm:$0xff] %v21873_v57  ;;  %v16282_v21 = vsub.f32 %v22586_v11, %v21871_v15  ;;  %v16283_v41 = vsub.f32 %v22587_v22, %v21873_v57  ;;  %v22590_v15 = vld [vmem:[#allocation19_spill] sm:$0xff] }
 0x1d2   :  { %v17911_v1 = vpop.f32.mrf.mxu0  ;;  %v17916_v39 = vpop.f32.mrf.mxu1 }
 0x1d3   :  { %16355 = vst.msk [vmem:[%s22387_s4 + $0x7c] sm:$0x3] %vm16292_vm2, %v16282_v21  ;;  %16356 = vst.msk [vmem:[%s22387_s4 + $0x7e] sm:$0x3] %vm16292_vm2, %v16283_v41  ;;  %v22591_v1 = vld [vmem:[#allocation20_spill] sm:$0xff] }
 0x1d4   :  { %v21887_v8 = vpop.f32.mrf.mxu0  ;;  %v21889_v48 = vpop.f32.mrf.mxu1 }
 0x1d5   :  { %22588 = vst [vmem:[#allocation89_spill] sm:$0xff] %v21887_v8  ;;  %22589 = vst [vmem:[#allocation90_spill] sm:$0xff] %v21889_v48  ;;  %v16284_v11 = vsub.f32 %v22590_v15, %v21887_v8  ;;  %v16285_v39 = vsub.f32 %v22591_v1, %v21889_v48  ;;  %v22594_v8 = vld [vmem:[#allocation21_spill] sm:$0xff] }
 0x1d6   :  { %v17921_v57 = vpop.f32.mrf.mxu0  ;;  %v17926_v22 = vpop.f32.mrf.mxu1 }
 0x1d7   :  { %16357 = vst.msk [vmem:[%s22387_s4 + $0x80] sm:$0x3] %vm16292_vm2, %v16284_v11  ;;  %16358 = vst.msk [vmem:[%s22387_s4 + $0x82] sm:$0x3] %vm16292_vm2, %v16285_v39  ;;  %v22595_v57 = vld [vmem:[#allocation22_spill] sm:$0xff] }
 0x1d8   :  { %v21903_v21 = vpop.f32.mrf.mxu0  ;;  %v21905_v41 = vpop.f32.mrf.mxu1 }
 0x1d9   :  { %22592 = vst [vmem:[#allocation91_spill] sm:$0xff] %v21903_v21  ;;  %22593 = vst [vmem:[#allocation92_spill] sm:$0xff] %v21905_v41  ;;  %v16286_v15 = vsub.f32 %v22594_v8, %v21903_v21  ;;  %v16287_v22 = vsub.f32 %v22595_v57, %v21905_v41  ;;  %v22598_v21 = vld [vmem:[#allocation23_spill] sm:$0xff] }
 0x1da   :  { %v17931_v48 = vpop.f32.mrf.mxu0  ;;  %v17936_v1 = vpop.f32.mrf.mxu1 }
 0x1db   :  { %16359 = vst.msk [vmem:[%s22387_s4 + $0x84] sm:$0x3] %vm16292_vm2, %v16286_v15  ;;  %16360 = vst.msk [vmem:[%s22387_s4 + $0x86] sm:$0x3] %vm16292_vm2, %v16287_v22  ;;  %v22599_v48 = vld [vmem:[#allocation24_spill] sm:$0xff] }
 0x1dc   :  { %v21919_v11 = vpop.f32.mrf.mxu0  ;;  %v21921_v39 = vpop.f32.mrf.mxu1 }
 0x1dd   :  { %22596 = vst [vmem:[#allocation93_spill] sm:$0xff] %v21919_v11  ;;  %22597 = vst [vmem:[#allocation94_spill] sm:$0xff] %v21921_v39  ;;  %v16288_v8 = vsub.f32 %v22598_v21, %v21919_v11  ;;  %v16289_v1 = vsub.f32 %v22599_v48, %v21921_v39  ;;  %v22602_v11 = vld [vmem:[#allocation25_spill] sm:$0xff] }
 0x1de   :  { %v17941_v41 = vpop.f32.mrf.mxu0  ;;  %v17946_v57 = vpop.f32.mrf.mxu1 }
 0x1df   :  { %16361 = vst.msk [vmem:[%s22387_s4 + $0x88] sm:$0x3] %vm16292_vm2, %v16288_v8  ;;  %16362 = vst.msk [vmem:[%s22387_s4 + $0x8a] sm:$0x3] %vm16292_vm2, %v16289_v1  ;;  %v22603_v41 = vld [vmem:[#allocation26_spill] sm:$0xff] }
 0x1e0   :  { %v21935_v15 = vpop.f32.mrf.mxu0  ;;  %v21937_v22 = vpop.f32.mrf.mxu1 }
 0x1e1   :  { %22600 = vst [vmem:[#allocation95_spill] sm:$0xff] %v21935_v15  ;;  %22601 = vst [vmem:[#allocation96_spill] sm:$0xff] %v21937_v22  ;;  %v16290_v21 = vsub.f32 %v22602_v11, %v21935_v15  ;;  %v16291_v57 = vsub.f32 %v22603_v41, %v21937_v22  ;;  %v22604_v15 = vld [vmem:[#allocation2_spill] sm:$0xff]  ;;  %v22606_v41 = vld [vmem:[#allocation28_spill] sm:$0xff] }
 0x1e2   :  { %v17951_v39 = vpop.f32.mrf.mxu0  ;;  %v17956_v48 = vpop.f32.mrf.mxu1 }
 0x1e3   :  { %16363 = vst.msk [vmem:[%s22387_s4 + $0x8c] sm:$0x3] %vm16292_vm2, %v16290_v21  ;;  %16364 = vst.msk [vmem:[%s22387_s4 + $0x8e] sm:$0x3] %vm16292_vm2, %v16291_v57  ;;  %v22605_v39 = vld [vmem:[#allocation27_spill] sm:$0xff] }
 0x1e4   :  { %v11033_v8 = vpop.f32.mrf.mxu0  ;;  %v11106_v1 = vpop.f32.mrf.mxu1 }
 0x1e5   :  { %v16365_v20 = vsub.f32 %v11033_v8, %v19623_v10  ;;  %v16366_v11 = vsub.f32 %v11106_v1, %v22604_v15  ;;  %v22607_v15 = vld [vmem:[#allocation29_spill] sm:$0xff] }
 0x1e6   :  { %v17961_v62 = vpop.f32.mrf.mxu0  ;;  %v17966_v22 = vpop.f32.mrf.mxu1 }
 0x1e7   :  { %v16437_v48 = vsub.f32 %v16365_v20, %v22605_v39  ;;  %v16438_v53 = vsub.f32 %v16366_v11, %v22606_v41  ;;  %v22608_v22 = vld [vmem:[#allocation30_spill] sm:$0xff]  ;;  %v22610_v39 = vld [vmem:[#allocation32_spill] sm:$0xff] }
 0x1e8   :  { %v11179_v54 = vpop.f32.mrf.mxu0  ;;  %v11252_v38 = vpop.f32.mrf.mxu1 }
 0x1e9   :  { %16509 = vst.msk [vmem:[%s22388_s5] sm:$0x3] %vm16292_vm2, %v16437_v48  ;;  %16510 = vst.msk [vmem:[%s22388_s5 + $0x2] sm:$0x3] %vm16292_vm2, %v16438_v53  ;;  %v16367_v10 = vsub.f32 %v11179_v54, %v19647_v18  ;;  %v16368_v62 = vsub.f32 %v11252_v38, %v19649_v19  ;;  %v22609_v54 = vld [vmem:[#allocation31_spill] sm:$0xff] }
 0x1ea   :  { %v17971_v21 = vpop.f32.mrf.mxu0  ;;  %v17976_v20 = vpop.f32.mrf.mxu1 }
 0x1eb   :  { %v16439_v11 = vsub.f32 %v16367_v10, %v22607_v15  ;;  %v16440_v41 = vsub.f32 %v16368_v62, %v22608_v22  ;;  %v22611_v15 = vld [vmem:[#allocation33_spill] sm:$0xff]  ;;  %v22612_v22 = vld [vmem:[#allocation34_spill] sm:$0xff] }
 0x1ec   :  { %v11325_v57 = vpop.f32.mrf.mxu0  ;;  %v11398_v8 = vpop.f32.mrf.mxu1 }
 0x1ed   :  { %16511 = vst.msk [vmem:[%s22388_s5 + $0x4] sm:$0x3] %vm16292_vm2, %v16439_v11  ;;  %16512 = vst.msk [vmem:[%s22388_s5 + $0x6] sm:$0x3] %vm16292_vm2, %v16440_v41  ;;  %v16369_v18 = vsub.f32 %v11325_v57, %v19671_v26  ;;  %v16370_v19 = vsub.f32 %v11398_v8, %v19673_v27 }
 0x1ee   :  { %v17981_v53 = vpop.f32.mrf.mxu0  ;;  %v17986_v38 = vpop.f32.mrf.mxu1 }
 0x1ef   :  { %v16441_v1 = vsub.f32 %v16369_v18, %v22609_v54  ;;  %v16442_v48 = vsub.f32 %v16370_v19, %v22610_v39  ;;  %v22613_v53 = vld [vmem:[#allocation35_spill] sm:$0xff]  ;;  %v22614_v54 = vld [vmem:[#allocation36_spill] sm:$0xff] }
 0x1f0   :  { %v11471_v10 = vpop.f32.mrf.mxu0  ;;  %v11544_v62 = vpop.f32.mrf.mxu1 }
 0x1f1   :  { %16513 = vst.msk [vmem:[%s22388_s5 + $0x8] sm:$0x3] %vm16292_vm2, %v16441_v1  ;;  %16514 = vst.msk [vmem:[%s22388_s5 + $0xa] sm:$0x3] %vm16292_vm2, %v16442_v48  ;;  %v16371_v26 = vsub.f32 %v11471_v10, %v19695_v34  ;;  %v16372_v27 = vsub.f32 %v11544_v62, %v19697_v35 }
 0x1f2   :  { %v17991_v21 = vpop.f32.mrf.mxu0  ;;  %v17996_v20 = vpop.f32.mrf.mxu1 }
 0x1f3   :  { %v16443_v11 = vsub.f32 %v16371_v26, %v22611_v15  ;;  %v16444_v41 = vsub.f32 %v16372_v27, %v22612_v22  ;;  %v22615_v26 = vld [vmem:[#allocation37_spill] sm:$0xff]  ;;  %v22616_v21 = vld [vmem:[#allocation38_spill] sm:$0xff] }
 0x1f4   :  { %v11617_v57 = vpop.f32.mrf.mxu0  ;;  %v11690_v8 = vpop.f32.mrf.mxu1 }
 0x1f5   :  { %16515 = vst.msk [vmem:[%s22388_s5 + $0xc] sm:$0x3] %vm16292_vm2, %v16443_v11  ;;  %16516 = vst.msk [vmem:[%s22388_s5 + $0xe] sm:$0x3] %vm16292_vm2, %v16444_v41  ;;  %v16373_v34 = vsub.f32 %v11617_v57, %v19719_v42  ;;  %v16374_v35 = vsub.f32 %v11690_v8, %v19721_v43  ;;  %v22617_v57 = vld [vmem:[#allocation39_spill] sm:$0xff] }
 0x1f6   :  { %v18001_v18 = vpop.f32.mrf.mxu0  ;;  %v18006_v19 = vpop.f32.mrf.mxu1 }
 0x1f7   :  { %v16445_v38 = vsub.f32 %v16373_v34, %v22613_v53  ;;  %v16446_v1 = vsub.f32 %v16374_v35, %v22614_v54  ;;  %v22618_v34 = vld [vmem:[#allocation40_spill] sm:$0xff]  ;;  %v22619_v54 = vld [vmem:[#allocation41_spill] sm:$0xff] }
 0x1f8   :  { %v11763_v39 = vpop.f32.mrf.mxu0  ;;  %v11836_v48 = vpop.f32.mrf.mxu1 }
 0x1f9   :  { %16517 = vst.msk [vmem:[%s22388_s5 + $0x10] sm:$0x3] %vm16292_vm2, %v16445_v38  ;;  %16518 = vst.msk [vmem:[%s22388_s5 + $0x12] sm:$0x3] %vm16292_vm2, %v16446_v1  ;;  %v16375_v42 = vsub.f32 %v11763_v39, %v19743_v50  ;;  %v16376_v43 = vsub.f32 %v11836_v48, %v19745_v51  ;;  %v22620_v39 = vld [vmem:[#allocation42_spill] sm:$0xff] }
 0x1fa   :  { %v18011_v10 = vpop.f32.mrf.mxu0  ;;  %v18016_v62 = vpop.f32.mrf.mxu1 }
 0x1fb   :  { %v16447_v27 = vsub.f32 %v16375_v42, %v22615_v26  ;;  %v16448_v20 = vsub.f32 %v16376_v43, %v22616_v21  ;;  %v22621_v26 = vld [vmem:[#allocation43_spill] sm:$0xff]  ;;  %v22622_v21 = vld [vmem:[#allocation44_spill] sm:$0xff] }
 0x1fc   :  { %v11909_v15 = vpop.f32.mrf.mxu0  ;;  %v11982_v11 = vpop.f32.mrf.mxu1 }
 0x1fd   :  { %16519 = vst.msk [vmem:[%s22388_s5 + $0x14] sm:$0x3] %vm16292_vm2, %v16447_v27  ;;  %16520 = vst.msk [vmem:[%s22388_s5 + $0x16] sm:$0x3] %vm16292_vm2, %v16448_v20  ;;  %v16377_v50 = vsub.f32 %v11909_v15, %v19767_v58  ;;  %v16378_v51 = vsub.f32 %v11982_v11, %v19769_v59 }
 0x1fe   :  { %v18021_v22 = vpop.f32.mrf.mxu0  ;;  %v18026_v41 = vpop.f32.mrf.mxu1 }
 0x1ff   :  { %v16449_v8 = vsub.f32 %v16377_v50, %v22617_v57  ;;  %v16450_v35 = vsub.f32 %v16378_v51, %v22618_v34  ;;  %v22623_v22 = vld [vmem:[#allocation45_spill] sm:$0xff]  ;;  %v22624_v57 = vld [vmem:[#allocation46_spill] sm:$0xff] }
 0x200   :  { %v12055_v18 = vpop.f32.mrf.mxu0  ;;  %v12128_v19 = vpop.f32.mrf.mxu1 }
 0x201   :  { %16521 = vst.msk [vmem:[%s22388_s5 + $0x18] sm:$0x3] %vm16292_vm2, %v16449_v8  ;;  %16522 = vst.msk [vmem:[%s22388_s5 + $0x1a] sm:$0x3] %vm16292_vm2, %v16450_v35  ;;  %v16379_v58 = vsub.f32 %v12055_v18, %v19791_v3  ;;  %v16380_v59 = vsub.f32 %v12128_v19, %v19793_v4 }
 0x202   :  { %v18031_v53 = vpop.f32.mrf.mxu0  ;;  %v18036_v38 = vpop.f32.mrf.mxu1 }
 0x203   :  { %v16451_v1 = vsub.f32 %v16379_v58, %v22619_v54  ;;  %v16452_v48 = vsub.f32 %v16380_v59, %v22620_v39  ;;  %v22625_v58 = vld [vmem:[#allocation47_spill] sm:$0xff]  ;;  %v22626_v53 = vld [vmem:[#allocation48_spill] sm:$0xff] }
 0x204   :  { %v12201_v42 = vpop.f32.mrf.mxu0  ;;  %v12274_v43 = vpop.f32.mrf.mxu1 }
 0x205   :  { %16523 = vst.msk [vmem:[%s22388_s5 + $0x1c] sm:$0x3] %vm16292_vm2, %v16451_v1  ;;  %16524 = vst.msk [vmem:[%s22388_s5 + $0x1e] sm:$0x3] %vm16292_vm2, %v16452_v48  ;;  %v16381_v3 = vsub.f32 %v12201_v42, %v19815_v13  ;;  %v16382_v4 = vsub.f32 %v12274_v43, %v19817_v14  ;;  %v22627_v42 = vld [vmem:[#allocation49_spill] sm:$0xff] }
 0x206   :  { %v18041_v10 = vpop.f32.mrf.mxu0  ;;  %v18046_v62 = vpop.f32.mrf.mxu1 }
 0x207   :  { %v16453_v27 = vsub.f32 %v16381_v3, %v22621_v26  ;;  %v16454_v20 = vsub.f32 %v16382_v4, %v22622_v21  ;;  %v22628_v3 = vld [vmem:[#allocation50_spill] sm:$0xff]  ;;  %v22629_v21 = vld [vmem:[#allocation51_spill] sm:$0xff] }
 0x208   :  { %v12347_v15 = vpop.f32.mrf.mxu0  ;;  %v12420_v11 = vpop.f32.mrf.mxu1 }
 0x209   :  { %16525 = vst.msk [vmem:[%s22388_s5 + $0x20] sm:$0x3] %vm16292_vm2, %v16453_v27  ;;  %16526 = vst.msk [vmem:[%s22388_s5 + $0x22] sm:$0x3] %vm16292_vm2, %v16454_v20  ;;  %v16383_v13 = vsub.f32 %v12347_v15, %v19839_v23  ;;  %v16384_v14 = vsub.f32 %v12420_v11, %v19841_v24  ;;  %v22630_v15 = vld [vmem:[#allocation52_spill] sm:$0xff] }
 0x20a   :  { %v18051_v50 = vpop.f32.mrf.mxu0  ;;  %v18056_v51 = vpop.f32.mrf.mxu1 }
 0x20b   :  { %v16455_v41 = vsub.f32 %v16383_v13, %v22623_v22  ;;  %v16456_v8 = vsub.f32 %v16384_v14, %v22624_v57  ;;  %v22631_v22 = vld [vmem:[#allocation53_spill] sm:$0xff]  ;;  %v22632_v57 = vld [vmem:[#allocation54_spill] sm:$0xff] }
 0x20c   :  { %v12493_v34 = vpop.f32.mrf.mxu0  ;;  %v12566_v35 = vpop.f32.mrf.mxu1 }
 0x20d   :  { %16527 = vst.msk [vmem:[%s22388_s5 + $0x24] sm:$0x3] %vm16292_vm2, %v16455_v41  ;;  %16528 = vst.msk [vmem:[%s22388_s5 + $0x26] sm:$0x3] %vm16292_vm2, %v16456_v8  ;;  %v16385_v23 = vsub.f32 %v12493_v34, %v19863_v33  ;;  %v16386_v24 = vsub.f32 %v12566_v35, %v19865_v36 }
 0x20e   :  { %v18061_v18 = vpop.f32.mrf.mxu0  ;;  %v18066_v19 = vpop.f32.mrf.mxu1 }
 0x20f   :  { %v16457_v59 = vsub.f32 %v16385_v23, %v22625_v58  ;;  %v16458_v38 = vsub.f32 %v16386_v24, %v22626_v53  ;;  %v22633_v18 = vld [vmem:[#allocation55_spill] sm:$0xff]  ;;  %v22634_v58 = vld [vmem:[#allocation56_spill] sm:$0xff] }
 0x210   :  { %v12639_v54 = vpop.f32.mrf.mxu0  ;;  %v12712_v1 = vpop.f32.mrf.mxu1 }
 0x211   :  { %16529 = vst.msk [vmem:[%s22388_s5 + $0x28] sm:$0x3] %vm16292_vm2, %v16457_v59  ;;  %16530 = vst.msk [vmem:[%s22388_s5 + $0x2a] sm:$0x3] %vm16292_vm2, %v16458_v38  ;;  %v16387_v33 = vsub.f32 %v12639_v54, %v19887_v45  ;;  %v16388_v36 = vsub.f32 %v12712_v1, %v19889_v46 }
 0x212   :  { %v18071_v39 = vpop.f32.mrf.mxu0  ;;  %v18076_v48 = vpop.f32.mrf.mxu1 }
 0x213   :  { %v16459_v43 = vsub.f32 %v16387_v33, %v22627_v42  ;;  %v16460_v4 = vsub.f32 %v16388_v36, %v22628_v3  ;;  %v22635_v33 = vld [vmem:[#allocation57_spill] sm:$0xff]  ;;  %v22636_v39 = vld [vmem:[#allocation58_spill] sm:$0xff] }
 0x214   :  { %v12785_v10 = vpop.f32.mrf.mxu0  ;;  %v12858_v62 = vpop.f32.mrf.mxu1 }
 0x215   :  { %16531 = vst.msk [vmem:[%s22388_s5 + $0x2c] sm:$0x3] %vm16292_vm2, %v16459_v43  ;;  %16532 = vst.msk [vmem:[%s22388_s5 + $0x2e] sm:$0x3] %vm16292_vm2, %v16460_v4  ;;  %v16389_v45 = vsub.f32 %v12785_v10, %v19911_v55  ;;  %v16390_v46 = vsub.f32 %v12858_v62, %v19913_v56  ;;  %v22637_v10 = vld [vmem:[#allocation59_spill] sm:$0xff] }
 0x216   :  { %v18081_v26 = vpop.f32.mrf.mxu0  ;;  %v18086_v27 = vpop.f32.mrf.mxu1 }
 0x217   :  { %v16461_v20 = vsub.f32 %v16389_v45, %v22629_v21  ;;  %v16462_v11 = vsub.f32 %v16390_v46, %v22630_v15  ;;  %v22638_v45 = vld [vmem:[#allocation60_spill] sm:$0xff]  ;;  %v22639_v15 = vld [vmem:[#allocation61_spill] sm:$0xff] }
 0x218   :  { %v12931_v13 = vpop.f32.mrf.mxu0  ;;  %v13004_v14 = vpop.f32.mrf.mxu1 }
 0x219   :  { %16533 = vst.msk [vmem:[%s22388_s5 + $0x30] sm:$0x3] %vm16292_vm2, %v16461_v20  ;;  %16534 = vst.msk [vmem:[%s22388_s5 + $0x32] sm:$0x3] %vm16292_vm2, %v16462_v11  ;;  %v16391_v55 = vsub.f32 %v12931_v13, %v19935_v2  ;;  %v16392_v56 = vsub.f32 %v13004_v14, %v19937_v5  ;;  %v22640_v13 = vld [vmem:[#allocation62_spill] sm:$0xff] }
 0x21a   :  { %v18091_v50 = vpop.f32.mrf.mxu0  ;;  %v18096_v51 = vpop.f32.mrf.mxu1 }
 0x21b   :  { %v16463_v41 = vsub.f32 %v16391_v55, %v22631_v22  ;;  %v16464_v8 = vsub.f32 %v16392_v56, %v22632_v57  ;;  %v22641_v22 = vld [vmem:[#allocation63_spill] sm:$0xff]  ;;  %v22642_v57 = vld [vmem:[#allocation64_spill] sm:$0xff] }
 0x21c   :  { %v13077_v34 = vpop.f32.mrf.mxu0  ;;  %v13150_v35 = vpop.f32.mrf.mxu1 }
 0x21d   :  { %16535 = vst.msk [vmem:[%s22388_s5 + $0x34] sm:$0x3] %vm16292_vm2, %v16463_v41  ;;  %16536 = vst.msk [vmem:[%s22388_s5 + $0x36] sm:$0x3] %vm16292_vm2, %v16464_v8  ;;  %v16393_v2 = vsub.f32 %v13077_v34, %v19959_v16  ;;  %v16394_v5 = vsub.f32 %v13150_v35, %v19961_v17 }
 0x21e   :  { %v18101_v23 = vpop.f32.mrf.mxu0  ;;  %v18106_v24 = vpop.f32.mrf.mxu1 }
 0x21f   :  { %v16465_v19 = vsub.f32 %v16393_v2, %v22633_v18  ;;  %v16466_v59 = vsub.f32 %v16394_v5, %v22634_v58  ;;  %v22643_v23 = vld [vmem:[#allocation65_spill] sm:$0xff]  ;;  %v22644_v18 = vld [vmem:[#allocation66_spill] sm:$0xff] }
 0x220   :  { %v13223_v53 = vpop.f32.mrf.mxu0  ;;  %v13296_v38 = vpop.f32.mrf.mxu1 }
 0x221   :  { %16537 = vst.msk [vmem:[%s22388_s5 + $0x38] sm:$0x3] %vm16292_vm2, %v16465_v19  ;;  %16538 = vst.msk [vmem:[%s22388_s5 + $0x3a] sm:$0x3] %vm16292_vm2, %v16466_v59  ;;  %v16395_v16 = vsub.f32 %v13223_v53, %v19983_v30  ;;  %v16396_v17 = vsub.f32 %v13296_v38, %v19985_v31 }
 0x222   :  { %v18111_v54 = vpop.f32.mrf.mxu0  ;;  %v18116_v1 = vpop.f32.mrf.mxu1 }
 0x223   :  { %v16467_v36 = vsub.f32 %v16395_v16, %v22635_v33  ;;  %v16468_v48 = vsub.f32 %v16396_v17, %v22636_v39  ;;  %v22645_v16 = vld [vmem:[#allocation67_spill] sm:$0xff]  ;;  %v22646_v54 = vld [vmem:[#allocation68_spill] sm:$0xff] }
 0x224   :  { %v13369_v42 = vpop.f32.mrf.mxu0  ;;  %v13442_v43 = vpop.f32.mrf.mxu1 }
 0x225   :  { %16539 = vst.msk [vmem:[%s22388_s5 + $0x3c] sm:$0x3] %vm16292_vm2, %v16467_v36  ;;  %16540 = vst.msk [vmem:[%s22388_s5 + $0x3e] sm:$0x3] %vm16292_vm2, %v16468_v48  ;;  %v16397_v30 = vsub.f32 %v13369_v42, %v20007_v44  ;;  %v16398_v31 = vsub.f32 %v13442_v43, %v20009_v47  ;;  %v22647_v42 = vld [vmem:[#allocation69_spill] sm:$0xff] }
 0x226   :  { %v18121_v3 = vpop.f32.mrf.mxu0  ;;  %v18126_v4 = vpop.f32.mrf.mxu1 }
 0x227   :  { %v16469_v62 = vsub.f32 %v16397_v30, %v22637_v10  ;;  %v16470_v46 = vsub.f32 %v16398_v31, %v22638_v45  ;;  %v22648_v30 = vld [vmem:[#allocation70_spill] sm:$0xff] }
 0x228   :  { %v13515_v26 = vpop.f32.mrf.mxu0 }
 0x229   :  { %v13588_v27 = vpop.f32.mrf.mxu1  ;;  %16541 = vst.msk [vmem:[%s22388_s5 + $0x40] sm:$0x3] %vm16292_vm2, %v16469_v62  ;;  %16542 = vst.msk [vmem:[%s22388_s5 + $0x42] sm:$0x3] %vm16292_vm2, %v16470_v46  ;;  %v16399_v44 = vsub.f32 %v13515_v26, %v20031_v60 }
 0x22a   :  { %v16400_v47 = vsub.f32 %v13588_v27, %v20033_v61  ;;  %v18131_v21 = vpop.f32.mrf.mxu0 }
 0x22b   :  { %v18136_v20 = vpop.f32.mrf.mxu1  ;;  %v16471_v11 = vsub.f32 %v16399_v44, %v22639_v15  ;;  %v22650_v21 = vld [vmem:[#allocation72_spill] sm:$0xff] }
 0x22c   :  { %v16472_v14 = vsub.f32 %v16400_v47, %v22640_v13  ;;  %v13661_v55 = vpop.f32.mrf.mxu0  ;;  %v22649_v47 = vld [vmem:[#allocation71_spill] sm:$0xff]  ;;  %v22652_v13 = vld [vmem:[#allocation4_spill] sm:$0xff] }
 0x22d   :  { %v13734_v56 = vpop.f32.mrf.mxu1  ;;  %16543 = vst.msk [vmem:[%s22388_s5 + $0x44] sm:$0x3] %vm16292_vm2, %v16471_v11  ;;  %v16401_v60 = vsub.f32 %v13661_v55, %v20055_v9 }
 0x22e   :  { %16544 = vst.msk [vmem:[%s22388_s5 + $0x46] sm:$0x3] %vm16292_vm2, %v16472_v14  ;;  %v16402_v61 = vsub.f32 %v13734_v56, %v20057_v12  ;;  %v18141_v50 = vpop.f32.mrf.mxu0 }
 0x22f   :  { %v18146_v51 = vpop.f32.mrf.mxu1  ;;  %v16473_v41 = vsub.f32 %v16401_v60, %v22641_v22  ;;  %v22653_v60 = vld [vmem:[#allocation73_spill] sm:$0xff]  ;;  %v22654_v50 = vld [vmem:[#allocation74_spill] sm:$0xff] }
 0x230   :  { %v16474_v8 = vsub.f32 %v16402_v61, %v22642_v57  ;;  %v22655_v57 = vld [vmem:[#allocation5_spill] sm:$0xff] }
 0x231   :  { %v13807_v34 = vpop.f32.mrf.mxu0  ;;  %v13880_v35 = vpop.f32.mrf.mxu1  ;;  %16545 = vst.msk [vmem:[%s22388_s5 + $0x48] sm:$0x3] %vm16292_vm2, %v16473_v41 }
 0x232   :  { %16546 = vst.msk [vmem:[%s22388_s5 + $0x4a] sm:$0x3] %vm16292_vm2, %v16474_v8  ;;  %v16403_v9 = vsub.f32 %v13807_v34, %v20079_v29  ;;  %v16404_v12 = vsub.f32 %v13880_v35, %v20081_v32  ;;  %v22656_v34 = vld [vmem:[#allocation6_spill] sm:$0xff] }
 0x233   :  { %v18151_v2 = vpop.f32.mrf.mxu0  ;;  %v18156_v5 = vpop.f32.mrf.mxu1 }
 0x234   :  { %v16475_v24 = vsub.f32 %v16403_v9, %v22643_v23  ;;  %v16476_v19 = vsub.f32 %v16404_v12, %v22644_v18  ;;  %v22657_v2 = vld [vmem:[#allocation75_spill] sm:$0xff]  ;;  %v22658_v23 = vld [vmem:[#allocation76_spill] sm:$0xff] }
 0x235   :  { %v13953_v58 = vpop.f32.mrf.mxu0  ;;  %v14026_v59 = vpop.f32.mrf.mxu1 }
 0x236   :  { %16547 = vst.msk [vmem:[%s22388_s5 + $0x4c] sm:$0x3] %vm16292_vm2, %v16475_v24  ;;  %16548 = vst.msk [vmem:[%s22388_s5 + $0x4e] sm:$0x3] %vm16292_vm2, %v16476_v19  ;;  %v16405_v29 = vsub.f32 %v13953_v58, %v20103_v49  ;;  %v16406_v32 = vsub.f32 %v14026_v59, %v20105_v52  ;;  %v22659_v58 = vld [vmem:[#allocation7_spill] sm:$0xff] }
 0x237   :  { %v18161_v53 = vpop.f32.mrf.mxu0  ;;  %v18166_v38 = vpop.f32.mrf.mxu1 }
 0x238   :  { %v16477_v17 = vsub.f32 %v16405_v29, %v22645_v16  ;;  %v16478_v1 = vsub.f32 %v16406_v32, %v22646_v54  ;;  %v22660_v29 = vld [vmem:[#allocation8_spill] sm:$0xff]  ;;  %v22661_v16 = vld [vmem:[#allocation77_spill] sm:$0xff]  ;;  %v22662_v54 = vld [vmem:[#allocation78_spill] sm:$0xff] }
 0x239   :  { %v14099_v33 = vpop.f32.mrf.mxu0  ;;  %v14172_v36 = vpop.f32.mrf.mxu1 }
 0x23a   :  { %16549 = vst.msk [vmem:[%s22388_s5 + $0x50] sm:$0x3] %vm16292_vm2, %v16477_v17  ;;  %16550 = vst.msk [vmem:[%s22388_s5 + $0x52] sm:$0x3] %vm16292_vm2, %v16478_v1  ;;  %v16407_v49 = vsub.f32 %v14099_v33, %v20127_v6  ;;  %v16408_v52 = vsub.f32 %v14172_v36, %v20129_v7 }
 0x23b   :  { %v18171_v39 = vpop.f32.mrf.mxu0  ;;  %v18176_v48 = vpop.f32.mrf.mxu1 }
 0x23c   :  { %v16479_v43 = vsub.f32 %v16407_v49, %v22647_v42  ;;  %v16480_v31 = vsub.f32 %v16408_v52, %v22648_v30  ;;  %v22663_v49 = vld [vmem:[#allocation9_spill] sm:$0xff]  ;;  %v22664_v39 = vld [vmem:[#allocation10_spill] sm:$0xff]  ;;  %v22665_v30 = vld [vmem:[#allocation79_spill] sm:$0xff] }
 0x23d   :  { %v14245_v3 = vpop.f32.mrf.mxu0  ;;  %v14318_v4 = vpop.f32.mrf.mxu1 }
 0x23e   :  { %16551 = vst.msk [vmem:[%s22388_s5 + $0x54] sm:$0x3] %vm16292_vm2, %v16479_v43  ;;  %16552 = vst.msk [vmem:[%s22388_s5 + $0x56] sm:$0x3] %vm16292_vm2, %v16480_v31  ;;  %v16409_v6 = vsub.f32 %v14245_v3, %v20151_v28  ;;  %v16410_v7 = vsub.f32 %v14318_v4, %v20153_v37  ;;  %v22666_v3 = vld [vmem:[#allocation80_spill] sm:$0xff] }
 0x23f   :  { %v18181_v10 = vpop.f32.mrf.mxu0  ;;  %v18186_v62 = vpop.f32.mrf.mxu1 }
 0x240   :  { %v16481_v45 = vsub.f32 %v16409_v6, %v21717_v0  ;;  %v16482_v46 = vsub.f32 %v16410_v7, %v21719_v63  ;;  %v22667_v10 = vld [vmem:[#allocation11_spill] sm:$0xff] }
 0x241   :  { %v14391_v26 = vpop.f32.mrf.mxu0  ;;  %v14464_v27 = vpop.f32.mrf.mxu1 }
 0x242   :  { %16553 = vst.msk [vmem:[%s22388_s5 + $0x58] sm:$0x3] %vm16292_vm2, %v16481_v45  ;;  %16554 = vst.msk [vmem:[%s22388_s5 + $0x5a] sm:$0x3] %vm16292_vm2, %v16482_v46  ;;  %v16411_v28 = vsub.f32 %v14391_v26, %v20193_v25  ;;  %v16412_v37 = vsub.f32 %v14464_v27, %v20195_v40  ;;  %v22651_v25 = vld [vmem:[#allocation3_spill] sm:$0xff]  ;;  %v22668_v45 = vld [vmem:[#allocation12_spill] sm:$0xff] }
 0x243   :  { %v18191_v44 = vpop.f32.mrf.mxu0  ;;  %v18196_v0 = vpop.f32.mrf.mxu1 }
 0x244   :  { %v16483_v63 = vsub.f32 %v16411_v28, %v22649_v47  ;;  %v16484_v20 = vsub.f32 %v16412_v37, %v22650_v21  ;;  %v22669_v28 = vld [vmem:[#allocation81_spill] sm:$0xff]  ;;  %v22670_v44 = vld [vmem:[#allocation82_spill] sm:$0xff] }
 0x245   :  { %v14537_v15 = vpop.f32.mrf.mxu0  ;;  %v14610_v11 = vpop.f32.mrf.mxu1  ;;  %v22671_v21 = vld [vmem:[#allocation13_spill] sm:$0xff] }
 0x246   :  { %16555 = vst.msk [vmem:[%s22388_s5 + $0x5c] sm:$0x3] %vm16292_vm2, %v16483_v63  ;;  %16556 = vst.msk [vmem:[%s22388_s5 + $0x5e] sm:$0x3] %vm16292_vm2, %v16484_v20  ;;  %v16413_v40 = vsub.f32 %v14537_v15, %v22651_v25  ;;  %v16414_v14 = vsub.f32 %v14610_v11, %v22652_v13  ;;  %v22672_v15 = vld [vmem:[#allocation14_spill] sm:$0xff]  ;;  %v22673_v13 = vld [vmem:[#allocation83_spill] sm:$0xff] }
 0x247   :  { %v18201_v55 = vpop.f32.mrf.mxu0  ;;  %v18206_v56 = vpop.f32.mrf.mxu1 }
 0x248   :  { %v16485_v61 = vsub.f32 %v16413_v40, %v22653_v60  ;;  %v16486_v51 = vsub.f32 %v16414_v14, %v22654_v50  ;;  %v22674_v55 = vld [vmem:[#allocation84_spill] sm:$0xff]  ;;  %v22675_v50 = vld [vmem:[#allocation15_spill] sm:$0xff] }
 0x249   :  { %v14683_v22 = vpop.f32.mrf.mxu0  ;;  %v14756_v41 = vpop.f32.mrf.mxu1 }
 0x24a   :  { %16557 = vst.msk [vmem:[%s22388_s5 + $0x60] sm:$0x3] %vm16292_vm2, %v16485_v61  ;;  %16558 = vst.msk [vmem:[%s22388_s5 + $0x62] sm:$0x3] %vm16292_vm2, %v16486_v51  ;;  %v16415_v8 = vsub.f32 %v14683_v22, %v22655_v57  ;;  %v16416_v35 = vsub.f32 %v14756_v41, %v22656_v34  ;;  %v22676_v22 = vld [vmem:[#allocation16_spill] sm:$0xff]  ;;  %v22677_v34 = vld [vmem:[#allocation85_spill] sm:$0xff] }
 0x24b   :  { %v18211_v9 = vpop.f32.mrf.mxu0  ;;  %v18216_v12 = vpop.f32.mrf.mxu1 }
 0x24c   :  { %v16487_v5 = vsub.f32 %v16415_v8, %v22657_v2  ;;  %v16488_v24 = vsub.f32 %v16416_v35, %v22658_v23  ;;  %v22678_v9 = vld [vmem:[#allocation86_spill] sm:$0xff]  ;;  %v22679_v23 = vld [vmem:[#allocation17_spill] sm:$0xff] }
 0x24d   :  { %v14829_v18 = vpop.f32.mrf.mxu0  ;;  %v14902_v19 = vpop.f32.mrf.mxu1 }
 0x24e   :  { %16559 = vst.msk [vmem:[%s22388_s5 + $0x64] sm:$0x3] %vm16292_vm2, %v16487_v5  ;;  %16560 = vst.msk [vmem:[%s22388_s5 + $0x66] sm:$0x3] %vm16292_vm2, %v16488_v24  ;;  %v16417_v59 = vsub.f32 %v14829_v18, %v22659_v58  ;;  %v16418_v32 = vsub.f32 %v14902_v19, %v22660_v29  ;;  %v22680_v18 = vld [vmem:[#allocation18_spill] sm:$0xff]  ;;  %v22681_v29 = vld [vmem:[#allocation87_spill] sm:$0xff] }
 0x24f   :  { %v18221_v53 = vpop.f32.mrf.mxu0  ;;  %v18226_v38 = vpop.f32.mrf.mxu1 }
 0x250   :  { %v16489_v17 = vsub.f32 %v16417_v59, %v22661_v16  ;;  %v16490_v1 = vsub.f32 %v16418_v32, %v22662_v54  ;;  %v22682_v53 = vld [vmem:[#allocation88_spill] sm:$0xff]  ;;  %v22683_v54 = vld [vmem:[#allocation19_spill] sm:$0xff] }
 0x251   :  { %v14975_v33 = vpop.f32.mrf.mxu0  ;;  %v15048_v36 = vpop.f32.mrf.mxu1 }
 0x252   :  { %16561 = vst.msk [vmem:[%s22388_s5 + $0x68] sm:$0x3] %vm16292_vm2, %v16489_v17  ;;  %16562 = vst.msk [vmem:[%s22388_s5 + $0x6a] sm:$0x3] %vm16292_vm2, %v16490_v1  ;;  %v16419_v52 = vsub.f32 %v14975_v33, %v22663_v49  ;;  %v16420_v48 = vsub.f32 %v15048_v36, %v22664_v39  ;;  %v22684_v33 = vld [vmem:[#allocation20_spill] sm:$0xff]  ;;  %v22685_v39 = vld [vmem:[#allocation89_spill] sm:$0xff] }
 0x253   :  { %v18231_v42 = vpop.f32.mrf.mxu0  ;;  %v18236_v43 = vpop.f32.mrf.mxu1 }
 0x254   :  { %v16491_v31 = vsub.f32 %v16419_v52, %v22665_v30  ;;  %v16492_v4 = vsub.f32 %v16420_v48, %v22666_v3  ;;  %v22686_v42 = vld [vmem:[#allocation90_spill] sm:$0xff]  ;;  %v22687_v3 = vld [vmem:[#allocation21_spill] sm:$0xff] }
 0x255   :  { %v15121_v6 = vpop.f32.mrf.mxu0  ;;  %v15194_v7 = vpop.f32.mrf.mxu1 }
 0x256   :  { %16563 = vst.msk [vmem:[%s22388_s5 + $0x6c] sm:$0x3] %vm16292_vm2, %v16491_v31  ;;  %16564 = vst.msk [vmem:[%s22388_s5 + $0x6e] sm:$0x3] %vm16292_vm2, %v16492_v4  ;;  %v16421_v62 = vsub.f32 %v15121_v6, %v22667_v10  ;;  %v16422_v46 = vsub.f32 %v15194_v7, %v22668_v45  ;;  %v22688_v6 = vld [vmem:[#allocation22_spill] sm:$0xff]  ;;  %v22689_v45 = vld [vmem:[#allocation91_spill] sm:$0xff] }
 0x257   :  { %v18241_v26 = vpop.f32.mrf.mxu0  ;;  %v18246_v27 = vpop.f32.mrf.mxu1 }
 0x258   :  { %v16493_v37 = vsub.f32 %v16421_v62, %v22669_v28  ;;  %v16494_v0 = vsub.f32 %v16422_v46, %v22670_v44  ;;  %v22690_v26 = vld [vmem:[#allocation92_spill] sm:$0xff]  ;;  %v22691_v44 = vld [vmem:[#allocation23_spill] sm:$0xff] }
 0x259   :  { %v15267_v47 = vpop.f32.mrf.mxu0  ;;  %v15340_v63 = vpop.f32.mrf.mxu1 }
 0x25a   :  { %16565 = vst.msk [vmem:[%s22388_s5 + $0x70] sm:$0x3] %vm16292_vm2, %v16493_v37  ;;  %16566 = vst.msk [vmem:[%s22388_s5 + $0x72] sm:$0x3] %vm16292_vm2, %v16494_v0  ;;  %v16423_v20 = vsub.f32 %v15267_v47, %v22671_v21  ;;  %v16424_v11 = vsub.f32 %v15340_v63, %v22672_v15  ;;  %v22692_v47 = vld [vmem:[#allocation24_spill] sm:$0xff]  ;;  %v22693_v15 = vld [vmem:[#allocation93_spill] sm:$0xff] }
 0x25b   :  { %v18251_v25 = vpop.f32.mrf.mxu0  ;;  %v18256_v40 = vpop.f32.mrf.mxu1 }
 0x25c   :  { %v16495_v14 = vsub.f32 %v16423_v20, %v22673_v13  ;;  %v16496_v56 = vsub.f32 %v16424_v11, %v22674_v55  ;;  %v22694_v25 = vld [vmem:[#allocation94_spill] sm:$0xff]  ;;  %v22695_v55 = vld [vmem:[#allocation25_spill] sm:$0xff] }
 0x25d   :  { %v15413_v60 = vpop.f32.mrf.mxu0  ;;  %v15486_v61 = vpop.f32.mrf.mxu1 }
 0x25e   :  { %16567 = vst.msk [vmem:[%s22388_s5 + $0x74] sm:$0x3] %vm16292_vm2, %v16495_v14  ;;  %16568 = vst.msk [vmem:[%s22388_s5 + $0x76] sm:$0x3] %vm16292_vm2, %v16496_v56  ;;  %v16425_v51 = vsub.f32 %v15413_v60, %v22675_v50  ;;  %v16426_v41 = vsub.f32 %v15486_v61, %v22676_v22  ;;  %v22696_v60 = vld [vmem:[#allocation26_spill] sm:$0xff]  ;;  %v22697_v22 = vld [vmem:[#allocation95_spill] sm:$0xff] }
 0x25f   :  { %v18261_v57 = vpop.f32.mrf.mxu0  ;;  %v18266_v8 = vpop.f32.mrf.mxu1 }
 0x260   :  { %v16497_v35 = vsub.f32 %v16425_v51, %v22677_v34  ;;  %v16498_v12 = vsub.f32 %v16426_v41, %v22678_v9  ;;  %v22698_v57 = vld [vmem:[#allocation96_spill] sm:$0xff] }
 0x261   :  { %v15559_v2 = vpop.f32.mrf.mxu0  ;;  %v15632_v5 = vpop.f32.mrf.mxu1 }
 0x262   :  { %16569 = vst.msk [vmem:[%s22388_s5 + $0x78] sm:$0x3] %vm16292_vm2, %v16497_v35  ;;  %16570 = vst.msk [vmem:[%s22388_s5 + $0x7a] sm:$0x3] %vm16292_vm2, %v16498_v12  ;;  %v16427_v24 = vsub.f32 %v15559_v2, %v22679_v23  ;;  %v16428_v19 = vsub.f32 %v15632_v5, %v22680_v18 }
 0x263   :  { %v18271_v58 = vpop.f32.mrf.mxu0  ;;  %v18276_v59 = vpop.f32.mrf.mxu1 }
 0x264   :  { %v16499_v32 = vsub.f32 %v16427_v24, %v22681_v29  ;;  %v16500_v38 = vsub.f32 %v16428_v19, %v22682_v53 }
 0x265   :  { %v15705_v16 = vpop.f32.mrf.mxu0  ;;  %v15778_v17 = vpop.f32.mrf.mxu1 }
 0x266   :  { %16571 = vst.msk [vmem:[%s22388_s5 + $0x7c] sm:$0x3] %vm16292_vm2, %v16499_v32  ;;  %16572 = vst.msk [vmem:[%s22388_s5 + $0x7e] sm:$0x3] %vm16292_vm2, %v16500_v38  ;;  %v16429_v1 = vsub.f32 %v15705_v16, %v22683_v54  ;;  %v16430_v36 = vsub.f32 %v15778_v17, %v22684_v33 }
 0x267   :  { %v18281_v49 = vpop.f32.mrf.mxu0  ;;  %v18286_v52 = vpop.f32.mrf.mxu1 }
 0x268   :  { %v16501_v48 = vsub.f32 %v16429_v1, %v22685_v39  ;;  %v16502_v43 = vsub.f32 %v16430_v36, %v22686_v42 }
 0x269   :  { %v15851_v30 = vpop.f32.mrf.mxu0  ;;  %v15924_v31 = vpop.f32.mrf.mxu1 }
 0x26a   :  { %16573 = vst.msk [vmem:[%s22388_s5 + $0x80] sm:$0x3] %vm16292_vm2, %v16501_v48  ;;  %16574 = vst.msk [vmem:[%s22388_s5 + $0x82] sm:$0x3] %vm16292_vm2, %v16502_v43  ;;  %v16431_v4 = vsub.f32 %v15851_v30, %v22687_v3  ;;  %v16432_v7 = vsub.f32 %v15924_v31, %v22688_v6 }
 0x26b   :  { %v18291_v10 = vpop.f32.mrf.mxu0  ;;  %v18296_v62 = vpop.f32.mrf.mxu1 }
 0x26c   :  { %v16503_v46 = vsub.f32 %v16431_v4, %v22689_v45  ;;  %v16504_v27 = vsub.f32 %v16432_v7, %v22690_v26 }
 0x26d   :  { %v15997_v28 = vpop.f32.mrf.mxu0  ;;  %v16070_v37 = vpop.f32.mrf.mxu1 }
 0x26e   :  { %16575 = vst.msk [vmem:[%s22388_s5 + $0x84] sm:$0x3] %vm16292_vm2, %v16503_v46  ;;  %16576 = vst.msk [vmem:[%s22388_s5 + $0x86] sm:$0x3] %vm16292_vm2, %v16504_v27  ;;  %v16433_v0 = vsub.f32 %v15997_v28, %v22691_v44  ;;  %v16434_v63 = vsub.f32 %v16070_v37, %v22692_v47 }
 0x26f   :  { %v18301_v21 = vpop.f32.mrf.mxu0  ;;  %v18306_v20 = vpop.f32.mrf.mxu1 }
 0x270   :  { %v16505_v11 = vsub.f32 %v16433_v0, %v22693_v15  ;;  %v16506_v40 = vsub.f32 %v16434_v63, %v22694_v25 }
 0x271   :  { %v16143_v13 = vpop.f32.mrf.mxu0  ;;  %v16216_v14 = vpop.f32.mrf.mxu1 }
 0x272   :  { %16577 = vst.msk [vmem:[%s22388_s5 + $0x88] sm:$0x3] %vm16292_vm2, %v16505_v11  ;;  %16578 = vst.msk [vmem:[%s22388_s5 + $0x8a] sm:$0x3] %vm16292_vm2, %v16506_v40  ;;  %v16435_v56 = vsub.f32 %v16143_v13, %v22695_v55  ;;  %v16436_v61 = vsub.f32 %v16216_v14, %v22696_v60 }
 0x273   :  { %v18311_v50 = vpop.f32.mrf.mxu0  ;;  %v18316_v51 = vpop.f32.mrf.mxu1 }
 0x274   :  { %v16507_v41 = vsub.f32 %v16435_v56, %v22697_v22  ;;  %v16508_v8 = vsub.f32 %v16436_v61, %v22698_v57 }
 0x276   :  { %16579 = vst.msk [vmem:[%s22388_s5 + $0x8c] sm:$0x3] %vm16292_vm2, %v16507_v41  ;;  %16580 = vst.msk [vmem:[%s22388_s5 + $0x8e] sm:$0x3] %vm16292_vm2, %v16508_v8 }

</bundles_post_ra>
